<compile_context>
chip_gen: v7x
topology: tpu7x:2x2x1
jax: 0.10.0
libtpu: 0.0.40
codegen_flags: <defaults>
</compile_context>

<pallas_src>
import functools
import numpy as np
import jax
import jax.numpy as jnp
from jax.experimental import pallas as pl
from jax.experimental.pallas import tpu as pltpu


# ------------------------------ small helpers ------------------------------

def _round_up(x, m):
    return (x + m - 1) // m * m


def _num_tensorcores():
    """Crude multi-TensorCore detection (v7x exposes 2 TCs to one grid)."""
    try:
        kind = (getattr(jax.devices()[0], "device_kind", "") or "").lower()
        if "v7" in kind:
            return 2
    except Exception:
        pass
    return 1


_NUM_TC = _num_tensorcores()
_VMEM_LIMIT = 32 * 1024 * 1024     # explicit; >= scoped default on v5e/v6e/v7x


def _pick_tile(M):
    """Lane-axis (M) tile.

    Single-TC (v5e/v6e): one full-M block (per-tile VMEM is ~1 MiB here, far
    below any limit; fewer grid steps = less per-step overhead, bigger DMAs).
    Multi-TC (v7x): split M in two (multiple of 128) so both cores get work.
    """
    if _NUM_TC > 1 and M >= 256 and (M // 2) % 128 == 0:
        return M // 2
    return M


# ----------------------- Pallas kernel (hot path) ---------------------------

def _mm_bias_act_kernel(*refs, relu_rows, has_res):
    """o = act((Wfolded @ X) + bias [+ residual]) for one M-tile.

    relu_rows: ReLU applied to rows [0, relu_rows) only (0 = no ReLU).  Used
    to fuse the no-ReLU 1x1 downsample rows into the same matmul.
    """
    if has_res:
        w_ref, x_ref, b_ref, r_ref, o_ref = refs
    else:
        w_ref, x_ref, b_ref, o_ref = refs
        r_ref = None
    y = jnp.dot(w_ref[...], x_ref[...],            # bf16 x bf16 -> f32 on MXU
                preferred_element_type=jnp.float32)
    y = y + b_ref[...]                             # folded inference BN bias
    if r_ref is not None:
        y = y + r_ref[...].astype(jnp.float32)     # residual (bf16 stream)
    if relu_rows > 0:
        if relu_rows >= y.shape[0]:
            y = jnp.maximum(y, 0.0)
        else:
            row = jax.lax.broadcasted_iota(jnp.int32, y.shape, 0)
            y = jnp.where(row < relu_rows, jnp.maximum(y, 0.0), y)
    o_ref[...] = y.astype(o_ref.dtype)             # bf16 store (half writeback)


def _matmul_fused(w_t, bias, xcol, M, residual=None, relu_rows=0,
                  out_dtype=jnp.bfloat16):
    """Fused (Ctot,Kp) @ (Kp,M) + bias [+res] [+relu], M-tiled & pipelined."""
    Ctot, Kp = w_t.shape
    tm = _pick_tile(M)
    grid = (M // tm,)
    in_specs = [
        pl.BlockSpec((Ctot, Kp), lambda m: (0, 0)),   # weights stay resident
        pl.BlockSpec((Kp, tm), lambda m: (0, m)),     # activations: M-tiled
        pl.BlockSpec((Ctot, 1), lambda m: (0, 0)),    # bias (per channel)
    ]
    args = [w_t, xcol, bias]
    if residual is not None:
        in_specs.append(pl.BlockSpec((Ctot, tm), lambda m: (0, m)))
        args.append(residual)
    kernel = functools.partial(_mm_bias_act_kernel, relu_rows=relu_rows,
                               has_res=residual is not None)
    return pl.pallas_call(
        kernel,
        grid=grid,
        out_shape=jax.ShapeDtypeStruct((Ctot, M), out_dtype),
        in_specs=in_specs,
        out_specs=pl.BlockSpec((Ctot, tm), lambda m: (0, m)),
        compiler_params=pltpu.CompilerParams(
            dimension_semantics=("parallel",),        # megacore-shard on v7x
            vmem_limit_bytes=_VMEM_LIMIT),
    )(*args)


# ------------------------- im2col / weight prep ------------------------------

def _im2col(x, kh, kw, stride, pad):
    """Transposed im2col: (C,B,H,W) bf16 -> (Kp, M) bf16, K padded to mult 16.

    The K zero-padding rows are folded into the single concat (no extra HBM
    pad pass); the matching weight columns are zero so the result is exact.
    """
    Cin, B, H, W = x.shape
    Ho = (H + 2 * pad - kh) // stride + 1
    Wo = (W + 2 * pad - kw) // stride + 1
    M = B * Ho * Wo
    xb = jnp.pad(x, ((0, 0), (0, 0), (pad, pad), (pad, pad))) if pad else x
    cols = []
    for i in range(kh):
        for j in range(kw):
            cols.append(jax.lax.slice(
                xb, (0, 0, i, j),
                (Cin, B, i + (Ho - 1) * stride + 1, j + (Wo - 1) * stride + 1),
                (1, 1, stride, stride)).reshape(Cin, M))
    K = kh * kw * Cin
    Kp = _round_up(K, 16)                      # bf16 sublane pack, not 128
    if Kp != K:
        cols.append(jnp.zeros((Kp - K, M), x.dtype))
    return jnp.concatenate(cols, axis=0), (Ho, Wo, M, K, Kp)


def _fold_w(w, scale):
    """(kh,kw,Cin,Cout) f32 weights * BN scale -> (Cout, K) f32 (tap-major)."""
    kh, kw, Cin, Cout = w.shape
    wf = (w * scale.reshape(1, 1, 1, -1)).reshape(kh * kw * Cin, Cout)
    return jnp.transpose(wf)


def _pad_k(w_t, K, Kp):
    return w_t if Kp == K else jnp.pad(w_t, ((0, 0), (0, Kp - K)))


# ------------------------- pooling (XLA fused) -------------------------------

def _maxpool_3x3_s2_p1(x):
    """Fused max-tree over the 9 strided taps; no (9,C,M) buffer, no launch."""
    C, B, H, W = x.shape
    k, s, pad = 3, 2, 1
    Ho = (H + 2 * pad - k) // s + 1
    Wo = (W + 2 * pad - k) // s + 1
    xp = jnp.pad(x, ((0, 0), (0, 0), (pad, pad), (pad, pad)),
                 constant_values=-jnp.inf)
    out = None
    for i in range(k):
        for j in range(k):
            tap = jax.lax.slice(
                xp, (0, 0, i, j),
                (C, B, i + (Ho - 1) * s + 1, j + (Wo - 1) * s + 1),
                (1, 1, s, s))
            out = tap if out is None else jnp.maximum(out, tap)
    return out                                        # (C, B, Ho, Wo)


def _global_avg_pool(x):
    # adaptive_avg_pool2d((1,1)) + view(B, -1); tiny tensor -> plain XLA mean.
    return jnp.transpose(jnp.mean(x.astype(jnp.float32), axis=(2, 3)))  # (B,C)


# ------------------------------ ResNet glue ---------------------------------

def _basic_block(x, blk):
    s = blk['stride']
    Cin, B = x.shape[0], x.shape[1]
    Cout = blk['w1'].shape[-1]

    # --- conv1 (3x3, stride s, pad 1) [+ fused 1x1 downsample rows] ---------
    w1_t = _fold_w(blk['w1'], blk['s1'])                       # (Cout, 9*Cin)
    if blk['down'] is not None:
        # 1x1 stride-s pad-0 conv == center tap (t=4) of the 3x3 pad-1 im2col.
        wd = blk['down']['w'].reshape(Cin, Cout) * blk['down']['s'].reshape(1, -1)
        wd_t = jnp.transpose(wd)                               # (Cout, Cin)
        zeros = jnp.zeros((Cout, 4 * Cin), jnp.float32)
        wd_full = jnp.concatenate([zeros, wd_t, zeros], axis=1)  # (Cout, 9*Cin)
        w_t = jnp.concatenate([w1_t, wd_full], axis=0)           # (2Cout, 9Cin)
        bias = jnp.concatenate([blk['b1'], blk['down']['b']]).reshape(-1, 1)
    else:
        w_t = w1_t
        bias = blk['b1'].reshape(-1, 1)

    xcol, (Ho, Wo, M, K, Kp) = _im2col(x, 3, 3, s, 1)
    w_t = _pad_k(w_t, K, Kp)
    y = _matmul_fused(w_t.astype(jnp.bfloat16), bias.astype(jnp.float32),
                      xcol, M, relu_rows=Cout)                  # bf16 out

    if blk['down'] is not None:
        h = y[:Cout].reshape(Cout, B, Ho, Wo)
        idn = y[Cout:]                                          # (Cout, M) bf16
    else:
        h = y.reshape(Cout, B, Ho, Wo)
        idn = x.reshape(Cout, M)                                # stride 1: same M

    # --- conv2 (3x3, stride 1, pad 1) + residual + ReLU ----------------------
    w2_t = _fold_w(blk['w2'], blk['s2'])
    xcol2, (Ho2, Wo2, M2, K2, Kp2) = _im2col(h, 3, 3, 1, 1)
    w2_t = _pad_k(w2_t, K2, Kp2)
    out = _matmul_fused(w2_t.astype(jnp.bfloat16),
                        blk['b2'].reshape(-1, 1).astype(jnp.float32),
                        xcol2, M2, residual=idn, relu_rows=Cout)
    return out.reshape(Cout, B, Ho2, Wo2)


def backbone_forward(x_nchw, params):
    # NCHW -> (C, B, H, W), bf16 activations end-to-end.
    x = jnp.transpose(x_nchw, (1, 0, 2, 3)).astype(jnp.bfloat16)
    B = x.shape[1]
    Cout1 = params['conv1_w'].shape[-1]

    # conv1 7x7 s2 p3 + BN + ReLU
    w_t = _fold_w(params['conv1_w'], params['bn1_s'])
    xcol, (Ho, Wo, M, K, Kp) = _im2col(x, 7, 7, 2, 3)
    w_t = _pad_k(w_t, K, Kp)
    y = _matmul_fused(w_t.astype(jnp.bfloat16),
                      params['bn1_b'].reshape(-1, 1).astype(jnp.float32),
                      xcol, M, relu_rows=Cout1)
    x = y.reshape(Cout1, B, Ho, Wo)

    x = _maxpool_3x3_s2_p1(x)
    for layer in params['layers']:
        for blk in layer:
            x = _basic_block(x, blk)
    return _global_avg_pool(x)                                  # (B, C)


# --------------------------- deterministic params ---------------------------

def make_params(key, in_ch=3, widths=(8, 16, 32, 64)):
    keys = iter(jax.random.split(key, 256))

    def conv_w(kh, kw, cin, cout):
        fan_in = kh * kw * cin
        return (jax.random.normal(next(keys), (kh, kw, cin, cout), jnp.float32)
                / np.sqrt(fan_in))

    def bn_fold(c):   # inference-mode BN folded to scale/bias vectors
        gamma = 1.0 + 0.1 * jax.random.normal(next(keys), (c,), jnp.float32)
        beta = 0.1 * jax.random.normal(next(keys), (c,), jnp.float32)
        mean = 0.1 * jax.random.normal(next(keys), (c,), jnp.float32)
        var = 1.0 + 0.1 * jnp.abs(jax.random.normal(next(keys), (c,), jnp.float32))
        scale = gamma / jnp.sqrt(var + 1e-5)
        bias = beta - mean * scale
        return scale, bias

    params = {'conv1_w': conv_w(7, 7, in_ch, widths[0])}
    params['bn1_s'], params['bn1_b'] = bn_fold(widths[0])

    layers = []
    cin = widths[0]
    for li, cout in enumerate(widths):
        stage_stride = 1 if li == 0 else 2
        blocks = []
        for bi in range(2):
            s = stage_stride if bi == 0 else 1
            bcin = cin if bi == 0 else cout
            blk = {'stride': s,
                   'w1': conv_w(3, 3, bcin, cout),
                   'w2': conv_w(3, 3, cout, cout)}
            blk['s1'], blk['b1'] = bn_fold(cout)
            blk['s2'], blk['b2'] = bn_fold(cout)
            if bi == 0 and (s != 1 or bcin != cout):
                blk['down'] = {'w': conv_w(1, 1, bcin, cout)}
                blk['down']['s'], blk['down']['b'] = bn_fold(cout)
            else:
                blk['down'] = None
            blocks.append(blk)
        layers.append(blocks)
        cin = cout
    params['layers'] = layers
    return params


# ------------------------------ pure-JAX reference --------------------------
# Mirrors the kernel's quantization exactly: BN scale folded into f32 weights
# then bf16-cast, bf16 activations between layers, f32 accumulation/epilogue.

def _ref_conv(x_nhwc, w, scale, bias, *, stride, pad, relu):
    wf = (w * scale.reshape(1, 1, 1, -1)).astype(jnp.bfloat16)
    y = jax.lax.conv_general_dilated(
        x_nhwc, wf, (stride, stride), [(pad, pad), (pad, pad)],
        dimension_numbers=('NHWC', 'HWIO', 'NHWC'),
        preferred_element_type=jnp.float32)
    y = y + bias.reshape(1, 1, 1, -1)
    if relu:
        y = jnp.maximum(y, 0.0)
    return y


def ref_forward(x_nchw, params):
    x = jnp.transpose(x_nchw, (0, 2, 3, 1)).astype(jnp.bfloat16)    # NHWC
    x = _ref_conv(x, params['conv1_w'], params['bn1_s'], params['bn1_b'],
                  stride=2, pad=3, relu=True).astype(jnp.bfloat16)
    x = jax.lax.reduce_window(x, jnp.asarray(-jnp.inf, x.dtype), jax.lax.max,
                              (1, 3, 3, 1), (1, 2, 2, 1),
                              [(0, 0), (1, 1), (1, 1), (0, 0)])
    for layer in params['layers']:
        for blk in layer:
            s = blk['stride']
            h = _ref_conv(x, blk['w1'], blk['s1'], blk['b1'],
                          stride=s, pad=1, relu=True).astype(jnp.bfloat16)
            if blk['down'] is not None:
                idn = _ref_conv(x, blk['down']['w'], blk['down']['s'],
                                blk['down']['b'], stride=s, pad=0,
                                relu=False).astype(jnp.bfloat16)
            else:
                idn = x
            y = _ref_conv(h, blk['w2'], blk['s2'], blk['b2'],
                          stride=1, pad=1, relu=False)
            y = y + idn.astype(jnp.float32)
            x = jnp.maximum(y, 0.0).astype(jnp.bfloat16)
    return jnp.mean(x.astype(jnp.float32), axis=(1, 2))


# ----------------------------------- main -----------------------------------

if __name__ == "__main__":
    key = jax.random.PRNGKey(0)
    kx, kp = jax.random.split(key)

    # NCHW input, as the PyTorch module expects.
    x = jax.random.normal(kx, (2, 3, 64, 64), jnp.float32)
    params = make_params(kp)

    fwd = jax.jit(lambda inp: backbone_forward(inp, params))
    out = fwd(x)
    jax.block_until_ready(out)

    assert out.shape == (2, 64), out.shape
    ref = ref_forward(x, params)
    err = float(jnp.max(jnp.abs(out - ref)))
    assert err < 2e-2, f"max abs err {err}"
    print("KERNEL_OK")
</pallas_src>

<mosaic_0001>
module attributes {stable_mosaic.version = 11 : i64} {
  func.func @_mm_bias_act_kernel(%arg0: i32, %arg1: memref<8x160xbf16, #tpu.memory_space<vmem>>, %arg2: memref<160x2048xbf16, #tpu.memory_space<vmem>>, %arg3: memref<8x1xf32, #tpu.memory_space<vmem>>, %arg4: memref<8x2048xbf16, #tpu.memory_space<vmem>>) attributes {dimension_semantics = [#tpu.dimension_semantics<parallel>], iteration_bounds = array<i64: 1>, scalar_prefetch = 0 : i64, scratch_operands = 0 : i64, tpu.core_type = #tpu.core_type<tc>, window_params = [{pipeline_mode = #tpu.pipeline_mode<synchronous>, transform_indices = @transform_0, window_bounds = array<i64: 8, 160>}, {transform_indices = @transform_1, window_bounds = array<i64: 160, 2048>}, {pipeline_mode = #tpu.pipeline_mode<synchronous>, transform_indices = @transform_2, window_bounds = array<i64: 8, 1>}, {transform_indices = @transform_3, window_bounds = array<i64: 8, 2048>}]} {
    %c0 = arith.constant 0 : index
    %c0_0 = arith.constant 0 : index
    %0 = vector.load %arg1[%c0, %c0_0] : memref<8x160xbf16, #tpu.memory_space<vmem>>, vector<8x160xbf16>
    %c0_1 = arith.constant 0 : index
    %c0_2 = arith.constant 0 : index
    %1 = vector.load %arg2[%c0_1, %c0_2] : memref<160x2048xbf16, #tpu.memory_space<vmem>>, vector<160x2048xbf16>
    %cst = arith.constant dense<0.000000e+00> : vector<8x2048xf32>
    %2 = tpu.matmul %0, %1, %cst {dimension_numbers = #tpu.dot_dimension_numbers<[1], [0], [0], [1], [0, 0, 1, 1], [], []>} : vector<8x160xbf16>, vector<160x2048xbf16>, vector<8x2048xf32> -> vector<8x2048xf32>
    %c0_3 = arith.constant 0 : index
    %c0_4 = arith.constant 0 : index
    %3 = vector.load %arg3[%c0_3, %c0_4] : memref<8x1xf32, #tpu.memory_space<vmem>>, vector<8x1xf32>
    %4 = vector.broadcast %3 : vector<8x1xf32> to vector<8x2048xf32>
    %5 = arith.addf %2, %4 : vector<8x2048xf32>
    %cst_5 = arith.constant 0.000000e+00 : f32
    %6 = vector.broadcast %cst_5 : f32 to vector<8x2048xf32>
    %7 = arith.maximumf %5, %6 : vector<8x2048xf32>
    %8 = arith.truncf %7 : vector<8x2048xf32> to vector<8x2048xbf16>
    %c0_6 = arith.constant 0 : index
    %c0_7 = arith.constant 0 : index
    %9 = vector.load %arg4[%c0_6, %c0_7] : memref<8x2048xbf16, #tpu.memory_space<vmem>>, vector<8x2048xbf16>
    tpu.vector_store %arg4[%c0_6, %c0_7], %8 {strides = array<i32>} : memref<8x2048xbf16, #tpu.memory_space<vmem>>, vector<8x2048xbf16>,
    return
  }
  func.func @transform_0(%arg0: i32) -> (i32, i32) {
    %c0_i32 = arith.constant 0 : i32
    %c0_i32_0 = arith.constant 0 : i32
    %c0_i32_1 = arith.constant 0 : i32
    return %c0_i32, %c0_i32_0 : i32, i32
  }
  func.func @transform_1(%arg0: i32) -> (i32, i32) {
    %c0_i32 = arith.constant 0 : i32
    %c0_i32_0 = arith.constant 0 : i32
    return %c0_i32, %arg0 : i32, i32
  }
  func.func @transform_2(%arg0: i32) -> (i32, i32) {
    %c0_i32 = arith.constant 0 : i32
    %c0_i32_0 = arith.constant 0 : i32
    %c0_i32_1 = arith.constant 0 : i32
    return %c0_i32, %c0_i32_0 : i32, i32
  }
  func.func @transform_3(%arg0: i32) -> (i32, i32) {
    %c0_i32 = arith.constant 0 : i32
    %c0_i32_0 = arith.constant 0 : i32
    return %c0_i32, %arg0 : i32, i32
  }
}

module attributes {stable_mosaic.version = 11 : i64} {
  func.func @_mm_bias_act_kernel(%arg0: i32, %arg1: memref<8x80xbf16, #tpu.memory_space<vmem>>, %arg2: memref<80x512xbf16, #tpu.memory_space<vmem>>, %arg3: memref<8x1xf32, #tpu.memory_space<vmem>>, %arg4: memref<8x512xbf16, #tpu.memory_space<vmem>>) attributes {dimension_semantics = [#tpu.dimension_semantics<parallel>], iteration_bounds = array<i64: 1>, scalar_prefetch = 0 : i64, scratch_operands = 0 : i64, tpu.core_type = #tpu.core_type<tc>, window_params = [{pipeline_mode = #tpu.pipeline_mode<synchronous>, transform_indices = @transform_0, window_bounds = array<i64: 8, 80>}, {transform_indices = @transform_1, window_bounds = array<i64: 80, 512>}, {pipeline_mode = #tpu.pipeline_mode<synchronous>, transform_indices = @transform_2, window_bounds = array<i64: 8, 1>}, {transform_indices = @transform_3, window_bounds = array<i64: 8, 512>}]} {
    %c0 = arith.constant 0 : index
    %c0_0 = arith.constant 0 : index
    %0 = vector.load %arg1[%c0, %c0_0] : memref<8x80xbf16, #tpu.memory_space<vmem>>, vector<8x80xbf16>
    %c0_1 = arith.constant 0 : index
    %c0_2 = arith.constant 0 : index
    %1 = vector.load %arg2[%c0_1, %c0_2] : memref<80x512xbf16, #tpu.memory_space<vmem>>, vector<80x512xbf16>
    %cst = arith.constant dense<0.000000e+00> : vector<8x512xf32>
    %2 = tpu.matmul %0, %1, %cst {dimension_numbers = #tpu.dot_dimension_numbers<[1], [0], [0], [1], [0, 0, 1, 1], [], []>} : vector<8x80xbf16>, vector<80x512xbf16>, vector<8x512xf32> -> vector<8x512xf32>
    %c0_3 = arith.constant 0 : index
    %c0_4 = arith.constant 0 : index
    %3 = vector.load %arg3[%c0_3, %c0_4] : memref<8x1xf32, #tpu.memory_space<vmem>>, vector<8x1xf32>
    %4 = vector.broadcast %3 : vector<8x1xf32> to vector<8x512xf32>
    %5 = arith.addf %2, %4 : vector<8x512xf32>
    %cst_5 = arith.constant 0.000000e+00 : f32
    %6 = vector.broadcast %cst_5 : f32 to vector<8x512xf32>
    %7 = arith.maximumf %5, %6 : vector<8x512xf32>
    %8 = arith.truncf %7 : vector<8x512xf32> to vector<8x512xbf16>
    %c0_6 = arith.constant 0 : index
    %c0_7 = arith.constant 0 : index
    %9 = vector.load %arg4[%c0_6, %c0_7] : memref<8x512xbf16, #tpu.memory_space<vmem>>, vector<8x512xbf16>
    tpu.vector_store %arg4[%c0_6, %c0_7], %8 {strides = array<i32>} : memref<8x512xbf16, #tpu.memory_space<vmem>>, vector<8x512xbf16>,
    return
  }
  func.func @transform_0(%arg0: i32) -> (i32, i32) {
    %c0_i32 = arith.constant 0 : i32
    %c0_i32_0 = arith.constant 0 : i32
    %c0_i32_1 = arith.constant 0 : i32
    return %c0_i32, %c0_i32_0 : i32, i32
  }
  func.func @transform_1(%arg0: i32) -> (i32, i32) {
    %c0_i32 = arith.constant 0 : i32
    %c0_i32_0 = arith.constant 0 : i32
    return %c0_i32, %arg0 : i32, i32
  }
  func.func @transform_2(%arg0: i32) -> (i32, i32) {
    %c0_i32 = arith.constant 0 : i32
    %c0_i32_0 = arith.constant 0 : i32
    %c0_i32_1 = arith.constant 0 : i32
    return %c0_i32, %c0_i32_0 : i32, i32
  }
  func.func @transform_3(%arg0: i32) -> (i32, i32) {
    %c0_i32 = arith.constant 0 : i32
    %c0_i32_0 = arith.constant 0 : i32
    return %c0_i32, %arg0 : i32, i32
  }
}

module attributes {stable_mosaic.version = 11 : i64} {
  func.func @_mm_bias_act_kernel(%arg0: i32, %arg1: memref<8x80xbf16, #tpu.memory_space<vmem>>, %arg2: memref<80x512xbf16, #tpu.memory_space<vmem>>, %arg3: memref<8x1xf32, #tpu.memory_space<vmem>>, %arg4: memref<8x512xbf16, #tpu.memory_space<vmem>>, %arg5: memref<8x512xbf16, #tpu.memory_space<vmem>>) attributes {dimension_semantics = [#tpu.dimension_semantics<parallel>], iteration_bounds = array<i64: 1>, scalar_prefetch = 0 : i64, scratch_operands = 0 : i64, tpu.core_type = #tpu.core_type<tc>, window_params = [{pipeline_mode = #tpu.pipeline_mode<synchronous>, transform_indices = @transform_0, window_bounds = array<i64: 8, 80>}, {transform_indices = @transform_1, window_bounds = array<i64: 80, 512>}, {pipeline_mode = #tpu.pipeline_mode<synchronous>, transform_indices = @transform_2, window_bounds = array<i64: 8, 1>}, {transform_indices = @transform_3, window_bounds = array<i64: 8, 512>}, {transform_indices = @transform_4, window_bounds = array<i64: 8, 512>}]} {
    %c0 = arith.constant 0 : index
    %c0_0 = arith.constant 0 : index
    %0 = vector.load %arg1[%c0, %c0_0] : memref<8x80xbf16, #tpu.memory_space<vmem>>, vector<8x80xbf16>
    %c0_1 = arith.constant 0 : index
    %c0_2 = arith.constant 0 : index
    %1 = vector.load %arg2[%c0_1, %c0_2] : memref<80x512xbf16, #tpu.memory_space<vmem>>, vector<80x512xbf16>
    %cst = arith.constant dense<0.000000e+00> : vector<8x512xf32>
    %2 = tpu.matmul %0, %1, %cst {dimension_numbers = #tpu.dot_dimension_numbers<[1], [0], [0], [1], [0, 0, 1, 1], [], []>} : vector<8x80xbf16>, vector<80x512xbf16>, vector<8x512xf32> -> vector<8x512xf32>
    %c0_3 = arith.constant 0 : index
    %c0_4 = arith.constant 0 : index
    %3 = vector.load %arg3[%c0_3, %c0_4] : memref<8x1xf32, #tpu.memory_space<vmem>>, vector<8x1xf32>
    %4 = vector.broadcast %3 : vector<8x1xf32> to vector<8x512xf32>
    %5 = arith.addf %2, %4 : vector<8x512xf32>
    %c0_5 = arith.constant 0 : index
    %c0_6 = arith.constant 0 : index
    %6 = vector.load %arg4[%c0_5, %c0_6] : memref<8x512xbf16, #tpu.memory_space<vmem>>, vector<8x512xbf16>
    %7 = arith.extf %6 : vector<8x512xbf16> to vector<8x512xf32>
    %8 = arith.addf %5, %7 : vector<8x512xf32>
    %cst_7 = arith.constant 0.000000e+00 : f32
    %9 = vector.broadcast %cst_7 : f32 to vector<8x512xf32>
    %10 = arith.maximumf %8, %9 : vector<8x512xf32>
    %11 = arith.truncf %10 : vector<8x512xf32> to vector<8x512xbf16>
    %c0_8 = arith.constant 0 : index
    %c0_9 = arith.constant 0 : index
    %12 = vector.load %arg5[%c0_8, %c0_9] : memref<8x512xbf16, #tpu.memory_space<vmem>>, vector<8x512xbf16>
    tpu.vector_store %arg5[%c0_8, %c0_9], %11 {strides = array<i32>} : memref<8x512xbf16, #tpu.memory_space<vmem>>, vector<8x512xbf16>,
    return
  }
  func.func @transform_0(%arg0: i32) -> (i32, i32) {
    %c0_i32 = arith.constant 0 : i32
    %c0_i32_0 = arith.constant 0 : i32
    %c0_i32_1 = arith.constant 0 : i32
    return %c0_i32, %c0_i32_0 : i32, i32
  }
  func.func @transform_1(%arg0: i32) -> (i32, i32) {
    %c0_i32 = arith.constant 0 : i32
    %c0_i32_0 = arith.constant 0 : i32
    return %c0_i32, %arg0 : i32, i32
  }
  func.func @transform_2(%arg0: i32) -> (i32, i32) {
    %c0_i32 = arith.constant 0 : i32
    %c0_i32_0 = arith.constant 0 : i32
    %c0_i32_1 = arith.constant 0 : i32
    return %c0_i32, %c0_i32_0 : i32, i32
  }
  func.func @transform_3(%arg0: i32) -> (i32, i32) {
    %c0_i32 = arith.constant 0 : i32
    %c0_i32_0 = arith.constant 0 : i32
    return %c0_i32, %arg0 : i32, i32
  }
  func.func @transform_4(%arg0: i32) -> (i32, i32) {
    %c0_i32 = arith.constant 0 : i32
    %c0_i32_0 = arith.constant 0 : i32
    return %c0_i32, %arg0 : i32, i32
  }
}

module attributes {stable_mosaic.version = 11 : i64} {
  func.func @_mm_bias_act_kernel(%arg0: i32, %arg1: memref<32x80xbf16, #tpu.memory_space<vmem>>, %arg2: memref<80x128xbf16, #tpu.memory_space<vmem>>, %arg3: memref<32x1xf32, #tpu.memory_space<vmem>>, %arg4: memref<32x128xbf16, #tpu.memory_space<vmem>>) attributes {dimension_semantics = [#tpu.dimension_semantics<parallel>], iteration_bounds = array<i64: 1>, scalar_prefetch = 0 : i64, scratch_operands = 0 : i64, tpu.core_type = #tpu.core_type<tc>, window_params = [{pipeline_mode = #tpu.pipeline_mode<synchronous>, transform_indices = @transform_0, window_bounds = array<i64: 32, 80>}, {transform_indices = @transform_1, window_bounds = array<i64: 80, 128>}, {pipeline_mode = #tpu.pipeline_mode<synchronous>, transform_indices = @transform_2, window_bounds = array<i64: 32, 1>}, {transform_indices = @transform_3, window_bounds = array<i64: 32, 128>}]} {
    %c0 = arith.constant 0 : index
    %c0_0 = arith.constant 0 : index
    %0 = vector.load %arg1[%c0, %c0_0] : memref<32x80xbf16, #tpu.memory_space<vmem>>, vector<32x80xbf16>
    %c0_1 = arith.constant 0 : index
    %c0_2 = arith.constant 0 : index
    %1 = vector.load %arg2[%c0_1, %c0_2] : memref<80x128xbf16, #tpu.memory_space<vmem>>, vector<80x128xbf16>
    %cst = arith.constant dense<0.000000e+00> : vector<32x128xf32>
    %2 = tpu.matmul %0, %1, %cst {dimension_numbers = #tpu.dot_dimension_numbers<[1], [0], [0], [1], [0, 0, 1, 1], [], []>} : vector<32x80xbf16>, vector<80x128xbf16>, vector<32x128xf32> -> vector<32x128xf32>
    %c0_3 = arith.constant 0 : index
    %c0_4 = arith.constant 0 : index
    %3 = vector.load %arg3[%c0_3, %c0_4] : memref<32x1xf32, #tpu.memory_space<vmem>>, vector<32x1xf32>
    %4 = vector.broadcast %3 : vector<32x1xf32> to vector<32x128xf32>
    %5 = arith.addf %2, %4 : vector<32x128xf32>
    %6 = tpu.iota {dimensions = array<i32: 0>} : vector<32x128xi32>
    %c16_i32 = arith.constant 16 : i32
    %7 = vector.broadcast %c16_i32 : i32 to vector<32x128xi32>
    %8 = arith.cmpi slt, %6, %7 : vector<32x128xi32>
    %cst_5 = arith.constant 0.000000e+00 : f32
    %9 = vector.broadcast %cst_5 : f32 to vector<32x128xf32>
    %10 = arith.maximumf %5, %9 : vector<32x128xf32>
    %11 = arith.select %8, %10, %5 : vector<32x128xi1>, vector<32x128xf32>
    %12 = arith.truncf %11 : vector<32x128xf32> to vector<32x128xbf16>
    %c0_6 = arith.constant 0 : index
    %c0_7 = arith.constant 0 : index
    %13 = vector.load %arg4[%c0_6, %c0_7] : memref<32x128xbf16, #tpu.memory_space<vmem>>, vector<32x128xbf16>
    tpu.vector_store %arg4[%c0_6, %c0_7], %12 {strides = array<i32>} : memref<32x128xbf16, #tpu.memory_space<vmem>>, vector<32x128xbf16>,
    return
  }
  func.func @transform_0(%arg0: i32) -> (i32, i32) {
    %c0_i32 = arith.constant 0 : i32
    %c0_i32_0 = arith.constant 0 : i32
    %c0_i32_1 = arith.constant 0 : i32
    return %c0_i32, %c0_i32_0 : i32, i32
  }
  func.func @transform_1(%arg0: i32) -> (i32, i32) {
    %c0_i32 = arith.constant 0 : i32
    %c0_i32_0 = arith.constant 0 : i32
    return %c0_i32, %arg0 : i32, i32
  }
  func.func @transform_2(%arg0: i32) -> (i32, i32) {
    %c0_i32 = arith.constant 0 : i32
    %c0_i32_0 = arith.constant 0 : i32
    %c0_i32_1 = arith.constant 0 : i32
    return %c0_i32, %c0_i32_0 : i32, i32
  }
  func.func @transform_3(%arg0: i32) -> (i32, i32) {
    %c0_i32 = arith.constant 0 : i32
    %c0_i32_0 = arith.constant 0 : i32
    return %c0_i32, %arg0 : i32, i32
  }
}

module attributes {stable_mosaic.version = 11 : i64} {
  func.func @_mm_bias_act_kernel(%arg0: i32, %arg1: memref<16x144xbf16, #tpu.memory_space<vmem>>, %arg2: memref<144x128xbf16, #tpu.memory_space<vmem>>, %arg3: memref<16x1xf32, #tpu.memory_space<vmem>>, %arg4: memref<16x128xbf16, #tpu.memory_space<vmem>>, %arg5: memref<16x128xbf16, #tpu.memory_space<vmem>>) attributes {dimension_semantics = [#tpu.dimension_semantics<parallel>], iteration_bounds = array<i64: 1>, scalar_prefetch = 0 : i64, scratch_operands = 0 : i64, tpu.core_type = #tpu.core_type<tc>, window_params = [{pipeline_mode = #tpu.pipeline_mode<synchronous>, transform_indices = @transform_0, window_bounds = array<i64: 16, 144>}, {transform_indices = @transform_1, window_bounds = array<i64: 144, 128>}, {pipeline_mode = #tpu.pipeline_mode<synchronous>, transform_indices = @transform_2, window_bounds = array<i64: 16, 1>}, {transform_indices = @transform_3, window_bounds = array<i64: 16, 128>}, {transform_indices = @transform_4, window_bounds = array<i64: 16, 128>}]} {
    %c0 = arith.constant 0 : index
    %c0_0 = arith.constant 0 : index
    %0 = vector.load %arg1[%c0, %c0_0] : memref<16x144xbf16, #tpu.memory_space<vmem>>, vector<16x144xbf16>
    %c0_1 = arith.constant 0 : index
    %c0_2 = arith.constant 0 : index
    %1 = vector.load %arg2[%c0_1, %c0_2] : memref<144x128xbf16, #tpu.memory_space<vmem>>, vector<144x128xbf16>
    %cst = arith.constant dense<0.000000e+00> : vector<16x128xf32>
    %2 = tpu.matmul %0, %1, %cst {dimension_numbers = #tpu.dot_dimension_numbers<[1], [0], [0], [1], [0, 0, 1, 1], [], []>} : vector<16x144xbf16>, vector<144x128xbf16>, vector<16x128xf32> -> vector<16x128xf32>
    %c0_3 = arith.constant 0 : index
    %c0_4 = arith.constant 0 : index
    %3 = vector.load %arg3[%c0_3, %c0_4] : memref<16x1xf32, #tpu.memory_space<vmem>>, vector<16x1xf32>
    %4 = vector.broadcast %3 : vector<16x1xf32> to vector<16x128xf32>
    %5 = arith.addf %2, %4 : vector<16x128xf32>
    %c0_5 = arith.constant 0 : index
    %c0_6 = arith.constant 0 : index
    %6 = vector.load %arg4[%c0_5, %c0_6] : memref<16x128xbf16, #tpu.memory_space<vmem>>, vector<16x128xbf16>
    %7 = arith.extf %6 : vector<16x128xbf16> to vector<16x128xf32>
    %8 = arith.addf %5, %7 : vector<16x128xf32>
    %cst_7 = arith.constant 0.000000e+00 : f32
    %9 = vector.broadcast %cst_7 : f32 to vector<16x128xf32>
    %10 = arith.maximumf %8, %9 : vector<16x128xf32>
    %11 = arith.truncf %10 : vector<16x128xf32> to vector<16x128xbf16>
    %c0_8 = arith.constant 0 : index
    %c0_9 = arith.constant 0 : index
    %12 = vector.load %arg5[%c0_8, %c0_9] : memref<16x128xbf16, #tpu.memory_space<vmem>>, vector<16x128xbf16>
    tpu.vector_store %arg5[%c0_8, %c0_9], %11 {strides = array<i32>} : memref<16x128xbf16, #tpu.memory_space<vmem>>, vector<16x128xbf16>,
    return
  }
  func.func @transform_0(%arg0: i32) -> (i32, i32) {
    %c0_i32 = arith.constant 0 : i32
    %c0_i32_0 = arith.constant 0 : i32
    %c0_i32_1 = arith.constant 0 : i32
    return %c0_i32, %c0_i32_0 : i32, i32
  }
  func.func @transform_1(%arg0: i32) -> (i32, i32) {
    %c0_i32 = arith.constant 0 : i32
    %c0_i32_0 = arith.constant 0 : i32
    return %c0_i32, %arg0 : i32, i32
  }
  func.func @transform_2(%arg0: i32) -> (i32, i32) {
    %c0_i32 = arith.constant 0 : i32
    %c0_i32_0 = arith.constant 0 : i32
    %c0_i32_1 = arith.constant 0 : i32
    return %c0_i32, %c0_i32_0 : i32, i32
  }
  func.func @transform_3(%arg0: i32) -> (i32, i32) {
    %c0_i32 = arith.constant 0 : i32
    %c0_i32_0 = arith.constant 0 : i32
    return %c0_i32, %arg0 : i32, i32
  }
  func.func @transform_4(%arg0: i32) -> (i32, i32) {
    %c0_i32 = arith.constant 0 : i32
    %c0_i32_0 = arith.constant 0 : i32
    return %c0_i32, %arg0 : i32, i32
  }
}

module attributes {stable_mosaic.version = 11 : i64} {
  func.func @_mm_bias_act_kernel(%arg0: i32, %arg1: memref<16x144xbf16, #tpu.memory_space<vmem>>, %arg2: memref<144x128xbf16, #tpu.memory_space<vmem>>, %arg3: memref<16x1xf32, #tpu.memory_space<vmem>>, %arg4: memref<16x128xbf16, #tpu.memory_space<vmem>>) attributes {dimension_semantics = [#tpu.dimension_semantics<parallel>], iteration_bounds = array<i64: 1>, scalar_prefetch = 0 : i64, scratch_operands = 0 : i64, tpu.core_type = #tpu.core_type<tc>, window_params = [{pipeline_mode = #tpu.pipeline_mode<synchronous>, transform_indices = @transform_0, window_bounds = array<i64: 16, 144>}, {transform_indices = @transform_1, window_bounds = array<i64: 144, 128>}, {pipeline_mode = #tpu.pipeline_mode<synchronous>, transform_indices = @transform_2, window_bounds = array<i64: 16, 1>}, {transform_indices = @transform_3, window_bounds = array<i64: 16, 128>}]} {
    %c0 = arith.constant 0 : index
    %c0_0 = arith.constant 0 : index
    %0 = vector.load %arg1[%c0, %c0_0] : memref<16x144xbf16, #tpu.memory_space<vmem>>, vector<16x144xbf16>
    %c0_1 = arith.constant 0 : index
    %c0_2 = arith.constant 0 : index
    %1 = vector.load %arg2[%c0_1, %c0_2] : memref<144x128xbf16, #tpu.memory_space<vmem>>, vector<144x128xbf16>
    %cst = arith.constant dense<0.000000e+00> : vector<16x128xf32>
    %2 = tpu.matmul %0, %1, %cst {dimension_numbers = #tpu.dot_dimension_numbers<[1], [0], [0], [1], [0, 0, 1, 1], [], []>} : vector<16x144xbf16>, vector<144x128xbf16>, vector<16x128xf32> -> vector<16x128xf32>
    %c0_3 = arith.constant 0 : index
    %c0_4 = arith.constant 0 : index
    %3 = vector.load %arg3[%c0_3, %c0_4] : memref<16x1xf32, #tpu.memory_space<vmem>>, vector<16x1xf32>
    %4 = vector.broadcast %3 : vector<16x1xf32> to vector<16x128xf32>
    %5 = arith.addf %2, %4 : vector<16x128xf32>
    %cst_5 = arith.constant 0.000000e+00 : f32
    %6 = vector.broadcast %cst_5 : f32 to vector<16x128xf32>
    %7 = arith.maximumf %5, %6 : vector<16x128xf32>
    %8 = arith.truncf %7 : vector<16x128xf32> to vector<16x128xbf16>
    %c0_6 = arith.constant 0 : index
    %c0_7 = arith.constant 0 : index
    %9 = vector.load %arg4[%c0_6, %c0_7] : memref<16x128xbf16, #tpu.memory_space<vmem>>, vector<16x128xbf16>
    tpu.vector_store %arg4[%c0_6, %c0_7], %8 {strides = array<i32>} : memref<16x128xbf16, #tpu.memory_space<vmem>>, vector<16x128xbf16>,
    return
  }
  func.func @transform_0(%arg0: i32) -> (i32, i32) {
    %c0_i32 = arith.constant 0 : i32
    %c0_i32_0 = arith.constant 0 : i32
    %c0_i32_1 = arith.constant 0 : i32
    return %c0_i32, %c0_i32_0 : i32, i32
  }
  func.func @transform_1(%arg0: i32) -> (i32, i32) {
    %c0_i32 = arith.constant 0 : i32
    %c0_i32_0 = arith.constant 0 : i32
    return %c0_i32, %arg0 : i32, i32
  }
  func.func @transform_2(%arg0: i32) -> (i32, i32) {
    %c0_i32 = arith.constant 0 : i32
    %c0_i32_0 = arith.constant 0 : i32
    %c0_i32_1 = arith.constant 0 : i32
    return %c0_i32, %c0_i32_0 : i32, i32
  }
  func.func @transform_3(%arg0: i32) -> (i32, i32) {
    %c0_i32 = arith.constant 0 : i32
    %c0_i32_0 = arith.constant 0 : i32
    return %c0_i32, %arg0 : i32, i32
  }
}

module attributes {stable_mosaic.version = 11 : i64} {
  func.func @_mm_bias_act_kernel(%arg0: i32, %arg1: memref<64x144xbf16, #tpu.memory_space<vmem>>, %arg2: memref<144x32xbf16, #tpu.memory_space<vmem>>, %arg3: memref<64x1xf32, #tpu.memory_space<vmem>>, %arg4: memref<64x32xbf16, #tpu.memory_space<vmem>>) attributes {dimension_semantics = [#tpu.dimension_semantics<parallel>], iteration_bounds = array<i64: 1>, scalar_prefetch = 0 : i64, scratch_operands = 0 : i64, tpu.core_type = #tpu.core_type<tc>, window_params = [{pipeline_mode = #tpu.pipeline_mode<synchronous>, transform_indices = @transform_0, window_bounds = array<i64: 64, 144>}, {transform_indices = @transform_1, window_bounds = array<i64: 144, 32>}, {pipeline_mode = #tpu.pipeline_mode<synchronous>, transform_indices = @transform_2, window_bounds = array<i64: 64, 1>}, {transform_indices = @transform_3, window_bounds = array<i64: 64, 32>}]} {
    %c0 = arith.constant 0 : index
    %c0_0 = arith.constant 0 : index
    %0 = vector.load %arg1[%c0, %c0_0] : memref<64x144xbf16, #tpu.memory_space<vmem>>, vector<64x144xbf16>
    %c0_1 = arith.constant 0 : index
    %c0_2 = arith.constant 0 : index
    %1 = vector.load %arg2[%c0_1, %c0_2] : memref<144x32xbf16, #tpu.memory_space<vmem>>, vector<144x32xbf16>
    %cst = arith.constant dense<0.000000e+00> : vector<64x32xf32>
    %2 = tpu.matmul %0, %1, %cst {dimension_numbers = #tpu.dot_dimension_numbers<[1], [0], [0], [1], [0, 0, 1, 1], [], []>} : vector<64x144xbf16>, vector<144x32xbf16>, vector<64x32xf32> -> vector<64x32xf32>
    %c0_3 = arith.constant 0 : index
    %c0_4 = arith.constant 0 : index
    %3 = vector.load %arg3[%c0_3, %c0_4] : memref<64x1xf32, #tpu.memory_space<vmem>>, vector<64x1xf32>
    %4 = vector.broadcast %3 : vector<64x1xf32> to vector<64x32xf32>
    %5 = arith.addf %2, %4 : vector<64x32xf32>
    %6 = tpu.iota {dimensions = array<i32: 0>} : vector<64x32xi32>
    %c32_i32 = arith.constant 32 : i32
    %7 = vector.broadcast %c32_i32 : i32 to vector<64x32xi32>
    %8 = arith.cmpi slt, %6, %7 : vector<64x32xi32>
    %cst_5 = arith.constant 0.000000e+00 : f32
    %9 = vector.broadcast %cst_5 : f32 to vector<64x32xf32>
    %10 = arith.maximumf %5, %9 : vector<64x32xf32>
    %11 = arith.select %8, %10, %5 : vector<64x32xi1>, vector<64x32xf32>
    %12 = arith.truncf %11 : vector<64x32xf32> to vector<64x32xbf16>
    %c0_6 = arith.constant 0 : index
    %c0_7 = arith.constant 0 : index
    %13 = vector.load %arg4[%c0_6, %c0_7] : memref<64x32xbf16, #tpu.memory_space<vmem>>, vector<64x32xbf16>
    tpu.vector_store %arg4[%c0_6, %c0_7], %12 {strides = array<i32>} : memref<64x32xbf16, #tpu.memory_space<vmem>>, vector<64x32xbf16>,
    return
  }
  func.func @transform_0(%arg0: i32) -> (i32, i32) {
    %c0_i32 = arith.constant 0 : i32
    %c0_i32_0 = arith.constant 0 : i32
    %c0_i32_1 = arith.constant 0 : i32
    return %c0_i32, %c0_i32_0 : i32, i32
  }
  func.func @transform_1(%arg0: i32) -> (i32, i32) {
    %c0_i32 = arith.constant 0 : i32
    %c0_i32_0 = arith.constant 0 : i32
    return %c0_i32, %arg0 : i32, i32
  }
  func.func @transform_2(%arg0: i32) -> (i32, i32) {
    %c0_i32 = arith.constant 0 : i32
    %c0_i32_0 = arith.constant 0 : i32
    %c0_i32_1 = arith.constant 0 : i32
    return %c0_i32, %c0_i32_0 : i32, i32
  }
  func.func @transform_3(%arg0: i32) -> (i32, i32) {
    %c0_i32 = arith.constant 0 : i32
    %c0_i32_0 = arith.constant 0 : i32
    return %c0_i32, %arg0 : i32, i32
  }
}

module attributes {stable_mosaic.version = 11 : i64} {
  func.func @_mm_bias_act_kernel(%arg0: i32, %arg1: memref<32x288xbf16, #tpu.memory_space<vmem>>, %arg2: memref<288x32xbf16, #tpu.memory_space<vmem>>, %arg3: memref<32x1xf32, #tpu.memory_space<vmem>>, %arg4: memref<32x32xbf16, #tpu.memory_space<vmem>>) attributes {dimension_semantics = [#tpu.dimension_semantics<parallel>], iteration_bounds = array<i64: 1>, scalar_prefetch = 0 : i64, scratch_operands = 0 : i64, tpu.core_type = #tpu.core_type<tc>, window_params = [{pipeline_mode = #tpu.pipeline_mode<synchronous>, transform_indices = @transform_0, window_bounds = array<i64: 32, 288>}, {transform_indices = @transform_1, window_bounds = array<i64: 288, 32>}, {pipeline_mode = #tpu.pipeline_mode<synchronous>, transform_indices = @transform_2, window_bounds = array<i64: 32, 1>}, {transform_indices = @transform_3, window_bounds = array<i64: 32, 32>}]} {
    %c0 = arith.constant 0 : index
    %c0_0 = arith.constant 0 : index
    %0 = vector.load %arg1[%c0, %c0_0] : memref<32x288xbf16, #tpu.memory_space<vmem>>, vector<32x288xbf16>
    %c0_1 = arith.constant 0 : index
    %c0_2 = arith.constant 0 : index
    %1 = vector.load %arg2[%c0_1, %c0_2] : memref<288x32xbf16, #tpu.memory_space<vmem>>, vector<288x32xbf16>
    %cst = arith.constant dense<0.000000e+00> : vector<32x32xf32>
    %2 = tpu.matmul %0, %1, %cst {dimension_numbers = #tpu.dot_dimension_numbers<[1], [0], [0], [1], [0, 0, 1, 1], [], []>} : vector<32x288xbf16>, vector<288x32xbf16>, vector<32x32xf32> -> vector<32x32xf32>
    %c0_3 = arith.constant 0 : index
    %c0_4 = arith.constant 0 : index
    %3 = vector.load %arg3[%c0_3, %c0_4] : memref<32x1xf32, #tpu.memory_space<vmem>>, vector<32x1xf32>
    %4 = vector.broadcast %3 : vector<32x1xf32> to vector<32x32xf32>
    %5 = arith.addf %2, %4 : vector<32x32xf32>
    %cst_5 = arith.constant 0.000000e+00 : f32
    %6 = vector.broadcast %cst_5 : f32 to vector<32x32xf32>
    %7 = arith.maximumf %5, %6 : vector<32x32xf32>
    %8 = arith.truncf %7 : vector<32x32xf32> to vector<32x32xbf16>
    %c0_6 = arith.constant 0 : index
    %c0_7 = arith.constant 0 : index
    %9 = vector.load %arg4[%c0_6, %c0_7] : memref<32x32xbf16, #tpu.memory_space<vmem>>, vector<32x32xbf16>
    tpu.vector_store %arg4[%c0_6, %c0_7], %8 {strides = array<i32>} : memref<32x32xbf16, #tpu.memory_space<vmem>>, vector<32x32xbf16>,
    return
  }
  func.func @transform_0(%arg0: i32) -> (i32, i32) {
    %c0_i32 = arith.constant 0 : i32
    %c0_i32_0 = arith.constant 0 : i32
    %c0_i32_1 = arith.constant 0 : i32
    return %c0_i32, %c0_i32_0 : i32, i32
  }
  func.func @transform_1(%arg0: i32) -> (i32, i32) {
    %c0_i32 = arith.constant 0 : i32
    %c0_i32_0 = arith.constant 0 : i32
    return %c0_i32, %arg0 : i32, i32
  }
  func.func @transform_2(%arg0: i32) -> (i32, i32) {
    %c0_i32 = arith.constant 0 : i32
    %c0_i32_0 = arith.constant 0 : i32
    %c0_i32_1 = arith.constant 0 : i32
    return %c0_i32, %c0_i32_0 : i32, i32
  }
  func.func @transform_3(%arg0: i32) -> (i32, i32) {
    %c0_i32 = arith.constant 0 : i32
    %c0_i32_0 = arith.constant 0 : i32
    return %c0_i32, %arg0 : i32, i32
  }
}

module attributes {stable_mosaic.version = 11 : i64} {
  func.func @_mm_bias_act_kernel(%arg0: i32, %arg1: memref<32x288xbf16, #tpu.memory_space<vmem>>, %arg2: memref<288x32xbf16, #tpu.memory_space<vmem>>, %arg3: memref<32x1xf32, #tpu.memory_space<vmem>>, %arg4: memref<32x32xbf16, #tpu.memory_space<vmem>>, %arg5: memref<32x32xbf16, #tpu.memory_space<vmem>>) attributes {dimension_semantics = [#tpu.dimension_semantics<parallel>], iteration_bounds = array<i64: 1>, scalar_prefetch = 0 : i64, scratch_operands = 0 : i64, tpu.core_type = #tpu.core_type<tc>, window_params = [{pipeline_mode = #tpu.pipeline_mode<synchronous>, transform_indices = @transform_0, window_bounds = array<i64: 32, 288>}, {transform_indices = @transform_1, window_bounds = array<i64: 288, 32>}, {pipeline_mode = #tpu.pipeline_mode<synchronous>, transform_indices = @transform_2, window_bounds = array<i64: 32, 1>}, {transform_indices = @transform_3, window_bounds = array<i64: 32, 32>}, {transform_indices = @transform_4, window_bounds = array<i64: 32, 32>}]} {
    %c0 = arith.constant 0 : index
    %c0_0 = arith.constant 0 : index
    %0 = vector.load %arg1[%c0, %c0_0] : memref<32x288xbf16, #tpu.memory_space<vmem>>, vector<32x288xbf16>
    %c0_1 = arith.constant 0 : index
    %c0_2 = arith.constant 0 : index
    %1 = vector.load %arg2[%c0_1, %c0_2] : memref<288x32xbf16, #tpu.memory_space<vmem>>, vector<288x32xbf16>
    %cst = arith.constant dense<0.000000e+00> : vector<32x32xf32>
    %2 = tpu.matmul %0, %1, %cst {dimension_numbers = #tpu.dot_dimension_numbers<[1], [0], [0], [1], [0, 0, 1, 1], [], []>} : vector<32x288xbf16>, vector<288x32xbf16>, vector<32x32xf32> -> vector<32x32xf32>
    %c0_3 = arith.constant 0 : index
    %c0_4 = arith.constant 0 : index
    %3 = vector.load %arg3[%c0_3, %c0_4] : memref<32x1xf32, #tpu.memory_space<vmem>>, vector<32x1xf32>
    %4 = vector.broadcast %3 : vector<32x1xf32> to vector<32x32xf32>
    %5 = arith.addf %2, %4 : vector<32x32xf32>
    %c0_5 = arith.constant 0 : index
    %c0_6 = arith.constant 0 : index
    %6 = vector.load %arg4[%c0_5, %c0_6] : memref<32x32xbf16, #tpu.memory_space<vmem>>, vector<32x32xbf16>
    %7 = arith.extf %6 : vector<32x32xbf16> to vector<32x32xf32>
    %8 = arith.addf %5, %7 : vector<32x32xf32>
    %cst_7 = arith.constant 0.000000e+00 : f32
    %9 = vector.broadcast %cst_7 : f32 to vector<32x32xf32>
    %10 = arith.maximumf %8, %9 : vector<32x32xf32>
    %11 = arith.truncf %10 : vector<32x32xf32> to vector<32x32xbf16>
    %c0_8 = arith.constant 0 : index
    %c0_9 = arith.constant 0 : index
    %12 = vector.load %arg5[%c0_8, %c0_9] : memref<32x32xbf16, #tpu.memory_space<vmem>>, vector<32x32xbf16>
    tpu.vector_store %arg5[%c0_8, %c0_9], %11 {strides = array<i32>} : memref<32x32xbf16, #tpu.memory_space<vmem>>, vector<32x32xbf16>,
    return
  }
  func.func @transform_0(%arg0: i32) -> (i32, i32) {
    %c0_i32 = arith.constant 0 : i32
    %c0_i32_0 = arith.constant 0 : i32
    %c0_i32_1 = arith.constant 0 : i32
    return %c0_i32, %c0_i32_0 : i32, i32
  }
  func.func @transform_1(%arg0: i32) -> (i32, i32) {
    %c0_i32 = arith.constant 0 : i32
    %c0_i32_0 = arith.constant 0 : i32
    return %c0_i32, %arg0 : i32, i32
  }
  func.func @transform_2(%arg0: i32) -> (i32, i32) {
    %c0_i32 = arith.constant 0 : i32
    %c0_i32_0 = arith.constant 0 : i32
    %c0_i32_1 = arith.constant 0 : i32
    return %c0_i32, %c0_i32_0 : i32, i32
  }
  func.func @transform_3(%arg0: i32) -> (i32, i32) {
    %c0_i32 = arith.constant 0 : i32
    %c0_i32_0 = arith.constant 0 : i32
    return %c0_i32, %arg0 : i32, i32
  }
  func.func @transform_4(%arg0: i32) -> (i32, i32) {
    %c0_i32 = arith.constant 0 : i32
    %c0_i32_0 = arith.constant 0 : i32
    return %c0_i32, %arg0 : i32, i32
  }
}

module attributes {stable_mosaic.version = 11 : i64} {
  func.func @_mm_bias_act_kernel(%arg0: i32, %arg1: memref<128x288xbf16, #tpu.memory_space<vmem>>, %arg2: memref<288x8xbf16, #tpu.memory_space<vmem>>, %arg3: memref<128x1xf32, #tpu.memory_space<vmem>>, %arg4: memref<128x8xbf16, #tpu.memory_space<vmem>>) attributes {dimension_semantics = [#tpu.dimension_semantics<parallel>], iteration_bounds = array<i64: 1>, scalar_prefetch = 0 : i64, scratch_operands = 0 : i64, tpu.core_type = #tpu.core_type<tc>, window_params = [{pipeline_mode = #tpu.pipeline_mode<synchronous>, transform_indices = @transform_0, window_bounds = array<i64: 128, 288>}, {transform_indices = @transform_1, window_bounds = array<i64: 288, 8>}, {pipeline_mode = #tpu.pipeline_mode<synchronous>, transform_indices = @transform_2, window_bounds = array<i64: 128, 1>}, {transform_indices = @transform_3, window_bounds = array<i64: 128, 8>}]} {
    %c0 = arith.constant 0 : index
    %c0_0 = arith.constant 0 : index
    %0 = vector.load %arg1[%c0, %c0_0] : memref<128x288xbf16, #tpu.memory_space<vmem>>, vector<128x288xbf16>
    %c0_1 = arith.constant 0 : index
    %c0_2 = arith.constant 0 : index
    %1 = vector.load %arg2[%c0_1, %c0_2] : memref<288x8xbf16, #tpu.memory_space<vmem>>, vector<288x8xbf16>
    %cst = arith.constant dense<0.000000e+00> : vector<128x8xf32>
    %2 = tpu.matmul %0, %1, %cst {dimension_numbers = #tpu.dot_dimension_numbers<[1], [0], [0], [1], [0, 0, 1, 1], [], []>} : vector<128x288xbf16>, vector<288x8xbf16>, vector<128x8xf32> -> vector<128x8xf32>
    %c0_3 = arith.constant 0 : index
    %c0_4 = arith.constant 0 : index
    %3 = vector.load %arg3[%c0_3, %c0_4] : memref<128x1xf32, #tpu.memory_space<vmem>>, vector<128x1xf32>
    %4 = vector.broadcast %3 : vector<128x1xf32> to vector<128x8xf32>
    %5 = arith.addf %2, %4 : vector<128x8xf32>
    %6 = tpu.iota {dimensions = array<i32: 0>} : vector<128x8xi32>
    %c64_i32 = arith.constant 64 : i32
    %7 = vector.broadcast %c64_i32 : i32 to vector<128x8xi32>
    %8 = arith.cmpi slt, %6, %7 : vector<128x8xi32>
    %cst_5 = arith.constant 0.000000e+00 : f32
    %9 = vector.broadcast %cst_5 : f32 to vector<128x8xf32>
    %10 = arith.maximumf %5, %9 : vector<128x8xf32>
    %11 = arith.select %8, %10, %5 : vector<128x8xi1>, vector<128x8xf32>
    %12 = arith.truncf %11 : vector<128x8xf32> to vector<128x8xbf16>
    %c0_6 = arith.constant 0 : index
    %c0_7 = arith.constant 0 : index
    %13 = vector.load %arg4[%c0_6, %c0_7] : memref<128x8xbf16, #tpu.memory_space<vmem>>, vector<128x8xbf16>
    tpu.vector_store %arg4[%c0_6, %c0_7], %12 {strides = array<i32>} : memref<128x8xbf16, #tpu.memory_space<vmem>>, vector<128x8xbf16>,
    return
  }
  func.func @transform_0(%arg0: i32) -> (i32, i32) {
    %c0_i32 = arith.constant 0 : i32
    %c0_i32_0 = arith.constant 0 : i32
    %c0_i32_1 = arith.constant 0 : i32
    return %c0_i32, %c0_i32_0 : i32, i32
  }
  func.func @transform_1(%arg0: i32) -> (i32, i32) {
    %c0_i32 = arith.constant 0 : i32
    %c0_i32_0 = arith.constant 0 : i32
    return %c0_i32, %arg0 : i32, i32
  }
  func.func @transform_2(%arg0: i32) -> (i32, i32) {
    %c0_i32 = arith.constant 0 : i32
    %c0_i32_0 = arith.constant 0 : i32
    %c0_i32_1 = arith.constant 0 : i32
    return %c0_i32, %c0_i32_0 : i32, i32
  }
  func.func @transform_3(%arg0: i32) -> (i32, i32) {
    %c0_i32 = arith.constant 0 : i32
    %c0_i32_0 = arith.constant 0 : i32
    return %c0_i32, %arg0 : i32, i32
  }
}

module attributes {stable_mosaic.version = 11 : i64} {
  func.func @_mm_bias_act_kernel(%arg0: i32, %arg1: memref<64x576xbf16, #tpu.memory_space<vmem>>, %arg2: memref<576x8xbf16, #tpu.memory_space<vmem>>, %arg3: memref<64x1xf32, #tpu.memory_space<vmem>>, %arg4: memref<64x8xbf16, #tpu.memory_space<vmem>>, %arg5: memref<64x8xbf16, #tpu.memory_space<vmem>>) attributes {dimension_semantics = [#tpu.dimension_semantics<parallel>], iteration_bounds = array<i64: 1>, scalar_prefetch = 0 : i64, scratch_operands = 0 : i64, tpu.core_type = #tpu.core_type<tc>, window_params = [{pipeline_mode = #tpu.pipeline_mode<synchronous>, transform_indices = @transform_0, window_bounds = array<i64: 64, 576>}, {transform_indices = @transform_1, window_bounds = array<i64: 576, 8>}, {pipeline_mode = #tpu.pipeline_mode<synchronous>, transform_indices = @transform_2, window_bounds = array<i64: 64, 1>}, {transform_indices = @transform_3, window_bounds = array<i64: 64, 8>}, {transform_indices = @transform_4, window_bounds = array<i64: 64, 8>}]} {
    %c0 = arith.constant 0 : index
    %c0_0 = arith.constant 0 : index
    %0 = vector.load %arg1[%c0, %c0_0] : memref<64x576xbf16, #tpu.memory_space<vmem>>, vector<64x576xbf16>
    %c0_1 = arith.constant 0 : index
    %c0_2 = arith.constant 0 : index
    %1 = vector.load %arg2[%c0_1, %c0_2] : memref<576x8xbf16, #tpu.memory_space<vmem>>, vector<576x8xbf16>
    %cst = arith.constant dense<0.000000e+00> : vector<64x8xf32>
    %2 = tpu.matmul %0, %1, %cst {dimension_numbers = #tpu.dot_dimension_numbers<[1], [0], [0], [1], [0, 0, 1, 1], [], []>} : vector<64x576xbf16>, vector<576x8xbf16>, vector<64x8xf32> -> vector<64x8xf32>
    %c0_3 = arith.constant 0 : index
    %c0_4 = arith.constant 0 : index
    %3 = vector.load %arg3[%c0_3, %c0_4] : memref<64x1xf32, #tpu.memory_space<vmem>>, vector<64x1xf32>
    %4 = vector.broadcast %3 : vector<64x1xf32> to vector<64x8xf32>
    %5 = arith.addf %2, %4 : vector<64x8xf32>
    %c0_5 = arith.constant 0 : index
    %c0_6 = arith.constant 0 : index
    %6 = vector.load %arg4[%c0_5, %c0_6] : memref<64x8xbf16, #tpu.memory_space<vmem>>, vector<64x8xbf16>
    %7 = arith.extf %6 : vector<64x8xbf16> to vector<64x8xf32>
    %8 = arith.addf %5, %7 : vector<64x8xf32>
    %cst_7 = arith.constant 0.000000e+00 : f32
    %9 = vector.broadcast %cst_7 : f32 to vector<64x8xf32>
    %10 = arith.maximumf %8, %9 : vector<64x8xf32>
    %11 = arith.truncf %10 : vector<64x8xf32> to vector<64x8xbf16>
    %c0_8 = arith.constant 0 : index
    %c0_9 = arith.constant 0 : index
    %12 = vector.load %arg5[%c0_8, %c0_9] : memref<64x8xbf16, #tpu.memory_space<vmem>>, vector<64x8xbf16>
    tpu.vector_store %arg5[%c0_8, %c0_9], %11 {strides = array<i32>} : memref<64x8xbf16, #tpu.memory_space<vmem>>, vector<64x8xbf16>,
    return
  }
  func.func @transform_0(%arg0: i32) -> (i32, i32) {
    %c0_i32 = arith.constant 0 : i32
    %c0_i32_0 = arith.constant 0 : i32
    %c0_i32_1 = arith.constant 0 : i32
    return %c0_i32, %c0_i32_0 : i32, i32
  }
  func.func @transform_1(%arg0: i32) -> (i32, i32) {
    %c0_i32 = arith.constant 0 : i32
    %c0_i32_0 = arith.constant 0 : i32
    return %c0_i32, %arg0 : i32, i32
  }
  func.func @transform_2(%arg0: i32) -> (i32, i32) {
    %c0_i32 = arith.constant 0 : i32
    %c0_i32_0 = arith.constant 0 : i32
    %c0_i32_1 = arith.constant 0 : i32
    return %c0_i32, %c0_i32_0 : i32, i32
  }
  func.func @transform_3(%arg0: i32) -> (i32, i32) {
    %c0_i32 = arith.constant 0 : i32
    %c0_i32_0 = arith.constant 0 : i32
    return %c0_i32, %arg0 : i32, i32
  }
  func.func @transform_4(%arg0: i32) -> (i32, i32) {
    %c0_i32 = arith.constant 0 : i32
    %c0_i32_0 = arith.constant 0 : i32
    return %c0_i32, %arg0 : i32, i32
  }
}

module attributes {stable_mosaic.version = 11 : i64} {
  func.func @_mm_bias_act_kernel(%arg0: i32, %arg1: memref<64x576xbf16, #tpu.memory_space<vmem>>, %arg2: memref<576x8xbf16, #tpu.memory_space<vmem>>, %arg3: memref<64x1xf32, #tpu.memory_space<vmem>>, %arg4: memref<64x8xbf16, #tpu.memory_space<vmem>>) attributes {dimension_semantics = [#tpu.dimension_semantics<parallel>], iteration_bounds = array<i64: 1>, scalar_prefetch = 0 : i64, scratch_operands = 0 : i64, tpu.core_type = #tpu.core_type<tc>, window_params = [{pipeline_mode = #tpu.pipeline_mode<synchronous>, transform_indices = @transform_0, window_bounds = array<i64: 64, 576>}, {transform_indices = @transform_1, window_bounds = array<i64: 576, 8>}, {pipeline_mode = #tpu.pipeline_mode<synchronous>, transform_indices = @transform_2, window_bounds = array<i64: 64, 1>}, {transform_indices = @transform_3, window_bounds = array<i64: 64, 8>}]} {
    %c0 = arith.constant 0 : index
    %c0_0 = arith.constant 0 : index
    %0 = vector.load %arg1[%c0, %c0_0] : memref<64x576xbf16, #tpu.memory_space<vmem>>, vector<64x576xbf16>
    %c0_1 = arith.constant 0 : index
    %c0_2 = arith.constant 0 : index
    %1 = vector.load %arg2[%c0_1, %c0_2] : memref<576x8xbf16, #tpu.memory_space<vmem>>, vector<576x8xbf16>
    %cst = arith.constant dense<0.000000e+00> : vector<64x8xf32>
    %2 = tpu.matmul %0, %1, %cst {dimension_numbers = #tpu.dot_dimension_numbers<[1], [0], [0], [1], [0, 0, 1, 1], [], []>} : vector<64x576xbf16>, vector<576x8xbf16>, vector<64x8xf32> -> vector<64x8xf32>
    %c0_3 = arith.constant 0 : index
    %c0_4 = arith.constant 0 : index
    %3 = vector.load %arg3[%c0_3, %c0_4] : memref<64x1xf32, #tpu.memory_space<vmem>>, vector<64x1xf32>
    %4 = vector.broadcast %3 : vector<64x1xf32> to vector<64x8xf32>
    %5 = arith.addf %2, %4 : vector<64x8xf32>
    %cst_5 = arith.constant 0.000000e+00 : f32
    %6 = vector.broadcast %cst_5 : f32 to vector<64x8xf32>
    %7 = arith.maximumf %5, %6 : vector<64x8xf32>
    %8 = arith.truncf %7 : vector<64x8xf32> to vector<64x8xbf16>
    %c0_6 = arith.constant 0 : index
    %c0_7 = arith.constant 0 : index
    %9 = vector.load %arg4[%c0_6, %c0_7] : memref<64x8xbf16, #tpu.memory_space<vmem>>, vector<64x8xbf16>
    tpu.vector_store %arg4[%c0_6, %c0_7], %8 {strides = array<i32>} : memref<64x8xbf16, #tpu.memory_space<vmem>>, vector<64x8xbf16>,
    return
  }
  func.func @transform_0(%arg0: i32) -> (i32, i32) {
    %c0_i32 = arith.constant 0 : i32
    %c0_i32_0 = arith.constant 0 : i32
    %c0_i32_1 = arith.constant 0 : i32
    return %c0_i32, %c0_i32_0 : i32, i32
  }
  func.func @transform_1(%arg0: i32) -> (i32, i32) {
    %c0_i32 = arith.constant 0 : i32
    %c0_i32_0 = arith.constant 0 : i32
    return %c0_i32, %arg0 : i32, i32
  }
  func.func @transform_2(%arg0: i32) -> (i32, i32) {
    %c0_i32 = arith.constant 0 : i32
    %c0_i32_0 = arith.constant 0 : i32
    %c0_i32_1 = arith.constant 0 : i32
    return %c0_i32, %c0_i32_0 : i32, i32
  }
  func.func @transform_3(%arg0: i32) -> (i32, i32) {
    %c0_i32 = arith.constant 0 : i32
    %c0_i32_0 = arith.constant 0 : i32
    return %c0_i32, %arg0 : i32, i32
  }
}

</mosaic_0001>

<bundles_post_ra>
// kernel: _lambda_.17
= control target key start
LH: loop header
LB: loop body
LE: loop exit
PB: predicated region body
PF: predicated region fallthrough
CT: control target
= control target key end

     0   :  { %v1602_v3 = vmov 0   ;;  %vm988_vm0 = vcmask 261120   ;;  %s2185_s1 = inlined_call_operand.vmem [shape: bf16[160,2048], index: 1, kind: input, shape index: {}]   ;;  %s2186_s0 = inlined_call_operand.vmem [shape: bf16[8,160], index: 0, kind: input, shape index: {}]   ;;  %s2187_s2 = inlined_call_operand.vmem [shape: f32[8,1], index: 2, kind: input, shape index: {}]   ;;  %s2188_s3 = inlined_call_operand.vmem [shape: bf16[8,2048], index: 3, kind: output, shape index: {}]  }
   0x1   :  { %v16_v0 = vld [vmem:[%s2185_s1] sm:$0xff]  ;;  %v17_v2 = vld [vmem:[%s2185_s1 + $0x8] sm:$0xff]  ;;  %1599 = vset.pattern.permute.xlu0 %v1602_v3 }
   0x2   :  { %v24_v1 = vld [vmem:[%s2185_s1 + $0x40] sm:$0xff]  ;;  %v25_v5 = vld [vmem:[%s2185_s1 + $0x48] sm:$0xff] }
   0x3   :  { %v1415_v4 = vcombine.high %v16_v0, %v24_v1  ;;  %v1414_v6 = vcombine.low %v16_v0, %v24_v1  ;;  %v32_v7 = vld [vmem:[%s2185_s1 + $0x80] sm:$0xff]  ;;  %v1417_v9 = vcombine.high %v17_v2, %v25_v5  ;;  %v1416_v10 = vcombine.low %v17_v2, %v25_v5  ;;  %v33_v12 = vld [vmem:[%s2185_s1 + $0x88] sm:$0xff] }
   0x4   :  { %v40_v8 = vld [vmem:[%s2185_s1 + $0xc0] sm:$0xff]  ;;  %v41_v13 = vld [vmem:[%s2185_s1 + $0xc8] sm:$0xff] }
   0x5   :  { %v1431_v11 = vcombine.high %v32_v7, %v40_v8  ;;  %v48_v14 = vld [vmem:[%s2185_s1 + $0x100] sm:$0xff]  ;;  %992 = vmatprep.subr.bf16.mxu0 %v1415_v4  ;;  %v1433_v15 = vcombine.high %v33_v12, %v41_v13  ;;  %v49_v17 = vld [vmem:[%s2185_s1 + $0x108] sm:$0xff]  ;;  %1033 = vmatprep.subr.bf16.mxu1 %v1417_v9  ;;  %v1430_v19 = vcombine.low %v32_v7, %v40_v8 }
   0x6   :  { %v56_v16 = vld [vmem:[%s2185_s1 + $0x140] sm:$0xff]  ;;  %v57_v18 = vld [vmem:[%s2185_s1 + $0x148] sm:$0xff]  ;;  %993 = vmatpush1.bf16.msra.mxu0 %v1414_v6  ;;  %1034 = vmatpush1.bf16.msra.mxu1 %v1416_v10  ;;  %v1432_v20 = vcombine.low %v33_v12, %v41_v13 }
   0x7   :  { %994 = vmatprep.subr.bf16.mxu0 %v1431_v11  ;;  %v1447_v21 = vcombine.high %v48_v14, %v56_v16  ;;  %1035 = vmatprep.subr.bf16.mxu1 %v1433_v15  ;;  %v1449_v22 = vcombine.high %v49_v17, %v57_v18  ;;  %v64_v23 = vld [vmem:[%s2185_s1 + $0x180] sm:$0xff]  ;;  %v65_v25 = vld [vmem:[%s2185_s1 + $0x188] sm:$0xff]  ;;  %v1446_v27 = vcombine.low %v48_v14, %v56_v16 }
   0x8   :  { %v72_v24 = vld [vmem:[%s2185_s1 + $0x1c0] sm:$0xff]  ;;  %v73_v26 = vld [vmem:[%s2185_s1 + $0x1c8] sm:$0xff]  ;;  %v1448_v28 = vcombine.low %v49_v17, %v57_v18  ;;  %v18_v17 = vld [vmem:[%s2185_s1 + $0x10] sm:$0xff] }
   0x9   :  { %v1463_v29 = vcombine.high %v64_v23, %v72_v24  ;;  %v1465_v30 = vcombine.high %v65_v25, %v73_v26  ;;  %v80_v31 = vld [vmem:[%s2185_s1 + $0x200] sm:$0xff]  ;;  %v81_v33 = vld [vmem:[%s2185_s1 + $0x208] sm:$0xff]  ;;  %v1462_v35 = vcombine.low %v64_v23, %v72_v24  ;;  %v1464_v36 = vcombine.low %v65_v25, %v73_v26  ;;  %v26_v18 = vld [vmem:[%s2185_s1 + $0x50] sm:$0xff] }
   0xa   :  { %995 = vmatpush1.bf16.msra.mxu0 %v1430_v19  ;;  %1036 = vmatpush1.bf16.msra.mxu1 %v1432_v20  ;;  %v88_v32 = vld [vmem:[%s2185_s1 + $0x240] sm:$0xff]  ;;  %v89_v34 = vld [vmem:[%s2185_s1 + $0x248] sm:$0xff]  ;;  %v19_v19 = vld [vmem:[%s2185_s1 + $0x18] sm:$0xff]  ;;  %v1419_v23 = vcombine.high %v18_v17, %v26_v18 }
   0xb   :  { %996 = vmatprep.subr.bf16.mxu0 %v1447_v21  ;;  %1037 = vmatprep.subr.bf16.mxu1 %v1449_v22  ;;  %v1479_v37 = vcombine.high %v80_v31, %v88_v32  ;;  %v1686_v38 = vld [vmem:[%s2186_s0] sm:$0xff]  ;;  %v1481_v39 = vcombine.high %v81_v33, %v89_v34  ;;  %v97_v43 = vld [vmem:[%s2185_s1 + $0x288] sm:$0xff]  ;;  %v1478_v45 = vcombine.low %v80_v31, %v88_v32  ;;  %v27_v20 = vld [vmem:[%s2185_s1 + $0x58] sm:$0xff] }
   0xc   :  { %v96_v40 = vld [vmem:[%s2185_s1 + $0x280] sm:$0xff]  ;;  %v1696_v42 = vcombine.high %v1686_v38, %v1686_v38  ;;  %v105_v44 = vld [vmem:[%s2185_s1 + $0x2c8] sm:$0xff]  ;;  %v1480_v46 = vcombine.low %v81_v33, %v89_v34  ;;  %v1421_v24 = vcombine.high %v19_v19, %v27_v20  ;;  %v34_v25 = vld [vmem:[%s2185_s1 + $0x90] sm:$0xff]  ;;  %v1420_v31 = vcombine.low %v19_v19, %v27_v20 }
   0xd   :  { %v104_v41 = vld [vmem:[%s2185_s1 + $0x2c0] sm:$0xff]  ;;  %v1497_v48 = vcombine.high %v97_v43, %v105_v44  ;;  %v113_v51 = vld [vmem:[%s2185_s1 + $0x308] sm:$0xff]  ;;  %v1496_v54 = vcombine.low %v97_v43, %v105_v44  ;;  %v42_v26 = vld [vmem:[%s2185_s1 + $0xd0] sm:$0xff] }
   0xe   :  { %997 = vmatpush1.bf16.msra.mxu0 %v1446_v27  ;;  %1038 = vmatpush1.bf16.msra.mxu1 %v1448_v28  ;;  %v1495_v47 = vcombine.high %v96_v40, %v104_v41  ;;  %v112_v49 = vld [vmem:[%s2185_s1 + $0x300] sm:$0xff]  ;;  %v121_v52 = vld [vmem:[%s2185_s1 + $0x348] sm:$0xff]  ;;  %v1494_v53 = vcombine.low %v96_v40, %v104_v41  ;;  %v1776_v27 = vcombine.low %v1686_v38, %v1686_v38  ;;  %v35_v28 = vld [vmem:[%s2185_s1 + $0x98] sm:$0xff] }
   0xf   :  { %998 = vmatprep.subr.bf16.mxu0 %v1463_v29  ;;  %1039 = vmatprep.subr.bf16.mxu1 %v1465_v30  ;;  %v120_v50 = vld [vmem:[%s2185_s1 + $0x340] sm:$0xff]  ;;  %v1513_v56 = vcombine.high %v113_v51, %v121_v52  ;;  %v129_v59 = vld [vmem:[%s2185_s1 + $0x388] sm:$0xff]  ;;  %v1512_v62 = vcombine.low %v113_v51, %v121_v52  ;;  %v43_v29 = vld [vmem:[%s2185_s1 + $0xd8] sm:$0xff]  ;;  %v1418_v30 = vcombine.low %v18_v17, %v26_v18 }
  0x10   :  { %1574 = vmatprep.mubr.msk.bf16.mxu0 %vm988_vm0, %v1696_v42  ;;  %1575 = vmatprep.mubr.msk.bf16.mxu1 %vm988_vm0, %v1696_v42  ;;  %v1511_v55 = vcombine.high %v112_v49, %v120_v50  ;;  %v128_v57 = vld [vmem:[%s2185_s1 + $0x380] sm:$0xff]  ;;  %v137_v60 = vld [vmem:[%s2185_s1 + $0x3c8] sm:$0xff]  ;;  %v1510_v61 = vcombine.low %v112_v49, %v120_v50  ;;  %v1435_v32 = vcombine.high %v34_v25, %v42_v26  ;;  %v50_v34 = vld [vmem:[%s2185_s1 + $0x110] sm:$0xff] }
  0x11   :  { %v136_v58 = vld [vmem:[%s2185_s1 + $0x3c0] sm:$0xff]  ;;  %v1529_v0 = vcombine.high %v129_v59, %v137_v60  ;;  %v145_v3 = vld [vmem:[%s2185_s1 + $0x408] sm:$0xff]  ;;  %v1528_v6 = vcombine.low %v129_v59, %v137_v60  ;;  %v1437_v33 = vcombine.high %v35_v28, %v43_v29  ;;  %v1434_v38 = vcombine.low %v34_v25, %v42_v26  ;;  %v66_v44 = vld [vmem:[%s2185_s1 + $0x190] sm:$0xff] }
  0x12   :  { %999 = vmatpush1.bf16.msra.mxu0 %v1462_v35  ;;  %1040 = vmatpush1.bf16.msra.mxu1 %v1464_v36  ;;  %v1527_v63 = vcombine.high %v128_v57, %v136_v58  ;;  %v144_v1 = vld [vmem:[%s2185_s1 + $0x400] sm:$0xff]  ;;  %v153_v4 = vld [vmem:[%s2185_s1 + $0x448] sm:$0xff]  ;;  %v1526_v5 = vcombine.low %v128_v57, %v136_v58  ;;  %v58_v35 = vld [vmem:[%s2185_s1 + $0x150] sm:$0xff]  ;;  %v1436_v40 = vcombine.low %v35_v28, %v43_v29 }
  0x13   :  { %1000 = vmatprep.subr.bf16.mxu0 %v1479_v37  ;;  %1041 = vmatprep.subr.bf16.mxu1 %v1481_v39  ;;  %v152_v2 = vld [vmem:[%s2185_s1 + $0x440] sm:$0xff]  ;;  %v1545_v8 = vcombine.high %v145_v3, %v153_v4  ;;  %v161_v11 = vld [vmem:[%s2185_s1 + $0x488] sm:$0xff]  ;;  %v1544_v14 = vcombine.low %v145_v3, %v153_v4  ;;  %v51_v36 = vld [vmem:[%s2185_s1 + $0x118] sm:$0xff]  ;;  %v1451_v41 = vcombine.high %v50_v34, %v58_v35 }
  0x14   :  { %v1543_v7 = vcombine.high %v144_v1, %v152_v2  ;;  %v160_v9 = vld [vmem:[%s2185_s1 + $0x480] sm:$0xff]  ;;  %v169_v12 = vld [vmem:[%s2185_s1 + $0x4c8] sm:$0xff]  ;;  %v1542_v13 = vcombine.low %v144_v1, %v152_v2  ;;  %v59_v37 = vld [vmem:[%s2185_s1 + $0x158] sm:$0xff] }
  0x15   :  { %v168_v10 = vld [vmem:[%s2185_s1 + $0x4c0] sm:$0xff]  ;;  %v1561_v16 = vcombine.high %v161_v11, %v169_v12  ;;  %v1560_v22 = vcombine.low %v161_v11, %v169_v12  ;;  %v1453_v43 = vcombine.high %v51_v36, %v59_v37  ;;  %v1452_v49 = vcombine.low %v51_v36, %v59_v37  ;;  %v82_v52 = vld [vmem:[%s2185_s1 + $0x210] sm:$0xff] }
  0x16   :  { %1001 = vmatpush1.bf16.msra.mxu0 %v1478_v45  ;;  %1042 = vmatpush1.bf16.msra.mxu1 %v1480_v46  ;;  %v1559_v15 = vcombine.high %v160_v9, %v168_v10  ;;  %v1558_v21 = vcombine.low %v160_v9, %v168_v10  ;;  %v176_v39 = vld [vmem:[%s2187_s2] sm:$0xff]  ;;  %v74_v45 = vld [vmem:[%s2185_s1 + $0x1d0] sm:$0xff]  ;;  %v67_v46 = vld [vmem:[%s2185_s1 + $0x198] sm:$0xff] }
  0x17   :  { %1002 = vmatprep.subr.bf16.mxu0 %v1495_v47  ;;  %1043 = vmatprep.subr.bf16.mxu1 %v1497_v48  ;;  %v75_v47 = vld [vmem:[%s2185_s1 + $0x1d8] sm:$0xff]  ;;  %v1450_v48 = vcombine.low %v50_v34, %v58_v35  ;;  %v1467_v50 = vcombine.high %v66_v44, %v74_v45  ;;  %v98_v60 = vld [vmem:[%s2185_s1 + $0x290] sm:$0xff]  ;;  %v20_v37 = vld [vmem:[%s2185_s1 + $0x20] sm:$0xff] }
  0x18   :  { %179 = vperm.xlu0 %1599, %v176_v39   ;;  %v1469_v51 = vcombine.high %v67_v46, %v75_v47  ;;  %v1468_v57 = vcombine.low %v67_v46, %v75_v47  ;;  %v114_v4 = vld [vmem:[%s2185_s1 + $0x310] sm:$0xff]  ;;  %v21_v39 = vld [vmem:[%s2185_s1 + $0x28] sm:$0xff]  ;;  %v36_v46 = vld [vmem:[%s2185_s1 + $0xa0] sm:$0xff] }
  0x19   :  { %v130_v12 = vld [vmem:[%s2185_s1 + $0x390] sm:$0xff]  ;;  %v44_v47 = vld [vmem:[%s2185_s1 + $0xe0] sm:$0xff] }
  0x1a   :  { %1003 = vmatpush1.bf16.msra.mxu0 %v1494_v53  ;;  %1044 = vmatpush1.bf16.msra.mxu1 %v1496_v54  ;;  %v90_v53 = vld [vmem:[%s2185_s1 + $0x250] sm:$0xff]  ;;  %v83_v54 = vld [vmem:[%s2185_s1 + $0x218] sm:$0xff] }
  0x1b   :  { %1004 = vmatprep.subr.bf16.mxu0 %v1511_v55  ;;  %1045 = vmatprep.subr.bf16.mxu1 %v1513_v56  ;;  %v91_v55 = vld [vmem:[%s2185_s1 + $0x258] sm:$0xff]  ;;  %v1466_v56 = vcombine.low %v66_v44, %v74_v45  ;;  %v1483_v58 = vcombine.high %v82_v52, %v90_v53  ;;  %v146_v20 = vld [vmem:[%s2185_s1 + $0x410] sm:$0xff] }
  0x1c   :  { %v1485_v59 = vcombine.high %v83_v54, %v91_v55  ;;  %v1484_v1 = vcombine.low %v83_v54, %v91_v55  ;;  %v162_v29 = vld [vmem:[%s2185_s1 + $0x490] sm:$0xff]  ;;  %v52_v54 = vld [vmem:[%s2185_s1 + $0x120] sm:$0xff] }
  0x1d   :  { %v60_v55 = vld [vmem:[%s2185_s1 + $0x160] sm:$0xff] }
  0x1e   :  { %1005 = vmatpush1.bf16.msra.mxu0 %v1510_v61  ;;  %1046 = vmatpush1.bf16.msra.mxu1 %v1512_v62  ;;  %v106_v61 = vld [vmem:[%s2185_s1 + $0x2d0] sm:$0xff]  ;;  %v99_v62 = vld [vmem:[%s2185_s1 + $0x298] sm:$0xff] }
  0x1f   :  { %1006 = vmatprep.subr.bf16.mxu0 %v1527_v63  ;;  %1047 = vmatprep.subr.bf16.mxu1 %v1529_v0  ;;  %v107_v63 = vld [vmem:[%s2185_s1 + $0x2d8] sm:$0xff]  ;;  %v1482_v0 = vcombine.low %v82_v52, %v90_v53  ;;  %v1499_v2 = vcombine.high %v98_v60, %v106_v61  ;;  %v1439_v52 = vcombine.high %v36_v46, %v44_v47 }
  0x20   :  { %v1501_v3 = vcombine.high %v99_v62, %v107_v63  ;;  %v1500_v9 = vcombine.low %v99_v62, %v107_v63  ;;  %v68_v62 = vld [vmem:[%s2185_s1 + $0x1a0] sm:$0xff] }
  0x21   :  { %v76_v63 = vld [vmem:[%s2185_s1 + $0x1e0] sm:$0xff] }
  0x22   :  { %1007 = vmatpush1.bf16.msra.mxu0 %v1526_v5  ;;  %1048 = vmatpush1.bf16.msra.mxu1 %v1528_v6  ;;  %v122_v5 = vld [vmem:[%s2185_s1 + $0x350] sm:$0xff]  ;;  %v115_v6 = vld [vmem:[%s2185_s1 + $0x318] sm:$0xff] }
  0x23   :  { %1008 = vmatprep.subr.bf16.mxu0 %v1543_v7  ;;  %1049 = vmatprep.subr.bf16.mxu1 %v1545_v8  ;;  %v123_v7 = vld [vmem:[%s2185_s1 + $0x358] sm:$0xff]  ;;  %v1498_v8 = vcombine.low %v98_v60, %v106_v61  ;;  %v1515_v10 = vcombine.high %v114_v4, %v122_v5  ;;  %v1455_v60 = vcombine.high %v52_v54, %v60_v55 }
  0x24   :  { %v1517_v11 = vcombine.high %v115_v6, %v123_v7  ;;  %v1516_v17 = vcombine.low %v115_v6, %v123_v7  ;;  %v84_v6 = vld [vmem:[%s2185_s1 + $0x220] sm:$0xff] }
  0x25   :  { %v92_v7 = vld [vmem:[%s2185_s1 + $0x260] sm:$0xff] }
  0x26   :  { %1009 = vmatpush1.bf16.msra.mxu0 %v1542_v13  ;;  %1050 = vmatpush1.bf16.msra.mxu1 %v1544_v14  ;;  %v138_v13 = vld [vmem:[%s2185_s1 + $0x3d0] sm:$0xff]  ;;  %v131_v14 = vld [vmem:[%s2185_s1 + $0x398] sm:$0xff] }
  0x27   :  { %1010 = vmatprep.subr.bf16.mxu0 %v1559_v15  ;;  %1051 = vmatprep.subr.bf16.mxu1 %v1561_v16  ;;  %v139_v15 = vld [vmem:[%s2185_s1 + $0x3d8] sm:$0xff]  ;;  %v1514_v16 = vcombine.low %v114_v4, %v122_v5  ;;  %v1531_v18 = vcombine.high %v130_v12, %v138_v13  ;;  %v1471_v4 = vcombine.high %v68_v62, %v76_v63 }
  0x28   :  { %v1533_v19 = vcombine.high %v131_v14, %v139_v15  ;;  %v1532_v25 = vcombine.low %v131_v14, %v139_v15  ;;  %v100_v14 = vld [vmem:[%s2185_s1 + $0x2a0] sm:$0xff] }
  0x29   :  { %v108_v15 = vld [vmem:[%s2185_s1 + $0x2e0] sm:$0xff] }
  0x2a   :  { %1011 = vmatpush1.bf16.msra.mxu0 %v1558_v21  ;;  %1052 = vmatpush1.bf16.msra.mxu1 %v1560_v22  ;;  %v154_v21 = vld [vmem:[%s2185_s1 + $0x450] sm:$0xff]  ;;  %v147_v22 = vld [vmem:[%s2185_s1 + $0x418] sm:$0xff] }
  0x2b   :  { %1074 = vmatprep.subr.bf16.mxu0 %v1419_v23  ;;  %1115 = vmatprep.subr.bf16.mxu1 %v1421_v24  ;;  %v155_v23 = vld [vmem:[%s2185_s1 + $0x458] sm:$0xff]  ;;  %v1530_v24 = vcombine.low %v130_v12, %v138_v13  ;;  %v1547_v26 = vcombine.high %v146_v20, %v154_v21  ;;  %v1487_v12 = vcombine.high %v84_v6, %v92_v7 }
  0x2c   :  { %v1549_v28 = vcombine.high %v147_v22, %v155_v23  ;;  %v1548_v34 = vcombine.low %v147_v22, %v155_v23  ;;  %v116_v22 = vld [vmem:[%s2185_s1 + $0x320] sm:$0xff] }
  0x2d   :  { %1025 = vmatmul.mubr.bf16.vlgmr.msra.gmra.mrb[0].mxu0 %v1776_v27  ;;  %1066 = vmatmul.mubr.bf16.vlgmr.msra.gmra.mrb[0].mxu1 %v1776_v27  ;;  %v124_v23 = vld [vmem:[%s2185_s1 + $0x360] sm:$0xff] }
  0x2e   :  { %1075 = vmatpush1.bf16.msra.mxu0 %v1418_v30  ;;  %1116 = vmatpush1.bf16.msra.mxu1 %v1420_v31  ;;  %v170_v30 = vld [vmem:[%s2185_s1 + $0x4d0] sm:$0xff]  ;;  %v163_v31 = vld [vmem:[%s2185_s1 + $0x498] sm:$0xff] }
  0x2f   :  { %1076 = vmatprep.subr.bf16.mxu0 %v1435_v32  ;;  %1117 = vmatprep.subr.bf16.mxu1 %v1437_v33  ;;  %v171_v32 = vld [vmem:[%s2185_s1 + $0x4d8] sm:$0xff]  ;;  %v1546_v33 = vcombine.low %v146_v20, %v154_v21  ;;  %v1563_v35 = vcombine.high %v162_v29, %v170_v30  ;;  %v1503_v20 = vcombine.high %v100_v14, %v108_v15 }
  0x30   :  { %1576 = vmatprep.mubr.msk.bf16.mxu0 %vm988_vm0, %v1696_v42  ;;  %1577 = vmatprep.mubr.msk.bf16.mxu1 %vm988_vm0, %v1696_v42  ;;  %v1565_v36 = vcombine.high %v163_v31, %v171_v32 }
  0x32   :  { %1077 = vmatpush1.bf16.msra.mxu0 %v1434_v38  ;;  %1118 = vmatpush1.bf16.msra.mxu1 %v1436_v40  ;;  %v28_v38 = vld [vmem:[%s2185_s1 + $0x60] sm:$0xff]  ;;  %v29_v40 = vld [vmem:[%s2185_s1 + $0x68] sm:$0xff] }
  0x33   :  { %1078 = vmatprep.subr.bf16.mxu0 %v1451_v41  ;;  %1119 = vmatprep.subr.bf16.mxu1 %v1453_v43  ;;  %v1562_v41 = vcombine.low %v162_v29, %v170_v30  ;;  %v1564_v43 = vcombine.low %v163_v31, %v171_v32  ;;  %v1423_v44 = vcombine.high %v20_v37, %v28_v38  ;;  %v132_v31 = vld [vmem:[%s2185_s1 + $0x3a0] sm:$0xff] }
  0x34   :  { %v1425_v45 = vcombine.high %v21_v39, %v29_v40  ;;  %v1519_v29 = vcombine.high %v116_v22, %v124_v23  ;;  %v140_v32 = vld [vmem:[%s2185_s1 + $0x3e0] sm:$0xff] }
  0x36   :  { %1079 = vmatpush1.bf16.msra.mxu0 %v1450_v48  ;;  %1120 = vmatpush1.bf16.msra.mxu1 %v1452_v49  ;;  %v37_v48 = vld [vmem:[%s2185_s1 + $0xa8] sm:$0xff] }
  0x37   :  { %1080 = vmatprep.subr.bf16.mxu0 %v1467_v50  ;;  %1121 = vmatprep.subr.bf16.mxu1 %v1469_v51  ;;  %v45_v49 = vld [vmem:[%s2185_s1 + $0xe8] sm:$0xff]  ;;  %v1422_v50 = vcombine.low %v20_v37, %v28_v38  ;;  %v1424_v51 = vcombine.low %v21_v39, %v29_v40  ;;  %v1535_v37 = vcombine.high %v132_v31, %v140_v32  ;;  %v148_v39 = vld [vmem:[%s2185_s1 + $0x420] sm:$0xff] }
  0x38   :  { %v1441_v53 = vcombine.high %v37_v48, %v45_v49  ;;  %v156_v40 = vld [vmem:[%s2185_s1 + $0x460] sm:$0xff] }
  0x3a   :  { %1081 = vmatpush1.bf16.msra.mxu0 %v1466_v56  ;;  %1122 = vmatpush1.bf16.msra.mxu1 %v1468_v57  ;;  %v53_v56 = vld [vmem:[%s2185_s1 + $0x128] sm:$0xff] }
  0x3b   :  { %1082 = vmatprep.subr.bf16.mxu0 %v1483_v58  ;;  %1123 = vmatprep.subr.bf16.mxu1 %v1485_v59  ;;  %v61_v57 = vld [vmem:[%s2185_s1 + $0x168] sm:$0xff]  ;;  %v1438_v58 = vcombine.low %v36_v46, %v44_v47  ;;  %v1440_v59 = vcombine.low %v37_v48, %v45_v49  ;;  %v1551_v46 = vcombine.high %v148_v39, %v156_v40  ;;  %v164_v48 = vld [vmem:[%s2185_s1 + $0x4a0] sm:$0xff] }
  0x3c   :  { %v1457_v61 = vcombine.high %v53_v56, %v61_v57  ;;  %v172_v49 = vld [vmem:[%s2185_s1 + $0x4e0] sm:$0xff] }
  0x3e   :  { %1083 = vmatpush1.bf16.msra.mxu0 %v1482_v0  ;;  %1124 = vmatpush1.bf16.msra.mxu1 %v1484_v1  ;;  %v69_v0 = vld [vmem:[%s2185_s1 + $0x1a8] sm:$0xff] }
  0x3f   :  { %1084 = vmatprep.subr.bf16.mxu0 %v1499_v2  ;;  %1125 = vmatprep.subr.bf16.mxu1 %v1501_v3  ;;  %v77_v1 = vld [vmem:[%s2185_s1 + $0x1e8] sm:$0xff]  ;;  %v1454_v2 = vcombine.low %v52_v54, %v60_v55  ;;  %v1456_v3 = vcombine.low %v53_v56, %v61_v57  ;;  %v1567_v54 = vcombine.high %v164_v48, %v172_v49  ;;  %v22_v56 = vld [vmem:[%s2185_s1 + $0x30] sm:$0xff] }
  0x40   :  { %v1473_v5 = vcombine.high %v69_v0, %v77_v1  ;;  %v30_v57 = vld [vmem:[%s2185_s1 + $0x70] sm:$0xff] }
  0x42   :  { %1085 = vmatpush1.bf16.msra.mxu0 %v1498_v8  ;;  %1126 = vmatpush1.bf16.msra.mxu1 %v1500_v9  ;;  %v85_v8 = vld [vmem:[%s2185_s1 + $0x228] sm:$0xff] }
  0x43   :  { %1086 = vmatprep.subr.bf16.mxu0 %v1515_v10  ;;  %1127 = vmatprep.subr.bf16.mxu1 %v1517_v11  ;;  %v93_v9 = vld [vmem:[%s2185_s1 + $0x268] sm:$0xff]  ;;  %v1470_v10 = vcombine.low %v68_v62, %v76_v63  ;;  %v1472_v11 = vcombine.low %v69_v0, %v77_v1  ;;  %v1427_v62 = vcombine.high %v22_v56, %v30_v57  ;;  %v38_v0 = vld [vmem:[%s2185_s1 + $0xb0] sm:$0xff] }
  0x44   :  { %v1489_v13 = vcombine.high %v85_v8, %v93_v9  ;;  %v46_v1 = vld [vmem:[%s2185_s1 + $0xf0] sm:$0xff] }
  0x46   :  { %1087 = vmatpush1.bf16.msra.mxu0 %v1514_v16  ;;  %1128 = vmatpush1.bf16.msra.mxu1 %v1516_v17  ;;  %v101_v16 = vld [vmem:[%s2185_s1 + $0x2a8] sm:$0xff] }
  0x47   :  { %1088 = vmatprep.subr.bf16.mxu0 %v1531_v18  ;;  %1129 = vmatprep.subr.bf16.mxu1 %v1533_v19  ;;  %v109_v17 = vld [vmem:[%s2185_s1 + $0x2e8] sm:$0xff]  ;;  %v1486_v18 = vcombine.low %v84_v6, %v92_v7  ;;  %v1488_v19 = vcombine.low %v85_v8, %v93_v9  ;;  %v1443_v6 = vcombine.high %v38_v0, %v46_v1  ;;  %v54_v8 = vld [vmem:[%s2185_s1 + $0x130] sm:$0xff] }
  0x48   :  { %v1505_v21 = vcombine.high %v101_v16, %v109_v17  ;;  %v62_v9 = vld [vmem:[%s2185_s1 + $0x170] sm:$0xff] }
  0x4a   :  { %1089 = vmatpush1.bf16.msra.mxu0 %v1530_v24  ;;  %1130 = vmatpush1.bf16.msra.mxu1 %v1532_v25  ;;  %v117_v24 = vld [vmem:[%s2185_s1 + $0x328] sm:$0xff] }
  0x4b   :  { %1090 = vmatprep.subr.bf16.mxu0 %v1547_v26  ;;  %1131 = vmatprep.subr.bf16.mxu1 %v1549_v28  ;;  %v125_v25 = vld [vmem:[%s2185_s1 + $0x368] sm:$0xff]  ;;  %v1502_v26 = vcombine.low %v100_v14, %v108_v15  ;;  %v1504_v28 = vcombine.low %v101_v16, %v109_v17  ;;  %v1459_v14 = vcombine.high %v54_v8, %v62_v9  ;;  %v70_v16 = vld [vmem:[%s2185_s1 + $0x1b0] sm:$0xff] }
  0x4c   :  { %v1521_v30 = vcombine.high %v117_v24, %v125_v25  ;;  %v78_v17 = vld [vmem:[%s2185_s1 + $0x1f0] sm:$0xff] }
  0x4e   :  { %1091 = vmatpush1.bf16.msra.mxu0 %v1546_v33  ;;  %1132 = vmatpush1.bf16.msra.mxu1 %v1548_v34  ;;  %v133_v33 = vld [vmem:[%s2185_s1 + $0x3a8] sm:$0xff] }
  0x4f   :  { %1092 = vmatprep.subr.bf16.mxu0 %v1563_v35  ;;  %1133 = vmatprep.subr.bf16.mxu1 %v1565_v36  ;;  %v141_v34 = vld [vmem:[%s2185_s1 + $0x3e8] sm:$0xff]  ;;  %v1518_v35 = vcombine.low %v116_v22, %v124_v23  ;;  %v1520_v36 = vcombine.low %v117_v24, %v125_v25  ;;  %v1475_v22 = vcombine.high %v70_v16, %v78_v17  ;;  %v86_v24 = vld [vmem:[%s2185_s1 + $0x230] sm:$0xff] }
  0x50   :  { %v1537_v38 = vcombine.high %v133_v33, %v141_v34  ;;  %v94_v25 = vld [vmem:[%s2185_s1 + $0x270] sm:$0xff] }
  0x52   :  { %1093 = vmatpush1.bf16.msra.mxu0 %v1562_v41  ;;  %1134 = vmatpush1.bf16.msra.mxu1 %v1564_v43  ;;  %v149_v41 = vld [vmem:[%s2185_s1 + $0x428] sm:$0xff] }
  0x53   :  { %1156 = vmatprep.subr.bf16.mxu0 %v1423_v44  ;;  %1197 = vmatprep.subr.bf16.mxu1 %v1425_v45  ;;  %v157_v43 = vld [vmem:[%s2185_s1 + $0x468] sm:$0xff]  ;;  %v1534_v44 = vcombine.low %v132_v31, %v140_v32  ;;  %v1536_v45 = vcombine.low %v133_v33, %v141_v34  ;;  %v102_v32 = vld [vmem:[%s2185_s1 + $0x2b0] sm:$0xff]  ;;  %v103_v34 = vld [vmem:[%s2185_s1 + $0x2b8] sm:$0xff] }
  0x54   :  { %v1553_v47 = vcombine.high %v149_v41, %v157_v43  ;;  %v110_v33 = vld [vmem:[%s2185_s1 + $0x2f0] sm:$0xff] }
  0x55   :  { %1107 = vmatmul.mubr.bf16.vlgmr.msra.gmra.mrb[4].mxu0 %v1776_v27  ;;  %1148 = vmatmul.mubr.bf16.vlgmr.msra.gmra.mrb[4].mxu1 %v1776_v27 }
  0x56   :  { %1157 = vmatpush1.bf16.msra.mxu0 %v1422_v50  ;;  %1198 = vmatpush1.bf16.msra.mxu1 %v1424_v51  ;;  %v165_v50 = vld [vmem:[%s2185_s1 + $0x4a8] sm:$0xff] }
  0x57   :  { %1158 = vmatprep.subr.bf16.mxu0 %v1439_v52  ;;  %1199 = vmatprep.subr.bf16.mxu1 %v1441_v53  ;;  %v173_v51 = vld [vmem:[%s2185_s1 + $0x4e8] sm:$0xff]  ;;  %v1550_v52 = vcombine.low %v148_v39, %v156_v40  ;;  %v1552_v53 = vcombine.low %v149_v41, %v157_v43  ;;  %v118_v40 = vld [vmem:[%s2185_s1 + $0x330] sm:$0xff]  ;;  %v119_v43 = vld [vmem:[%s2185_s1 + $0x338] sm:$0xff] }
  0x58   :  { %1578 = vmatprep.mubr.msk.bf16.mxu0 %vm988_vm0, %v1696_v42  ;;  %1579 = vmatprep.mubr.msk.bf16.mxu1 %vm988_vm0, %v1696_v42  ;;  %v1569_v55 = vcombine.high %v165_v50, %v173_v51  ;;  %v126_v41 = vld [vmem:[%s2185_s1 + $0x370] sm:$0xff] }
  0x5a   :  { %1159 = vmatpush1.bf16.msra.mxu0 %v1438_v58  ;;  %1200 = vmatpush1.bf16.msra.mxu1 %v1440_v59  ;;  %v23_v58 = vld [vmem:[%s2185_s1 + $0x38] sm:$0xff] }
  0x5b   :  { %1160 = vmatprep.subr.bf16.mxu0 %v1455_v60  ;;  %1201 = vmatprep.subr.bf16.mxu1 %v1457_v61  ;;  %v31_v59 = vld [vmem:[%s2185_s1 + $0x78] sm:$0xff]  ;;  %v1566_v60 = vcombine.low %v164_v48, %v172_v49  ;;  %v1568_v61 = vcombine.low %v165_v50, %v173_v51  ;;  %v134_v49 = vld [vmem:[%s2185_s1 + $0x3b0] sm:$0xff] }
  0x5c   :  { %v1429_v63 = vcombine.high %v23_v58, %v31_v59  ;;  %v142_v50 = vld [vmem:[%s2185_s1 + $0x3f0] sm:$0xff]  ;;  %v135_v51 = vld [vmem:[%s2185_s1 + $0x3b8] sm:$0xff] }
  0x5e   :  { %1161 = vmatpush1.bf16.msra.mxu0 %v1454_v2  ;;  %1202 = vmatpush1.bf16.msra.mxu1 %v1456_v3  ;;  %v39_v2 = vld [vmem:[%s2185_s1 + $0xb8] sm:$0xff] }
  0x5f   :  { %1162 = vmatprep.subr.bf16.mxu0 %v1471_v4  ;;  %1203 = vmatprep.subr.bf16.mxu1 %v1473_v5  ;;  %v47_v3 = vld [vmem:[%s2185_s1 + $0xf8] sm:$0xff]  ;;  %v1426_v4 = vcombine.low %v22_v56, %v30_v57  ;;  %v1428_v5 = vcombine.low %v23_v58, %v31_v59  ;;  %v150_v57 = vld [vmem:[%s2185_s1 + $0x430] sm:$0xff] }
  0x60   :  { %v1445_v7 = vcombine.high %v39_v2, %v47_v3  ;;  %v158_v58 = vld [vmem:[%s2185_s1 + $0x470] sm:$0xff]  ;;  %v151_v59 = vld [vmem:[%s2185_s1 + $0x438] sm:$0xff] }
  0x62   :  { %1163 = vmatpush1.bf16.msra.mxu0 %v1470_v10  ;;  %1204 = vmatpush1.bf16.msra.mxu1 %v1472_v11  ;;  %v55_v10 = vld [vmem:[%s2185_s1 + $0x138] sm:$0xff] }
  0x63   :  { %1164 = vmatprep.subr.bf16.mxu0 %v1487_v12  ;;  %1205 = vmatprep.subr.bf16.mxu1 %v1489_v13  ;;  %v63_v11 = vld [vmem:[%s2185_s1 + $0x178] sm:$0xff]  ;;  %v1442_v12 = vcombine.low %v38_v0, %v46_v1  ;;  %v1444_v13 = vcombine.low %v39_v2, %v47_v3  ;;  %v166_v1 = vld [vmem:[%s2185_s1 + $0x4b0] sm:$0xff] }
  0x64   :  { %v1461_v15 = vcombine.high %v55_v10, %v63_v11  ;;  %v174_v2 = vld [vmem:[%s2185_s1 + $0x4f0] sm:$0xff]  ;;  %v167_v3 = vld [vmem:[%s2185_s1 + $0x4b8] sm:$0xff] }
  0x66   :  { %1165 = vmatpush1.bf16.msra.mxu0 %v1486_v18  ;;  %1206 = vmatpush1.bf16.msra.mxu1 %v1488_v19  ;;  %v71_v18 = vld [vmem:[%s2185_s1 + $0x1b8] sm:$0xff] }
  0x67   :  { %1166 = vmatprep.subr.bf16.mxu0 %v1503_v20  ;;  %1207 = vmatprep.subr.bf16.mxu1 %v1505_v21  ;;  %v79_v19 = vld [vmem:[%s2185_s1 + $0x1f8] sm:$0xff]  ;;  %v1458_v20 = vcombine.low %v54_v8, %v62_v9  ;;  %v1460_v21 = vcombine.low %v55_v10, %v63_v11  ;;  %v1570_v9 = vcombine.low %v166_v1, %v174_v2 }
  0x68   :  { %v1477_v23 = vcombine.high %v71_v18, %v79_v19 }
  0x6a   :  { %1167 = vmatpush1.bf16.msra.mxu0 %v1502_v26  ;;  %1208 = vmatpush1.bf16.msra.mxu1 %v1504_v28  ;;  %v95_v26 = vld [vmem:[%s2185_s1 + $0x278] sm:$0xff]  ;;  %v1474_v28 = vcombine.low %v70_v16, %v78_v17 }
  0x6b   :  { %1168 = vmatprep.subr.bf16.mxu0 %v1519_v29  ;;  %1209 = vmatprep.subr.bf16.mxu1 %v1521_v30  ;;  %v1476_v29 = vcombine.low %v71_v18, %v79_v19  ;;  %v1491_v30 = vcombine.high %v86_v24, %v94_v25 }
  0x6e   :  { %1169 = vmatpush1.bf16.msra.mxu0 %v1518_v35  ;;  %1210 = vmatpush1.bf16.msra.mxu1 %v1520_v36  ;;  %v111_v35 = vld [vmem:[%s2185_s1 + $0x2f8] sm:$0xff]  ;;  %v1490_v36 = vcombine.low %v86_v24, %v94_v25 }
  0x6f   :  { %1170 = vmatprep.subr.bf16.mxu0 %v1535_v37  ;;  %1211 = vmatprep.subr.bf16.mxu1 %v1537_v38  ;;  %v1507_v38 = vcombine.high %v102_v32, %v110_v33  ;;  %v1509_v39 = vcombine.high %v103_v34, %v111_v35 }
  0x72   :  { %1171 = vmatpush1.bf16.msra.mxu0 %v1534_v44  ;;  %1212 = vmatpush1.bf16.msra.mxu1 %v1536_v45  ;;  %v127_v44 = vld [vmem:[%s2185_s1 + $0x378] sm:$0xff]  ;;  %v1506_v45 = vcombine.low %v102_v32, %v110_v33 }
  0x73   :  { %1172 = vmatprep.subr.bf16.mxu0 %v1551_v46  ;;  %1213 = vmatprep.subr.bf16.mxu1 %v1553_v47  ;;  %v1508_v46 = vcombine.low %v103_v34, %v111_v35  ;;  %v1523_v47 = vcombine.high %v118_v40, %v126_v41  ;;  %v1525_v48 = vcombine.high %v119_v43, %v127_v44 }
  0x76   :  { %1173 = vmatpush1.bf16.msra.mxu0 %v1550_v52  ;;  %1214 = vmatpush1.bf16.msra.mxu1 %v1552_v53  ;;  %v143_v52 = vld [vmem:[%s2185_s1 + $0x3f8] sm:$0xff]  ;;  %v1522_v53 = vcombine.low %v118_v40, %v126_v41 }
  0x77   :  { %1174 = vmatprep.subr.bf16.mxu0 %v1567_v54  ;;  %1215 = vmatprep.subr.bf16.mxu1 %v1569_v55  ;;  %v1524_v54 = vcombine.low %v119_v43, %v127_v44  ;;  %v1539_v55 = vcombine.high %v134_v49, %v142_v50  ;;  %v1541_v56 = vcombine.high %v135_v51, %v143_v52 }
  0x7a   :  { %1175 = vmatpush1.bf16.msra.mxu0 %v1566_v60  ;;  %1216 = vmatpush1.bf16.msra.mxu1 %v1568_v61  ;;  %v159_v60 = vld [vmem:[%s2185_s1 + $0x478] sm:$0xff]  ;;  %v1538_v61 = vcombine.low %v134_v49, %v142_v50 }
  0x7b   :  { %1238 = vmatprep.subr.bf16.mxu0 %v1427_v62  ;;  %1279 = vmatprep.subr.bf16.mxu1 %v1429_v63  ;;  %v1540_v62 = vcombine.low %v135_v51, %v143_v52  ;;  %v1555_v63 = vcombine.high %v150_v57, %v158_v58  ;;  %v1557_v0 = vcombine.high %v151_v59, %v159_v60 }
  0x7d   :  { %1189 = vmatmul.mubr.bf16.vlgmr.msra.gmra.mrb[8].mxu0 %v1776_v27  ;;  %1230 = vmatmul.mubr.bf16.vlgmr.msra.gmra.mrb[8].mxu1 %v1776_v27 }
  0x7e   :  { %1239 = vmatpush1.bf16.msra.mxu0 %v1426_v4  ;;  %1280 = vmatpush1.bf16.msra.mxu1 %v1428_v5  ;;  %v175_v4 = vld [vmem:[%s2185_s1 + $0x4f8] sm:$0xff]  ;;  %v1554_v5 = vcombine.low %v150_v57, %v158_v58 }
  0x7f   :  { %1240 = vmatprep.subr.bf16.mxu0 %v1443_v6  ;;  %1281 = vmatprep.subr.bf16.mxu1 %v1445_v7  ;;  %v1556_v6 = vcombine.low %v151_v59, %v159_v60  ;;  %v1571_v7 = vcombine.high %v166_v1, %v174_v2  ;;  %v1573_v8 = vcombine.high %v167_v3, %v175_v4 }
  0x80   :  { %1580 = vmatprep.mubr.msk.bf16.mxu0 %vm988_vm0, %v1696_v42  ;;  %1581 = vmatprep.mubr.msk.bf16.mxu1 %vm988_vm0, %v1696_v42  ;;  %v87_v42 = vld [vmem:[%s2185_s1 + $0x238] sm:$0xff]  ;;  %v1572_v10 = vcombine.low %v167_v3, %v175_v4 }
  0x81   :  { %v1493_v31 = vcombine.high %v87_v42, %v95_v26  ;;  %v1492_v37 = vcombine.low %v87_v42, %v95_v26 }
  0x82   :  { %1241 = vmatpush1.bf16.msra.mxu0 %v1442_v12  ;;  %1282 = vmatpush1.bf16.msra.mxu1 %v1444_v13 }
  0x83   :  { %1242 = vmatprep.subr.bf16.mxu0 %v1459_v14  ;;  %1283 = vmatprep.subr.bf16.mxu1 %v1461_v15 }
  0x86   :  { %1243 = vmatpush1.bf16.msra.mxu0 %v1458_v20  ;;  %1284 = vmatpush1.bf16.msra.mxu1 %v1460_v21 }
  0x87   :  { %1244 = vmatprep.subr.bf16.mxu0 %v1475_v22  ;;  %1285 = vmatprep.subr.bf16.mxu1 %v1477_v23 }
  0x8a   :  { %1245 = vmatpush1.bf16.msra.mxu0 %v1474_v28  ;;  %1286 = vmatpush1.bf16.msra.mxu1 %v1476_v29 }
  0x8b   :  { %1246 = vmatprep.subr.bf16.mxu0 %v1491_v30  ;;  %1287 = vmatprep.subr.bf16.mxu1 %v1493_v31 }
  0x8e   :  { %1247 = vmatpush1.bf16.msra.mxu0 %v1490_v36  ;;  %1288 = vmatpush1.bf16.msra.mxu1 %v1492_v37 }
  0x8f   :  { %1248 = vmatprep.subr.bf16.mxu0 %v1507_v38  ;;  %1289 = vmatprep.subr.bf16.mxu1 %v1509_v39 }
  0x92   :  { %1249 = vmatpush1.bf16.msra.mxu0 %v1506_v45  ;;  %1290 = vmatpush1.bf16.msra.mxu1 %v1508_v46 }
  0x93   :  { %1250 = vmatprep.subr.bf16.mxu0 %v1523_v47  ;;  %1291 = vmatprep.subr.bf16.mxu1 %v1525_v48 }
  0x96   :  { %1251 = vmatpush1.bf16.msra.mxu0 %v1522_v53  ;;  %1292 = vmatpush1.bf16.msra.mxu1 %v1524_v54 }
  0x97   :  { %1252 = vmatprep.subr.bf16.mxu0 %v1539_v55  ;;  %1293 = vmatprep.subr.bf16.mxu1 %v1541_v56  ;;  %v2143_v11 = vpop.permute.xlu0 %179 }
  0x9a   :  { %1253 = vmatpush1.bf16.msra.mxu0 %v1538_v61  ;;  %1294 = vmatpush1.bf16.msra.mxu1 %v1540_v62 }
  0x9b   :  { %1254 = vmatprep.subr.bf16.mxu0 %v1555_v63  ;;  %1295 = vmatprep.subr.bf16.mxu1 %v1557_v0 }
  0x9e   :  { %1255 = vmatpush1.bf16.msra.mxu0 %v1554_v5  ;;  %1296 = vmatpush1.bf16.msra.mxu1 %v1556_v6 }
  0x9f   :  { %1256 = vmatprep.subr.bf16.mxu0 %v1571_v7  ;;  %1297 = vmatprep.subr.bf16.mxu1 %v1573_v8 }
  0xa2   :  { %1257 = vmatpush1.bf16.msra.mxu0 %v1570_v9  ;;  %1298 = vmatpush1.bf16.msra.mxu1 %v1572_v10 }
  0xa5   :  { %1271 = vmatmul.mubr.bf16.vlgmr.msra.gmra.mrb[12].mxu0 %v1776_v27  ;;  %1312 = vmatmul.mubr.bf16.vlgmr.msra.gmra.mrb[12].mxu1 %v1776_v27 }
 0x100   :  { %v1026_v12 = vpop.f32.mrb[0].mxu0  ;;  %v1067_v13 = vpop.f32.mrb[0].mxu1 }
 0x101   :  { %v1027_v14 = vadd.f32 %v1026_v12, %v2143_v11  ;;  %v1028_v15 = vpop.f32.mrb[1].mxu0  ;;  %v1068_v17 = vadd.f32 %v1067_v13, %v2143_v11  ;;  %v1069_v18 = vpop.f32.mrb[1].mxu1 }
 0x102   :  { %v1029_v16 = vadd.f32 %v1028_v15, %v2143_v11  ;;  %v1030_v19 = vpop.f32.mrb[2].mxu0  ;;  %v1070_v21 = vadd.f32 %v1069_v18, %v2143_v11  ;;  %v1071_v22 = vpop.f32.mrb[2].mxu1 }
 0x103   :  { %v1320_v20 = vmax.f32 %v1027_v14, 0.0  ;;  %v1031_v23 = vpop.f32.mrb[3].mxu0  ;;  %v1322_v27 = vmax.f32 %v1068_v17, 0.0  ;;  %v1072_v25 = vpop.f32.mrb[3].mxu1 }
 0x104   :  { %v1321_v24 = vmax.f32 %v1029_v16, 0.0  ;;  %v1323_v42 = vmax.f32 %v1070_v21, 0.0 }
 0x106   :  { %v1590_v26 = vpack.c.bf16 %v1321_v24, %v1320_v20  ;;  %v1591_v28 = vpack.c.bf16 %v1323_v42, %v1322_v27 }
 0x108   :  { %1400 = vst [vmem:[%s2188_s3] sm:$0xff] %v1590_v26  ;;  %1401 = vst [vmem:[%s2188_s3 + $0x8] sm:$0xff] %v1591_v28 }
 0x128   :  { %v1108_v29 = vpop.f32.mrb[4].mxu0  ;;  %v1149_v31 = vpop.f32.mrb[4].mxu1 }
 0x129   :  { %v1109_v30 = vadd.f32 %v1108_v29, %v2143_v11  ;;  %v1110_v32 = vpop.f32.mrb[5].mxu0  ;;  %v1150_v33 = vadd.f32 %v1149_v31, %v2143_v11  ;;  %v1151_v35 = vpop.f32.mrb[5].mxu1 }
 0x12a   :  { %v1111_v34 = vadd.f32 %v1110_v32, %v2143_v11  ;;  %v1112_v36 = vpop.f32.mrb[6].mxu0  ;;  %v1152_v38 = vadd.f32 %v1151_v35, %v2143_v11  ;;  %v1153_v39 = vpop.f32.mrb[6].mxu1 }
 0x12b   :  { %v1324_v37 = vmax.f32 %v1109_v30, 0.0  ;;  %v1113_v40 = vpop.f32.mrb[7].mxu0  ;;  %v1326_v41 = vmax.f32 %v1150_v33, 0.0  ;;  %v1154_v44 = vpop.f32.mrb[7].mxu1 }
 0x12c   :  { %v1325_v43 = vmax.f32 %v1111_v34, 0.0  ;;  %v1327_v45 = vmax.f32 %v1152_v38, 0.0 }
 0x12e   :  { %v1592_v46 = vpack.c.bf16 %v1325_v43, %v1324_v37  ;;  %v1593_v47 = vpack.c.bf16 %v1327_v45, %v1326_v41 }
 0x130   :  { %1402 = vst [vmem:[%s2188_s3 + $0x10] sm:$0xff] %v1592_v46  ;;  %1403 = vst [vmem:[%s2188_s3 + $0x18] sm:$0xff] %v1593_v47 }
 0x150   :  { %v1190_v48 = vpop.f32.mrb[8].mxu0  ;;  %v1231_v50 = vpop.f32.mrb[8].mxu1 }
 0x151   :  { %v1191_v49 = vadd.f32 %v1190_v48, %v2143_v11  ;;  %v1192_v51 = vpop.f32.mrb[9].mxu0  ;;  %v1232_v52 = vadd.f32 %v1231_v50, %v2143_v11  ;;  %v1233_v54 = vpop.f32.mrb[9].mxu1 }
 0x152   :  { %v1193_v53 = vadd.f32 %v1192_v51, %v2143_v11  ;;  %v1194_v55 = vpop.f32.mrb[10].mxu0  ;;  %v1234_v57 = vadd.f32 %v1233_v54, %v2143_v11  ;;  %v1235_v58 = vpop.f32.mrb[10].mxu1 }
 0x153   :  { %v1328_v56 = vmax.f32 %v1191_v49, 0.0  ;;  %v1195_v59 = vpop.f32.mrb[11].mxu0  ;;  %v1330_v60 = vmax.f32 %v1232_v52, 0.0  ;;  %v1236_v62 = vpop.f32.mrb[11].mxu1 }
 0x154   :  { %v1329_v61 = vmax.f32 %v1193_v53, 0.0  ;;  %v1331_v63 = vmax.f32 %v1234_v57, 0.0 }
 0x156   :  { %v1594_v0 = vpack.c.bf16 %v1329_v61, %v1328_v56  ;;  %v1595_v1 = vpack.c.bf16 %v1331_v63, %v1330_v60 }
 0x158   :  { %1404 = vst [vmem:[%s2188_s3 + $0x20] sm:$0xff] %v1594_v0  ;;  %1405 = vst [vmem:[%s2188_s3 + $0x28] sm:$0xff] %v1595_v1 }
 0x178   :  { %v1272_v2 = vpop.f32.mrb[12].mxu0  ;;  %v1313_v4 = vpop.f32.mrb[12].mxu1 }
 0x179   :  { %v1273_v3 = vadd.f32 %v1272_v2, %v2143_v11  ;;  %v1274_v5 = vpop.f32.mrb[13].mxu0  ;;  %v1314_v6 = vadd.f32 %v1313_v4, %v2143_v11  ;;  %v1315_v8 = vpop.f32.mrb[13].mxu1 }
 0x17a   :  { %v1275_v7 = vadd.f32 %v1274_v5, %v2143_v11  ;;  %v1276_v9 = vpop.f32.mrb[14].mxu0  ;;  %v1316_v12 = vadd.f32 %v1315_v8, %v2143_v11  ;;  %v1317_v13 = vpop.f32.mrb[14].mxu1 }
 0x17b   :  { %v1332_v10 = vmax.f32 %v1273_v3, 0.0  ;;  %v1277_v14 = vpop.f32.mrb[15].mxu0  ;;  %v1334_v15 = vmax.f32 %v1314_v6, 0.0  ;;  %v1318_v17 = vpop.f32.mrb[15].mxu1 }
 0x17c   :  { %v1333_v16 = vmax.f32 %v1275_v7, 0.0  ;;  %v1335_v18 = vmax.f32 %v1316_v12, 0.0 }
 0x17e   :  { %v1596_v19 = vpack.c.bf16 %v1333_v16, %v1332_v10  ;;  %v1597_v20 = vpack.c.bf16 %v1335_v18, %v1334_v15 }
 0x180   :  { %1406 = vst [vmem:[%s2188_s3 + $0x30] sm:$0xff] %v1596_v19  ;;  %1407 = vst [vmem:[%s2188_s3 + $0x38] sm:$0xff] %v1597_v20 }

// kernel: _lambda_.18
= control target key start
LH: loop header
LB: loop body
LE: loop exit
PB: predicated region body
PF: predicated region fallthrough
CT: control target
= control target key end

     0   :  { %v312_v1 = vmov 0   ;;  %vm142_vm0 = vcmask 654336   ;;  %s405_s1 = inlined_call_operand.vmem [shape: bf16[80,512], index: 1, kind: input, shape index: {}]   ;;  %s406_s2 = inlined_call_operand.vmem [shape: f32[8,1], index: 2, kind: input, shape index: {}]   ;;  %s407_s0 = inlined_call_operand.vmem [shape: bf16[8,80], index: 0, kind: input, shape index: {}]   ;;  %s408_s3 = inlined_call_operand.vmem [shape: bf16[8,512], index: 3, kind: output, shape index: {}]  }
   0x1   :  { %v282_v0 = vld [vmem:[%s405_s1 + $0x4] ss:$16 sps:$4 sm:$0xff]   ;;  %178 = vmatprep.mubr.bf16.mxu0 %v312_v1  ;;  %219 = vmatprep.mubr.bf16.mxu1 %v312_v1  ;;  %v284_v2 = vld [vmem:[%s405_s1 + $0xc] ss:$16 sps:$4 sm:$0xff]   ;;  %v286_v3 = vld [vmem:[%s405_s1] ss:$16 sps:$4 sm:$0xff]  }
   0x2   :  { %281 = vset.pattern.permute.xlu0 %v312_v1  ;;  %146 = vmatprep.subr.bf16.mxu0 %v282_v0  ;;  %v287_v4 = vld [vmem:[%s405_s1 + $0x8] ss:$16 sps:$4 sm:$0xff]   ;;  %v288_v5 = vld [vmem:[%s405_s1 + $0x24] ss:$16 sps:$4 sm:$0xff]   ;;  %v290_v6 = vld [vmem:[%s405_s1 + $0x2c] ss:$16 sps:$4 sm:$0xff]  }
   0x3   :  { %187 = vmatprep.subr.bf16.mxu1 %v284_v2  ;;  %147 = vmatpush1.bf16.msra.mxu0 %v286_v3  ;;  %v292_v7 = vld [vmem:[%s405_s1 + $0x20] ss:$16 sps:$4 sm:$0xff]   ;;  %v293_v8 = vld [vmem:[%s405_s1 + $0x28] ss:$16 sps:$4 sm:$0xff]   ;;  %v294_v9 = vld [vmem:[%s405_s1 + $0x44] ss:$16 sps:$4 sm:$0xff]  }
   0x4   :  { %188 = vmatpush1.bf16.msra.mxu1 %v287_v4  ;;  %148 = vmatprep.subr.bf16.mxu0 %v288_v5  ;;  %v296_v10 = vld [vmem:[%s405_s1 + $0x4c] ss:$16 sps:$4 sm:$0xff]   ;;  %v298_v11 = vld [vmem:[%s405_s1 + $0x40] ss:$16 sps:$4 sm:$0xff]   ;;  %v299_v12 = vld [vmem:[%s405_s1 + $0x48] ss:$16 sps:$4 sm:$0xff]  }
   0x5   :  { %189 = vmatprep.subr.bf16.mxu1 %v290_v6  ;;  %v300_v13 = vld [vmem:[%s405_s1 + $0x64] ss:$16 sps:$4 sm:$0xff]   ;;  %v302_v14 = vld [vmem:[%s405_s1 + $0x6c] ss:$16 sps:$4 sm:$0xff]   ;;  %v304_v15 = vld [vmem:[%s405_s1 + $0x60] ss:$16 sps:$4 sm:$0xff]  }
   0x6   :  { %v305_v16 = vld [vmem:[%s405_s1 + $0x68] ss:$16 sps:$4 sm:$0xff]   ;;  %v306_v17 = vld [vmem:[%s405_s1 + $0x84] ss:$16 sps:$4 sm:$0xff]   ;;  %v308_v18 = vld [vmem:[%s405_s1 + $0x8c] ss:$16 sps:$4 sm:$0xff]  }
   0x7   :  { %149 = vmatpush1.bf16.msra.mxu0 %v292_v7  ;;  %v36_v19 = vld [vmem:[%s406_s2] sm:$0xff]  ;;  %v311_v21 = vld [vmem:[%s405_s1 + $0x88] ss:$16 sps:$4 sm:$0xff]  }
   0x8   :  { %190 = vmatpush1.bf16.msra.mxu1 %v293_v8  ;;  %150 = vmatprep.subr.bf16.mxu0 %v294_v9  ;;  %v310_v20 = vld [vmem:[%s405_s1 + $0x80] ss:$16 sps:$4 sm:$0xff]  }
   0x9   :  { %191 = vmatprep.subr.bf16.mxu1 %v296_v10  ;;  %39 = vperm.xlu0 %281, %v36_v19   ;;  %v15_v22 = vld [vmem:[%s407_s0] sm:$0xf] }
   0xb   :  { %151 = vmatpush1.bf16.msra.mxu0 %v298_v11 }
   0xc   :  { %192 = vmatpush1.bf16.msra.mxu1 %v299_v12  ;;  %152 = vmatprep.subr.bf16.mxu0 %v300_v13 }
   0xd   :  { %193 = vmatprep.subr.bf16.mxu1 %v302_v14 }
   0xf   :  { %153 = vmatpush1.bf16.msra.mxu0 %v304_v15 }
  0x10   :  { %194 = vmatpush1.bf16.msra.mxu1 %v305_v16  ;;  %154 = vmatprep.subr.bf16.mxu0 %v306_v17 }
  0x11   :  { %195 = vmatprep.subr.bf16.mxu1 %v308_v18 }
  0x13   :  { %155 = vmatpush1.bf16.msra.mxu0 %v310_v20 }
  0x14   :  { %196 = vmatpush1.bf16.msra.mxu1 %v311_v21 }
  0x16   :  { %274 = vmatmul.mubr.msk.bf16.vlgmr.msra.gmra.mrb[0].mxu0 %vm142_vm0, %v15_v22 }
  0x17   :  { %275 = vmatmul.mubr.msk.bf16.vlgmr.msra.gmra.mrb[0].mxu1 %vm142_vm0, %v15_v22 }
  0x88   :  { %v40_v23 = vpop.permute.xlu0 %39 }
  0xe9   :  { %v180_v24 = vpop.f32.mrb[0].mxu0 }
  0xea   :  { %v221_v25 = vpop.f32.mrb[0].mxu1  ;;  %v181_v26 = vadd.f32 %v180_v24, %v40_v23  ;;  %v182_v28 = vpop.f32.mrb[1].mxu0 }
  0xeb   :  { %v222_v27 = vadd.f32 %v221_v25, %v40_v23  ;;  %v223_v29 = vpop.f32.mrb[1].mxu1  ;;  %v183_v30 = vadd.f32 %v182_v28, %v40_v23  ;;  %v184_v32 = vpop.f32.mrb[2].mxu0 }
  0xec   :  { %v224_v31 = vadd.f32 %v223_v29, %v40_v23  ;;  %v225_v33 = vpop.f32.mrb[2].mxu1  ;;  %v228_v34 = vmax.f32 %v181_v26, 0.0  ;;  %v185_v36 = vpop.f32.mrb[3].mxu0 }
  0xed   :  { %v230_v35 = vmax.f32 %v222_v27, 0.0  ;;  %v226_v37 = vpop.f32.mrb[3].mxu1  ;;  %v229_v38 = vmax.f32 %v183_v30, 0.0 }
  0xee   :  { %v231_v39 = vmax.f32 %v224_v31, 0.0 }
  0xef   :  { %v278_v40 = vpack.c.bf16 %v229_v38, %v228_v34 }
  0xf0   :  { %v279_v41 = vpack.c.bf16 %v231_v39, %v230_v35 }
  0xf1   :  { %248 = vst [vmem:[%s408_s3] sm:$0xff] %v278_v40 }
  0xf2   :  { %249 = vst [vmem:[%s408_s3 + $0x8] sm:$0xff] %v279_v41 }

// kernel: _lambda_.19
= control target key start
LH: loop header
LB: loop body
LE: loop exit
PB: predicated region body
PF: predicated region fallthrough
CT: control target
= control target key end

     0   :  { %v325_v1 = vmov 0   ;;  %vm145_vm0 = vcmask 654336   ;;  %s429_s1 = inlined_call_operand.vmem [shape: bf16[80,512], index: 1, kind: input, shape index: {}]   ;;  %s430_s2 = inlined_call_operand.vmem [shape: f32[8,1], index: 2, kind: input, shape index: {}]   ;;  %s431_s0 = inlined_call_operand.vmem [shape: bf16[8,80], index: 0, kind: input, shape index: {}]   ;;  %s432_s3 = inlined_call_operand.vmem [shape: bf16[8,512], index: 3, kind: input, shape index: {}]   ;;  %s433_s4 = inlined_call_operand.vmem [shape: bf16[8,512], index: 4, kind: output, shape index: {}]  }
   0x1   :  { %v295_v0 = vld [vmem:[%s429_s1 + $0x4] ss:$16 sps:$4 sm:$0xff]   ;;  %181 = vmatprep.mubr.bf16.mxu0 %v325_v1  ;;  %222 = vmatprep.mubr.bf16.mxu1 %v325_v1  ;;  %v297_v2 = vld [vmem:[%s429_s1 + $0xc] ss:$16 sps:$4 sm:$0xff]   ;;  %v299_v3 = vld [vmem:[%s429_s1] ss:$16 sps:$4 sm:$0xff]  }
   0x2   :  { %294 = vset.pattern.permute.xlu0 %v325_v1  ;;  %149 = vmatprep.subr.bf16.mxu0 %v295_v0  ;;  %v300_v4 = vld [vmem:[%s429_s1 + $0x8] ss:$16 sps:$4 sm:$0xff]   ;;  %v301_v5 = vld [vmem:[%s429_s1 + $0x24] ss:$16 sps:$4 sm:$0xff]   ;;  %v303_v6 = vld [vmem:[%s429_s1 + $0x2c] ss:$16 sps:$4 sm:$0xff]  }
   0x3   :  { %190 = vmatprep.subr.bf16.mxu1 %v297_v2  ;;  %150 = vmatpush1.bf16.msra.mxu0 %v299_v3  ;;  %v305_v7 = vld [vmem:[%s429_s1 + $0x20] ss:$16 sps:$4 sm:$0xff]   ;;  %v306_v8 = vld [vmem:[%s429_s1 + $0x28] ss:$16 sps:$4 sm:$0xff]   ;;  %v307_v9 = vld [vmem:[%s429_s1 + $0x44] ss:$16 sps:$4 sm:$0xff]  }
   0x4   :  { %191 = vmatpush1.bf16.msra.mxu1 %v300_v4  ;;  %151 = vmatprep.subr.bf16.mxu0 %v301_v5  ;;  %v309_v10 = vld [vmem:[%s429_s1 + $0x4c] ss:$16 sps:$4 sm:$0xff]   ;;  %v311_v11 = vld [vmem:[%s429_s1 + $0x40] ss:$16 sps:$4 sm:$0xff]   ;;  %v312_v12 = vld [vmem:[%s429_s1 + $0x48] ss:$16 sps:$4 sm:$0xff]  }
   0x5   :  { %192 = vmatprep.subr.bf16.mxu1 %v303_v6  ;;  %v313_v13 = vld [vmem:[%s429_s1 + $0x64] ss:$16 sps:$4 sm:$0xff]   ;;  %v315_v14 = vld [vmem:[%s429_s1 + $0x6c] ss:$16 sps:$4 sm:$0xff]   ;;  %v317_v15 = vld [vmem:[%s429_s1 + $0x60] ss:$16 sps:$4 sm:$0xff]  }
   0x6   :  { %v318_v16 = vld [vmem:[%s429_s1 + $0x68] ss:$16 sps:$4 sm:$0xff]   ;;  %v319_v17 = vld [vmem:[%s429_s1 + $0x84] ss:$16 sps:$4 sm:$0xff]   ;;  %v321_v18 = vld [vmem:[%s429_s1 + $0x8c] ss:$16 sps:$4 sm:$0xff]  }
   0x7   :  { %152 = vmatpush1.bf16.msra.mxu0 %v305_v7  ;;  %v39_v19 = vld [vmem:[%s430_s2] sm:$0xff]  ;;  %v324_v21 = vld [vmem:[%s429_s1 + $0x88] ss:$16 sps:$4 sm:$0xff]  }
   0x8   :  { %193 = vmatpush1.bf16.msra.mxu1 %v306_v8  ;;  %153 = vmatprep.subr.bf16.mxu0 %v307_v9  ;;  %v323_v20 = vld [vmem:[%s429_s1 + $0x80] ss:$16 sps:$4 sm:$0xff]   ;;  %v232_v24 = vld [vmem:[%s432_s3 + $0x8] sm:$0xff] }
   0x9   :  { %194 = vmatprep.subr.bf16.mxu1 %v309_v10  ;;  %42 = vperm.xlu0 %294, %v39_v19   ;;  %v18_v22 = vld [vmem:[%s431_s0] sm:$0xf]  ;;  %v235_v27 = vunpack.c.l.bf16 %v232_v24  ;;  %v236_v31 = vunpack.c.h.bf16 %v232_v24 }
   0xa   :  { %v231_v23 = vld [vmem:[%s432_s3] sm:$0xff] }
   0xb   :  { %154 = vmatpush1.bf16.msra.mxu0 %v311_v11  ;;  %v233_v26 = vunpack.c.l.bf16 %v231_v23  ;;  %v234_v30 = vunpack.c.h.bf16 %v231_v23 }
   0xc   :  { %195 = vmatpush1.bf16.msra.mxu1 %v312_v12  ;;  %155 = vmatprep.subr.bf16.mxu0 %v313_v13 }
   0xd   :  { %196 = vmatprep.subr.bf16.mxu1 %v315_v14 }
   0xf   :  { %156 = vmatpush1.bf16.msra.mxu0 %v317_v15 }
  0x10   :  { %197 = vmatpush1.bf16.msra.mxu1 %v318_v16  ;;  %157 = vmatprep.subr.bf16.mxu0 %v319_v17 }
  0x11   :  { %198 = vmatprep.subr.bf16.mxu1 %v321_v18 }
  0x13   :  { %158 = vmatpush1.bf16.msra.mxu0 %v323_v20 }
  0x14   :  { %199 = vmatpush1.bf16.msra.mxu1 %v324_v21 }
  0x16   :  { %287 = vmatmul.mubr.msk.bf16.vlgmr.msra.gmra.mrb[0].mxu0 %vm145_vm0, %v18_v22 }
  0x17   :  { %288 = vmatmul.mubr.msk.bf16.vlgmr.msra.gmra.mrb[0].mxu1 %vm145_vm0, %v18_v22 }
  0x88   :  { %v43_v25 = vpop.permute.xlu0 %42 }
  0xe9   :  { %v183_v28 = vpop.f32.mrb[0].mxu0 }
  0xea   :  { %v224_v29 = vpop.f32.mrb[0].mxu1  ;;  %v184_v32 = vadd.f32 %v183_v28, %v43_v25  ;;  %v185_v34 = vpop.f32.mrb[1].mxu0 }
  0xeb   :  { %v225_v33 = vadd.f32 %v224_v29, %v43_v25  ;;  %v226_v35 = vpop.f32.mrb[1].mxu1  ;;  %v186_v36 = vadd.f32 %v185_v34, %v43_v25  ;;  %v187_v38 = vpop.f32.mrb[2].mxu0 }
  0xec   :  { %v227_v37 = vadd.f32 %v226_v35, %v43_v25  ;;  %v228_v39 = vpop.f32.mrb[2].mxu1  ;;  %v237_v40 = vadd.f32 %v233_v26, %v184_v32  ;;  %v188_v42 = vpop.f32.mrb[3].mxu0 }
  0xed   :  { %v239_v41 = vadd.f32 %v235_v27, %v225_v33  ;;  %v229_v43 = vpop.f32.mrb[3].mxu1  ;;  %v238_v44 = vadd.f32 %v234_v30, %v186_v36 }
  0xee   :  { %v240_v45 = vadd.f32 %v236_v31, %v227_v37  ;;  %v241_v46 = vmax.f32 %v237_v40, 0.0 }
  0xef   :  { %v243_v47 = vmax.f32 %v239_v41, 0.0  ;;  %v242_v48 = vmax.f32 %v238_v44, 0.0 }
  0xf0   :  { %v244_v49 = vmax.f32 %v240_v45, 0.0 }
  0xf1   :  { %v291_v50 = vpack.c.bf16 %v242_v48, %v241_v46 }
  0xf2   :  { %v292_v51 = vpack.c.bf16 %v244_v49, %v243_v47 }
  0xf3   :  { %261 = vst [vmem:[%s433_s4] sm:$0xff] %v291_v50 }
  0xf4   :  { %262 = vst [vmem:[%s433_s4 + $0x8] sm:$0xff] %v292_v51 }

// kernel: _lambda_.22
= control target key start
LH: loop header
LB: loop body
LE: loop exit
PB: predicated region body
PF: predicated region fallthrough
CT: control target
= control target key end

     0   :  { %v249_v1 = vmov 0   ;;  %vm93_vm0 = vcmask 654336   ;;  %s311_s1 = inlined_call_operand.vmem [shape: bf16[80,128], index: 1, kind: input, shape index: {}]   ;;  %s312_s0 = inlined_call_operand.vmem [shape: bf16[32,80], index: 0, kind: input, shape index: {}]   ;;  %s313_s2 = inlined_call_operand.vmem [shape: f32[32,1], index: 2, kind: input, shape index: {}]   ;;  %s314_s3 = inlined_call_operand.vmem [shape: bf16[32,128], index: 3, kind: output, shape index: {}]  }
   0x1   :  { %v242_v0 = vld [vmem:[%s311_s1] sm:$0xff]   ;;  %240 = vset.pattern.permute.xlu0 %v249_v1  ;;  %241 = vset.pattern.permute.xlu1 %v249_v1  ;;  %v243_v2 = vld [vmem:[%s311_s1 + $0x8] sm:$0xff]   ;;  %v244_v3 = vld [vmem:[%s311_s1 + $0x10] sm:$0xff]  }
   0x2   :  { %225 = vmatprep.subr.bf16.mxu0 %v242_v0  ;;  %v247_v4 = vld [vmem:[%s312_s0] sm:$0xff]   ;;  %v31_v6 = vld [vmem:[%s313_s2 + $0x10] sm:$0xff]  ;;  %v245_v7 = vld [vmem:[%s311_s1 + $0x18] sm:$0xff]  }
   0x3   :  { %226 = vmatpush3.bf16.msra.mxu0 %v242_v0  ;;  %235 = vmatprep.mubr.msk.bf16.mxu0 %vm93_vm0, %v247_v4  ;;  %v29_v5 = vld [vmem:[%s313_s2] sm:$0xff]  ;;  %v30_v8 = vld [vmem:[%s313_s2 + $0x8] sm:$0xff]  ;;  %v32_v9 = vld [vmem:[%s313_s2 + $0x18] sm:$0xff] }
   0x4   :  { %227 = vmatprep.subr.bf16.mxu0 %v243_v2  ;;  %35 = vperm.xlu0 %240, %v29_v5   ;;  %v246_v10 = vld [vmem:[%s311_s1 + $0x20] sm:$0xff]   ;;  %v248_v11 = vld [vmem:[%s312_s0 + $0x8] sm:$0xff]  }
   0x5   :  { %45 = vperm.xlu1 %241, %v31_v6  }
   0x7   :  { %228 = vmatpush3.bf16.msra.mxu0 %v243_v2 }
   0x8   :  { %229 = vmatprep.subr.bf16.mxu0 %v244_v3  ;;  %40 = vperm.xlu0 %240, %v30_v8  }
   0x9   :  { %50 = vperm.xlu1 %241, %v32_v9  }
   0xb   :  { %230 = vmatpush3.bf16.msra.mxu0 %v244_v3 }
   0xc   :  { %231 = vmatprep.subr.bf16.mxu0 %v245_v7 }
   0xf   :  { %232 = vmatpush3.bf16.msra.mxu0 %v245_v7 }
  0x10   :  { %233 = vmatprep.subr.bf16.mxu0 %v246_v10 }
  0x13   :  { %234 = vmatpush3.bf16.msra.mxu0 %v246_v10 }
  0x16   :  { %236 = vmatmul.mubr.msk.bf16.vlgmr.msra.gmra.mrb[0].mxu0 %vm93_vm0, %v248_v11 }
  0x83   :  { %v36_v13 = vpop.permute.xlu0 %35 }
  0x84   :  { %v46_v12 = vpop.permute.xlu1 %45 }
  0x87   :  { %v41_v19 = vpop.permute.xlu0 %40 }
  0x88   :  { %v51_v15 = vpop.permute.xlu1 %50 }
  0xe9   :  { %v237_v14 = vpop.f32.mrb[0].mxu0 }
  0xea   :  { %v134_v16 = vpop.f32.mrb[1].mxu0  ;;  %v143_v20 = vadd.f32 %v237_v14, %v46_v12 }
  0xeb   :  { %v135_v17 = vadd.f32 %v134_v16, %v36_v13  ;;  %v238_v18 = vpop.f32.mrb[2].mxu0 }
  0xec   :  { %v146_v21 = vadd.f32 %v238_v18, %v51_v15  ;;  %v137_v22 = vpop.f32.mrb[3].mxu0 }
  0xed   :  { %v138_v23 = vadd.f32 %v137_v22, %v41_v19  ;;  %v158_v25 = vmax.f32 %v135_v17, 0.0 }
  0xee   :  { %v215_v24 = vpack.c.bf16 %v146_v21, %v143_v20 }
  0xef   :  { %v159_v26 = vmax.f32 %v138_v23, 0.0 }
  0xf0   :  { %217 = vst [vmem:[%s314_s3 + $0x8] sm:$0xff] %v215_v24  }
  0xf1   :  { %v210_v27 = vpack.c.bf16 %v159_v26, %v158_v25 }
  0xf3   :  { %211 = vst [vmem:[%s314_s3] sm:$0xff] %v210_v27  }

// kernel: _lambda_.23
= control target key start
LH: loop header
LB: loop body
LE: loop exit
PB: predicated region body
PF: predicated region fallthrough
CT: control target
= control target key end

     0   :  { %v219_v0 = vmov 0   ;;  %vm113_vm0 = vcmask 130048   ;;  %s290_s1 = inlined_call_operand.vmem [shape: bf16[144,128], index: 1, kind: input, shape index: {}]   ;;  %s291_s0 = inlined_call_operand.vmem [shape: bf16[16,144], index: 0, kind: input, shape index: {}]   ;;  %s292_s2 = inlined_call_operand.vmem [shape: f32[16,1], index: 2, kind: input, shape index: {}]   ;;  %s293_s3 = inlined_call_operand.vmem [shape: bf16[16,128], index: 3, kind: input, shape index: {}]   ;;  %s294_s4 = inlined_call_operand.vmem [shape: bf16[16,128], index: 4, kind: output, shape index: {}]  }
   0x1   :  { %117 = vmatprep.subr.bf16.mxu0 %v219_v0  ;;  %v207_v1 = vld [vmem:[%s290_s1] sm:$0xff]   ;;  %206 = vset.pattern.permute.xlu0 %v219_v0  ;;  %v208_v2 = vld [vmem:[%s290_s1 + $0x8] sm:$0xff]   ;;  %v209_v3 = vld [vmem:[%s290_s1 + $0x10] sm:$0xff]  }
   0x2   :  { %118 = vmatpush1.bf16.msra.mxu0 %v207_v1  ;;  %v210_v4 = vld [vmem:[%s290_s1 + $0x18] sm:$0xff]   ;;  %v218_v5 = vld [vmem:[%s291_s0 + $0x4] ss:$8 sps:$4 sm:$0xff]   ;;  %v213_v10 = vld [vmem:[%s290_s1 + $0x30] sm:$0xff]  }
   0x3   :  { %119 = vmatprep.subr.bf16.mxu0 %v219_v0  ;;  %v38_v6 = vld [vmem:[%s292_s2] sm:$0xff]  ;;  %191 = vmatprep.mubr.msk.bf16.mxu0 %vm113_vm0, %v218_v5  ;;  %v39_v7 = vld [vmem:[%s292_s2 + $0x8] sm:$0xff]  ;;  %v214_v11 = vld [vmem:[%s290_s1 + $0x38] sm:$0xff]  }
   0x4   :  { %42 = vperm.xlu0 %206, %v38_v6   ;;  %v211_v8 = vld [vmem:[%s290_s1 + $0x20] sm:$0xff]   ;;  %v212_v9 = vld [vmem:[%s290_s1 + $0x28] sm:$0xff]  }
   0x5   :  { %v215_v12 = vld [vmem:[%s290_s1 + $0x40] sm:$0xff]  }
   0x6   :  { %120 = vmatpush1.bf16.msra.mxu0 %v208_v2  ;;  %v216_v13 = vld [vmem:[%s291_s0] ss:$8 sps:$4 sm:$0xff]  }
   0x7   :  { %121 = vmatprep.subr.bf16.mxu0 %v219_v0  ;;  %v197_v15 = vld [vmem:[%s293_s3] sm:$0xff]  }
   0x8   :  { %47 = vperm.xlu0 %206, %v39_v7   ;;  %v198_v16 = vunpack.c.l.bf16 %v197_v15  ;;  %v199_v20 = vunpack.c.h.bf16 %v197_v15 }
   0xa   :  { %122 = vmatpush1.bf16.msra.mxu0 %v209_v3 }
   0xb   :  { %123 = vmatprep.subr.bf16.mxu0 %v219_v0 }
   0xe   :  { %124 = vmatpush1.bf16.msra.mxu0 %v210_v4 }
   0xf   :  { %125 = vmatprep.subr.bf16.mxu0 %v219_v0 }
  0x12   :  { %126 = vmatpush1.bf16.msra.mxu0 %v211_v8 }
  0x13   :  { %127 = vmatprep.subr.bf16.mxu0 %v219_v0 }
  0x16   :  { %128 = vmatpush1.bf16.msra.mxu0 %v212_v9 }
  0x17   :  { %129 = vmatprep.subr.bf16.mxu0 %v219_v0 }
  0x1a   :  { %130 = vmatpush1.bf16.msra.mxu0 %v213_v10 }
  0x1b   :  { %131 = vmatprep.subr.bf16.mxu0 %v219_v0 }
  0x1e   :  { %132 = vmatpush1.bf16.msra.mxu0 %v214_v11 }
  0x1f   :  { %133 = vmatprep.subr.bf16.mxu0 %v219_v0 }
  0x22   :  { %134 = vmatpush1.bf16.msra.mxu0 %v215_v12 }
  0x25   :  { %150 = vmatmul.mubr.bf16.vlgmr.msra.gmra.mrb[0].mxu0 %v216_v13 }
  0x83   :  { %v43_v14 = vpop.permute.xlu0 %42 }
  0x87   :  { %v48_v21 = vpop.permute.xlu0 %47 }
  0xf8   :  { %v151_v17 = vpop.f32.mrb[0].mxu0 }
  0xf9   :  { %v152_v18 = vadd.f32 %v151_v17, %v43_v14  ;;  %v153_v19 = vpop.f32.mrb[1].mxu0 }
  0xfa   :  { %v154_v22 = vpop.f32.mrb[2].mxu0 }
  0xfb   :  { %v162_v23 = vadd.f32 %v198_v16, %v152_v18  ;;  %v155_v24 = vadd.f32 %v154_v22, %v48_v21  ;;  %v156_v25 = vpop.f32.mrb[3].mxu0 }
  0xfd   :  { %v163_v26 = vadd.f32 %v199_v20, %v155_v24  ;;  %v164_v27 = vmax.f32 %v162_v23, 0.0 }
  0xff   :  { %v165_v28 = vmax.f32 %v163_v26, 0.0 }
 0x101   :  { %v203_v29 = vpack.c.bf16 %v165_v28, %v164_v27 }
 0x103   :  { %204 = vst [vmem:[%s294_s4] sm:$0xff] %v203_v29  }

// kernel: _lambda_.24
= control target key start
LH: loop header
LB: loop body
LE: loop exit
PB: predicated region body
PF: predicated region fallthrough
CT: control target
= control target key end

     0   :  { %v206_v0 = vmov 0   ;;  %vm110_vm0 = vcmask 130048   ;;  %s269_s1 = inlined_call_operand.vmem [shape: bf16[144,128], index: 1, kind: input, shape index: {}]   ;;  %s270_s0 = inlined_call_operand.vmem [shape: bf16[16,144], index: 0, kind: input, shape index: {}]   ;;  %s271_s2 = inlined_call_operand.vmem [shape: f32[16,1], index: 2, kind: input, shape index: {}]   ;;  %s272_s3 = inlined_call_operand.vmem [shape: bf16[16,128], index: 3, kind: output, shape index: {}]  }
   0x1   :  { %114 = vmatprep.subr.bf16.mxu0 %v206_v0  ;;  %v194_v1 = vld [vmem:[%s269_s1] sm:$0xff]   ;;  %193 = vset.pattern.permute.xlu0 %v206_v0  ;;  %v195_v2 = vld [vmem:[%s269_s1 + $0x8] sm:$0xff]   ;;  %v196_v3 = vld [vmem:[%s269_s1 + $0x10] sm:$0xff]  }
   0x2   :  { %115 = vmatpush1.bf16.msra.mxu0 %v194_v1  ;;  %v197_v4 = vld [vmem:[%s269_s1 + $0x18] sm:$0xff]   ;;  %v205_v5 = vld [vmem:[%s270_s0 + $0x4] ss:$8 sps:$4 sm:$0xff]   ;;  %v200_v10 = vld [vmem:[%s269_s1 + $0x30] sm:$0xff]  }
   0x3   :  { %116 = vmatprep.subr.bf16.mxu0 %v206_v0  ;;  %v35_v6 = vld [vmem:[%s271_s2] sm:$0xff]  ;;  %182 = vmatprep.mubr.msk.bf16.mxu0 %vm110_vm0, %v205_v5  ;;  %v36_v7 = vld [vmem:[%s271_s2 + $0x8] sm:$0xff]  ;;  %v201_v11 = vld [vmem:[%s269_s1 + $0x38] sm:$0xff]  }
   0x4   :  { %39 = vperm.xlu0 %193, %v35_v6   ;;  %v198_v8 = vld [vmem:[%s269_s1 + $0x20] sm:$0xff]   ;;  %v199_v9 = vld [vmem:[%s269_s1 + $0x28] sm:$0xff]  }
   0x5   :  { %v202_v12 = vld [vmem:[%s269_s1 + $0x40] sm:$0xff]  }
   0x6   :  { %117 = vmatpush1.bf16.msra.mxu0 %v195_v2  ;;  %v203_v13 = vld [vmem:[%s270_s0] ss:$8 sps:$4 sm:$0xff]  }
   0x7   :  { %118 = vmatprep.subr.bf16.mxu0 %v206_v0 }
   0x8   :  { %44 = vperm.xlu0 %193, %v36_v7  }
   0xa   :  { %119 = vmatpush1.bf16.msra.mxu0 %v196_v3 }
   0xb   :  { %120 = vmatprep.subr.bf16.mxu0 %v206_v0 }
   0xe   :  { %121 = vmatpush1.bf16.msra.mxu0 %v197_v4 }
   0xf   :  { %122 = vmatprep.subr.bf16.mxu0 %v206_v0 }
  0x12   :  { %123 = vmatpush1.bf16.msra.mxu0 %v198_v8 }
  0x13   :  { %124 = vmatprep.subr.bf16.mxu0 %v206_v0 }
  0x16   :  { %125 = vmatpush1.bf16.msra.mxu0 %v199_v9 }
  0x17   :  { %126 = vmatprep.subr.bf16.mxu0 %v206_v0 }
  0x1a   :  { %127 = vmatpush1.bf16.msra.mxu0 %v200_v10 }
  0x1b   :  { %128 = vmatprep.subr.bf16.mxu0 %v206_v0 }
  0x1e   :  { %129 = vmatpush1.bf16.msra.mxu0 %v201_v11 }
  0x1f   :  { %130 = vmatprep.subr.bf16.mxu0 %v206_v0 }
  0x22   :  { %131 = vmatpush1.bf16.msra.mxu0 %v202_v12 }
  0x25   :  { %147 = vmatmul.mubr.bf16.vlgmr.msra.gmra.mrb[0].mxu0 %v203_v13 }
  0x83   :  { %v40_v14 = vpop.permute.xlu0 %39 }
  0x87   :  { %v45_v18 = vpop.permute.xlu0 %44 }
  0xf8   :  { %v148_v15 = vpop.f32.mrb[0].mxu0 }
  0xf9   :  { %v149_v16 = vadd.f32 %v148_v15, %v40_v14  ;;  %v150_v17 = vpop.f32.mrb[1].mxu0 }
  0xfa   :  { %v151_v19 = vpop.f32.mrb[2].mxu0 }
  0xfb   :  { %v152_v20 = vadd.f32 %v151_v19, %v45_v18  ;;  %v153_v21 = vpop.f32.mrb[3].mxu0  ;;  %v155_v22 = vmax.f32 %v149_v16, 0.0 }
  0xfd   :  { %v156_v23 = vmax.f32 %v152_v20, 0.0 }
  0xff   :  { %v190_v24 = vpack.c.bf16 %v156_v23, %v155_v22 }
 0x101   :  { %191 = vst [vmem:[%s272_s3] sm:$0xff] %v190_v24  }

// kernel: _lambda_.26
= control target key start
LH: loop header
LB: loop body
LE: loop exit
PB: predicated region body
PF: predicated region fallthrough
CT: control target
= control target key end

     0   :  { %v414_v0 = vmov 0   ;;  %vm179_vm0 = vcmask 130048   ;;  %vm322_vm1 = vcmask 257024   ;;  %s566_s1 = inlined_call_operand.vmem [shape: bf16[144,32], index: 1, kind: input, shape index: {}]   ;;  %s567_s0 = inlined_call_operand.vmem [shape: bf16[64,144], index: 0, kind: input, shape index: {}]   ;;  %s568_s2 = inlined_call_operand.vmem [shape: f32[64,1], index: 2, kind: input, shape index: {}]   ;;  %s569_s3 = inlined_call_operand.vmem [shape: bf16[64,32], index: 3, kind: output, shape index: {}]  }
   0x1   :  { %192 = vmatprep.subr.bf16.mxu0 %v414_v0  ;;  %372 = vmatprep.subr.bf16.mxu1 %v414_v0  ;;  %v393_v1 = vld [vmem:[%s566_s1] sm:$0xff]   ;;  %v394_v2 = vld [vmem:[%s566_s1 + $0x8] sm:$0xff]   ;;  %v395_v3 = vld [vmem:[%s566_s1 + $0x10] sm:$0xff]  }
   0x2   :  { %392 = vset.pattern.permute.xlu1 %v414_v0  ;;  %391 = vset.pattern.permute.xlu0 %v414_v0  ;;  %v396_v4 = vld [vmem:[%s566_s1 + $0x18] sm:$0xff]   ;;  %v404_v5 = vld [vmem:[%s567_s0 + $0x4] ss:$8 sps:$4 sm:$0xff]   ;;  %v43_v8 = vld [vmem:[%s568_s2 + $0x10] sm:$0xff] }
   0x3   :  { %193 = vmatpush1.bf16.msra.mxu0 %v393_v1  ;;  %381 = vmatpush1.bf16.msra.mxu1 %v393_v1  ;;  %v407_v6 = vld [vmem:[%s567_s0 + $0x24] ss:$8 sps:$4 sm:$0xff]   ;;  %v44_v10 = vld [vmem:[%s568_s2 + $0x18] sm:$0xff]  ;;  %v399_v15 = vld [vmem:[%s566_s1 + $0x30] sm:$0xff]  }
   0x4   :  { %194 = vmatprep.subr.bf16.mxu0 %v414_v0  ;;  %373 = vmatprep.subr.bf16.mxu1 %v414_v0  ;;  %v397_v7 = vld [vmem:[%s566_s1 + $0x20] sm:$0xff]   ;;  %v42_v11 = vld [vmem:[%s568_s2 + $0x8] sm:$0xff]  ;;  %v48_v16 = vld [vmem:[%s568_s2 + $0x38] sm:$0xff] }
   0x5   :  { %352 = vmatprep.mubr.msk.bf16.mxu0 %vm179_vm0, %v404_v5  ;;  %354 = vmatprep.mubr.msk.bf16.mxu1 %vm179_vm0, %v407_v6  ;;  %v41_v9 = vld [vmem:[%s568_s2] sm:$0xff]  ;;  %v398_v12 = vld [vmem:[%s566_s1 + $0x28] sm:$0xff]   ;;  %v47_v17 = vld [vmem:[%s568_s2 + $0x30] sm:$0xff] }
   0x6   :  { %61 = vperm.xlu1 %392, %v43_v8   ;;  %51 = vperm.xlu0 %391, %v41_v9   ;;  %v46_v13 = vld [vmem:[%s568_s2 + $0x28] sm:$0xff]  ;;  %v45_v14 = vld [vmem:[%s568_s2 + $0x20] sm:$0xff]  ;;  %v400_v18 = vld [vmem:[%s566_s1 + $0x38] sm:$0xff]  }
   0x7   :  { %195 = vmatpush1.bf16.msra.mxu0 %v394_v2  ;;  %382 = vmatpush1.bf16.msra.mxu1 %v394_v2  ;;  %v401_v19 = vld [vmem:[%s566_s1 + $0x40] sm:$0xff]   ;;  %v408_v22 = vld [vmem:[%s567_s0 + $0x14] ss:$8 sps:$4 sm:$0xff]   ;;  %v412_v24 = vld [vmem:[%s567_s0 + $0x10] ss:$8 sps:$4 sm:$0xff]  }
   0x8   :  { %196 = vmatprep.subr.bf16.mxu0 %v414_v0  ;;  %374 = vmatprep.subr.bf16.mxu1 %v414_v0  ;;  %v402_v20 = vld [vmem:[%s567_s0] ss:$8 sps:$4 sm:$0xff]   ;;  %v410_v23 = vld [vmem:[%s567_s0 + $0x34] ss:$8 sps:$4 sm:$0xff]   ;;  %v413_v25 = vld [vmem:[%s567_s0 + $0x30] ss:$8 sps:$4 sm:$0xff]  }
   0x9   :  { %v405_v21 = vld [vmem:[%s567_s0 + $0x20] ss:$8 sps:$4 sm:$0xff]  }
   0xa   :  { %66 = vperm.xlu1 %392, %v44_v10   ;;  %56 = vperm.xlu0 %391, %v42_v11  }
   0xb   :  { %197 = vmatpush1.bf16.msra.mxu0 %v395_v3  ;;  %383 = vmatpush1.bf16.msra.mxu1 %v395_v3 }
   0xc   :  { %198 = vmatprep.subr.bf16.mxu0 %v414_v0  ;;  %375 = vmatprep.subr.bf16.mxu1 %v414_v0 }
   0xe   :  { %76 = vperm.xlu1 %392, %v46_v13   ;;  %71 = vperm.xlu0 %391, %v45_v14  }
   0xf   :  { %199 = vmatpush1.bf16.msra.mxu0 %v396_v4  ;;  %384 = vmatpush1.bf16.msra.mxu1 %v396_v4 }
  0x10   :  { %200 = vmatprep.subr.bf16.mxu0 %v414_v0  ;;  %376 = vmatprep.subr.bf16.mxu1 %v414_v0 }
  0x12   :  { %86 = vperm.xlu1 %392, %v48_v16   ;;  %81 = vperm.xlu0 %391, %v47_v17  }
  0x13   :  { %201 = vmatpush1.bf16.msra.mxu0 %v397_v7  ;;  %385 = vmatpush1.bf16.msra.mxu1 %v397_v7 }
  0x14   :  { %202 = vmatprep.subr.bf16.mxu0 %v414_v0  ;;  %377 = vmatprep.subr.bf16.mxu1 %v414_v0 }
  0x17   :  { %203 = vmatpush1.bf16.msra.mxu0 %v398_v12  ;;  %386 = vmatpush1.bf16.msra.mxu1 %v398_v12 }
  0x18   :  { %204 = vmatprep.subr.bf16.mxu0 %v414_v0  ;;  %378 = vmatprep.subr.bf16.mxu1 %v414_v0 }
  0x1b   :  { %205 = vmatpush1.bf16.msra.mxu0 %v399_v15  ;;  %387 = vmatpush1.bf16.msra.mxu1 %v399_v15 }
  0x1c   :  { %206 = vmatprep.subr.bf16.mxu0 %v414_v0  ;;  %379 = vmatprep.subr.bf16.mxu1 %v414_v0 }
  0x1f   :  { %207 = vmatpush1.bf16.msra.mxu0 %v400_v18  ;;  %388 = vmatpush1.bf16.msra.mxu1 %v400_v18 }
  0x20   :  { %208 = vmatprep.subr.bf16.mxu0 %v414_v0  ;;  %380 = vmatprep.subr.bf16.mxu1 %v414_v0 }
  0x23   :  { %209 = vmatpush1.bf16.msra.mxu0 %v401_v19  ;;  %389 = vmatpush1.bf16.msra.mxu1 %v401_v19 }
  0x26   :  { %225 = vmatmul.mubr.bf16.vlgmr.msra.gmra.mrb[0].mxu0 %v402_v20  ;;  %241 = vmatmul.mubr.bf16.vlgmr.msra.gmra.mrb[0].mxu1 %v405_v21 }
  0x27   :  { %353 = vmatprep.mubr.msk.bf16.mxu0 %vm179_vm0, %v408_v22  ;;  %355 = vmatprep.mubr.msk.bf16.mxu1 %vm179_vm0, %v410_v23 }
  0x2e   :  { %233 = vmatmul.mubr.bf16.gmra.mrb[4].mxu0 %v412_v24  ;;  %249 = vmatmul.mubr.bf16.gmra.mrb[4].mxu1 %v413_v25 }
  0x85   :  { %v62_v26 = vpop.permute.xlu1 %61  ;;  %v52_v27 = vpop.permute.xlu0 %51 }
  0x89   :  { %v67_v28 = vpop.permute.xlu1 %66  ;;  %v57_v29 = vpop.permute.xlu0 %56 }
  0x8d   :  { %v77_v30 = vpop.permute.xlu1 %76  ;;  %v72_v31 = vpop.permute.xlu0 %71 }
  0x91   :  { %v87_v49 = vpop.permute.xlu1 %86  ;;  %v82_v50 = vpop.permute.xlu0 %81 }
  0xf9   :  { %v226_v32 = vpop.f32.mrb[0].mxu0  ;;  %v242_v33 = vpop.f32.mrb[0].mxu1 }
  0xfa   :  { %v227_v34 = vadd.f32 %v226_v32, %v52_v27  ;;  %v243_v35 = vadd.f32 %v242_v33, %v72_v31  ;;  %v228_v36 = vpop.f32.mrb[1].mxu0  ;;  %v244_v37 = vpop.f32.mrb[1].mxu1 }
  0xfb   :  { %v229_v38 = vpop.f32.mrb[2].mxu0  ;;  %v245_v39 = vpop.f32.mrb[2].mxu1 }
  0xfc   :  { %v274_v40 = vmax.f32 %v227_v34, 0.0  ;;  %v368_v41 = vpack.c.bf16 %v243_v35, %v243_v35  ;;  %v230_v42 = vadd.f32 %v229_v38, %v57_v29  ;;  %v246_v43 = vadd.f32 %v245_v39, %v77_v30  ;;  %v231_v44 = vpop.f32.mrb[3].mxu0  ;;  %v247_v45 = vpop.f32.mrb[3].mxu1 }
  0xfe   :  { %v364_v46 = vpack.c.bf16 %v274_v40, %v274_v40  ;;  %327 = vst.msk [vmem:[%s569_s3 + $0x10] sm:$0xf] %vm322_vm1, %v368_v41  ;;  %v275_v47 = vmax.f32 %v230_v42, 0.0  ;;  %v369_v48 = vpack.c.bf16 %v246_v43, %v246_v43 }
 0x100   :  { %323 = vst.msk [vmem:[%s569_s3] sm:$0xf] %vm322_vm1, %v364_v46  ;;  %v365_v51 = vpack.c.bf16 %v275_v47, %v275_v47  ;;  %328 = vst.msk [vmem:[%s569_s3 + $0x14] sm:$0xf] %vm322_vm1, %v369_v48 }
 0x101   :  { %v234_v52 = vpop.f32.mrb[4].mxu0  ;;  %v250_v53 = vpop.f32.mrb[4].mxu1 }
 0x102   :  { %324 = vst.msk [vmem:[%s569_s3 + $0x4] sm:$0xf] %vm322_vm1, %v365_v51  ;;  %v235_v54 = vadd.f32 %v234_v52, %v62_v26  ;;  %v251_v55 = vadd.f32 %v250_v53, %v82_v50  ;;  %v236_v56 = vpop.f32.mrb[5].mxu0  ;;  %v252_v57 = vpop.f32.mrb[5].mxu1 }
 0x103   :  { %v237_v58 = vpop.f32.mrb[6].mxu0  ;;  %v253_v59 = vpop.f32.mrb[6].mxu1 }
 0x104   :  { %v276_v60 = vmax.f32 %v235_v54, 0.0  ;;  %v370_v61 = vpack.c.bf16 %v251_v55, %v251_v55  ;;  %v238_v62 = vadd.f32 %v237_v58, %v67_v28  ;;  %v254_v63 = vadd.f32 %v253_v59, %v87_v49  ;;  %v239_v0 = vpop.f32.mrb[7].mxu0  ;;  %v255_v1 = vpop.f32.mrb[7].mxu1 }
 0x106   :  { %v366_v2 = vpack.c.bf16 %v276_v60, %v276_v60  ;;  %329 = vst.msk [vmem:[%s569_s3 + $0x18] sm:$0xf] %vm322_vm1, %v370_v61  ;;  %v277_v3 = vmax.f32 %v238_v62, 0.0  ;;  %v371_v4 = vpack.c.bf16 %v254_v63, %v254_v63 }
 0x108   :  { %325 = vst.msk [vmem:[%s569_s3 + $0x8] sm:$0xf] %vm322_vm1, %v366_v2  ;;  %v367_v5 = vpack.c.bf16 %v277_v3, %v277_v3  ;;  %330 = vst.msk [vmem:[%s569_s3 + $0x1c] sm:$0xf] %vm322_vm1, %v371_v4 }
 0x10a   :  { %326 = vst.msk [vmem:[%s569_s3 + $0xc] sm:$0xf] %vm322_vm1, %v367_v5 }

// kernel: _lambda_.28
= control target key start
LH: loop header
LB: loop body
LE: loop exit
PB: predicated region body
PF: predicated region fallthrough
CT: control target
= control target key end

     0   :  { %v458_v1 = vmov 0   ;;  %vm221_vm0 = vcmask 261120   ;;  %vm346_vm1 = vcmask 257024   ;;  %s581_s1 = inlined_call_operand.vmem [shape: bf16[288,32], index: 1, kind: input, shape index: {}]   ;;  %s582_s0 = inlined_call_operand.vmem [shape: bf16[32,288], index: 0, kind: input, shape index: {}]   ;;  %s583_s2 = inlined_call_operand.vmem [shape: f32[32,1], index: 2, kind: input, shape index: {}]   ;;  %s584_s3 = inlined_call_operand.vmem [shape: bf16[32,32], index: 3, kind: output, shape index: {}]  }
   0x1   :  { %v432_v0 = vld [vmem:[%s581_s1 + $0x40] sm:$0xff]   ;;  %430 = vset.pattern.permute.xlu0 %v458_v1  ;;  %431 = vset.pattern.permute.xlu1 %v458_v1  ;;  %v434_v3 = vld [vmem:[%s581_s1 + $0x48] sm:$0xff]   ;;  %v436_v5 = vld [vmem:[%s581_s1 + $0x50] sm:$0xff]  }
   0x2   :  { %v433_v2 = vld [vmem:[%s581_s1] sm:$0xff]   ;;  %389 = vmatprep.subr.bf16.mxu0 %v432_v0  ;;  %v435_v4 = vld [vmem:[%s581_s1 + $0x8] sm:$0xff]   ;;  %v437_v6 = vld [vmem:[%s581_s1 + $0x10] sm:$0xff]  }
   0x3   :  { %390 = vmatpush3.bf16.msra.mxu0 %v433_v2  ;;  %v438_v7 = vld [vmem:[%s581_s1 + $0x58] sm:$0xff]   ;;  %v440_v9 = vld [vmem:[%s581_s1 + $0x60] sm:$0xff]   ;;  %v442_v12 = vld [vmem:[%s581_s1 + $0x68] sm:$0xff]  }
   0x4   :  { %391 = vmatprep.subr.bf16.mxu0 %v434_v3  ;;  %v439_v8 = vld [vmem:[%s581_s1 + $0x18] sm:$0xff]   ;;  %v441_v10 = vld [vmem:[%s581_s1 + $0x20] sm:$0xff]   ;;  %v443_v13 = vld [vmem:[%s581_s1 + $0x28] sm:$0xff]  }
   0x5   :  { %v447_v11 = vld [vmem:[%s581_s1 + $0x80] sm:$0xff]   ;;  %v444_v14 = vld [vmem:[%s581_s1 + $0x70] sm:$0xff]   ;;  %v452_v16 = vld [vmem:[%s581_s1 + $0x88] sm:$0xff]  }
   0x6   :  { %421 = vmatprep.subr.bf16.mxu1 %v447_v11  ;;  %v451_v15 = vld [vmem:[%s582_s0 + $0x4] ss:$12 sps:$4 sm:$0xff]   ;;  %v453_v17 = vld [vmem:[%s582_s0 + $0x8] ss:$12 sps:$4 sm:$0xff]   ;;  %v454_v18 = vld [vmem:[%s582_s0 + $0x20] ss:$12 sps:$4 sm:$0xff]  }
   0x7   :  { %392 = vmatpush3.bf16.msra.mxu0 %v435_v4  ;;  %422 = vmatpush3.bf16.msra.mxu1 %v447_v11  ;;  %v59_v19 = vld [vmem:[%s583_s2] sm:$0xff]  ;;  %v445_v20 = vld [vmem:[%s581_s1 + $0x30] sm:$0xff]   ;;  %v446_v22 = vld [vmem:[%s581_s1 + $0x78] sm:$0xff]  }
   0x8   :  { %393 = vmatprep.subr.bf16.mxu0 %v436_v5  ;;  %260 = vmatprep.mubr.bf16.mxu0 %v451_v15  ;;  %v61_v21 = vld [vmem:[%s583_s2 + $0x10] sm:$0xff]  ;;  %v60_v23 = vld [vmem:[%s583_s2 + $0x8] sm:$0xff]  ;;  %v62_v24 = vld [vmem:[%s583_s2 + $0x18] sm:$0xff] }
   0x9   :  { %423 = vmatprep.subr.bf16.mxu1 %v452_v16  ;;  %425 = vmatprep.mubr.msk.bf16.mxu1 %vm221_vm0, %v453_v17  ;;  %v448_v25 = vld [vmem:[%s581_s1 + $0x38] sm:$0xff]   ;;  %v449_v26 = vld [vmem:[%s582_s0] ss:$12 sps:$4 sm:$0xff]  }
   0xa   :  { %65 = vperm.xlu0 %430, %v59_v19   ;;  %75 = vperm.xlu1 %431, %v61_v21   ;;  %v455_v27 = vld [vmem:[%s582_s0 + $0x1c] ss:$12 sps:$4 sm:$0xff]   ;;  %v457_v28 = vld [vmem:[%s582_s0 + $0x18] ss:$12 sps:$4 sm:$0xff]  }
   0xb   :  { %394 = vmatpush3.bf16.msra.mxu0 %v437_v6  ;;  %424 = vmatpush3.bf16.msra.mxu1 %v452_v16 }
   0xc   :  { %395 = vmatprep.subr.bf16.mxu0 %v438_v7 }
   0xe   :  { %426 = vmatmul.mubr.msk.bf16.vlgmr.msra.gmra.mrb[0].mxu1 %vm221_vm0, %v454_v18  ;;  %70 = vperm.xlu0 %430, %v60_v23  }
   0xf   :  { %396 = vmatpush3.bf16.msra.mxu0 %v439_v8  ;;  %80 = vperm.xlu1 %431, %v62_v24  }
  0x10   :  { %397 = vmatprep.subr.bf16.mxu0 %v440_v9 }
  0x13   :  { %398 = vmatpush3.bf16.msra.mxu0 %v441_v10 }
  0x14   :  { %399 = vmatprep.subr.bf16.mxu0 %v442_v12 }
  0x17   :  { %400 = vmatpush3.bf16.msra.mxu0 %v443_v13 }
  0x18   :  { %401 = vmatprep.subr.bf16.mxu0 %v444_v14 }
  0x1b   :  { %402 = vmatpush3.bf16.msra.mxu0 %v445_v20 }
  0x1c   :  { %403 = vmatprep.subr.bf16.mxu0 %v446_v22 }
  0x1f   :  { %404 = vmatpush3.bf16.msra.mxu0 %v448_v25 }
  0x22   :  { %261 = vmatmul.mubr.bf16.vlgmr.msra.gmra.mrb[0].mxu0 %v449_v26 }
  0x23   :  { %268 = vmatprep.mubr.bf16.mxu0 %v455_v27 }
  0x2a   :  { %269 = vmatmul.mubr.bf16.gmra.mrb[4].mxu0 %v457_v28 }
  0x89   :  { %v66_v33 = vpop.permute.xlu0 %65  ;;  %v76_v44 = vpop.permute.xlu1 %75 }
  0x8d   :  { %v71_v39 = vpop.permute.xlu0 %70 }
  0x8e   :  { %v81_v57 = vpop.permute.xlu1 %80 }
  0xe1   :  { %v427_v29 = vpop.f32.mrb[0].mxu1 }
  0xe2   :  { %v311_v30 = vpop.f32.mrb[1].mxu1 }
  0xe3   :  { %v428_v31 = vpop.f32.mrb[2].mxu1 }
  0xe4   :  { %v314_v32 = vpop.f32.mrb[3].mxu1 }
  0xf5   :  { %v405_v34 = vpop.f32.mrb[0].mxu0 }
  0xf6   :  { %v406_v35 = vpop.f32.mrb[1].mxu0 }
  0xf7   :  { %v407_v36 = vadd.f32 %v406_v35, %v405_v34  ;;  %v408_v37 = vpop.f32.mrb[2].mxu0 }
  0xf8   :  { %v409_v38 = vpop.f32.mrb[3].mxu0 }
  0xf9   :  { %v410_v40 = vadd.f32 %v409_v38, %v408_v37  ;;  %v263_v41 = vadd.f32 %v407_v36, %v66_v33 }
  0xfb   :  { %v266_v42 = vadd.f32 %v410_v40, %v71_v39  ;;  %v312_v43 = vadd.f32 %v311_v30, %v263_v41 }
  0xfd   :  { %v326_v45 = vmax.f32 %v312_v43, 0.0  ;;  %v315_v46 = vadd.f32 %v314_v32, %v266_v42  ;;  %v411_v47 = vpop.f32.mrb[4].mxu0 }
  0xfe   :  { %v412_v48 = vpop.f32.mrb[5].mxu0 }
  0xff   :  { %v385_v49 = vpack.c.bf16 %v326_v45, %v326_v45  ;;  %v327_v50 = vmax.f32 %v315_v46, 0.0  ;;  %v413_v51 = vadd.f32 %v412_v48, %v411_v47  ;;  %v414_v52 = vpop.f32.mrb[6].mxu0 }
 0x100   :  { %v415_v53 = vpop.f32.mrb[7].mxu0 }
 0x101   :  { %347 = vst.msk [vmem:[%s584_s3] sm:$0xf] %vm346_vm1, %v385_v49  ;;  %v386_v54 = vpack.c.bf16 %v327_v50, %v327_v50  ;;  %v271_v55 = vadd.f32 %v413_v51, %v76_v44  ;;  %v416_v56 = vadd.f32 %v415_v53, %v414_v52 }
 0x103   :  { %348 = vst.msk [vmem:[%s584_s3 + $0x4] sm:$0xf] %vm346_vm1, %v386_v54  ;;  %v320_v58 = vadd.f32 %v427_v29, %v271_v55  ;;  %v274_v59 = vadd.f32 %v416_v56, %v81_v57 }
 0x105   :  { %v328_v60 = vmax.f32 %v320_v58, 0.0  ;;  %v323_v61 = vadd.f32 %v428_v31, %v274_v59 }
 0x107   :  { %v387_v62 = vpack.c.bf16 %v328_v60, %v328_v60  ;;  %v329_v63 = vmax.f32 %v323_v61, 0.0 }
 0x109   :  { %349 = vst.msk [vmem:[%s584_s3 + $0x8] sm:$0xf] %vm346_vm1, %v387_v62  ;;  %v388_v0 = vpack.c.bf16 %v329_v63, %v329_v63 }
 0x10b   :  { %350 = vst.msk [vmem:[%s584_s3 + $0xc] sm:$0xf] %vm346_vm1, %v388_v0 }

// kernel: _lambda_.27
= control target key start
LH: loop header
LB: loop body
LE: loop exit
PB: predicated region body
PF: predicated region fallthrough
CT: control target
= control target key end

     0   :  { %v482_v1 = vmov 0   ;;  %vm224_vm0 = vcmask 261120   ;;  %vm361_vm1 = vcmask 257024   ;;  %s616_s1 = inlined_call_operand.vmem [shape: bf16[288,32], index: 1, kind: input, shape index: {}]   ;;  %s617_s0 = inlined_call_operand.vmem [shape: bf16[32,288], index: 0, kind: input, shape index: {}]   ;;  %s618_s2 = inlined_call_operand.vmem [shape: f32[32,1], index: 2, kind: input, shape index: {}]   ;;  %s619_s3 = inlined_call_operand.vmem [shape: bf16[32,32], index: 3, kind: input, shape index: {}]   ;;  %s620_s4 = inlined_call_operand.vmem [shape: bf16[32,32], index: 4, kind: output, shape index: {}]  }
   0x1   :  { %v456_v0 = vld [vmem:[%s616_s1 + $0x40] sm:$0xff]   ;;  %454 = vset.pattern.permute.xlu0 %v482_v1  ;;  %455 = vset.pattern.permute.xlu1 %v482_v1  ;;  %v458_v3 = vld [vmem:[%s616_s1 + $0x48] sm:$0xff]   ;;  %v460_v5 = vld [vmem:[%s616_s1 + $0x50] sm:$0xff]  }
   0x2   :  { %v457_v2 = vld [vmem:[%s616_s1] sm:$0xff]   ;;  %413 = vmatprep.subr.bf16.mxu0 %v456_v0  ;;  %v459_v4 = vld [vmem:[%s616_s1 + $0x8] sm:$0xff]   ;;  %v461_v6 = vld [vmem:[%s616_s1 + $0x10] sm:$0xff]  }
   0x3   :  { %414 = vmatpush3.bf16.msra.mxu0 %v457_v2  ;;  %v462_v7 = vld [vmem:[%s616_s1 + $0x58] sm:$0xff]   ;;  %v464_v9 = vld [vmem:[%s616_s1 + $0x60] sm:$0xff]   ;;  %v466_v12 = vld [vmem:[%s616_s1 + $0x68] sm:$0xff]  }
   0x4   :  { %415 = vmatprep.subr.bf16.mxu0 %v458_v3  ;;  %v463_v8 = vld [vmem:[%s616_s1 + $0x18] sm:$0xff]   ;;  %v465_v10 = vld [vmem:[%s616_s1 + $0x20] sm:$0xff]   ;;  %v467_v13 = vld [vmem:[%s616_s1 + $0x28] sm:$0xff]  }
   0x5   :  { %v471_v11 = vld [vmem:[%s616_s1 + $0x80] sm:$0xff]   ;;  %v468_v14 = vld [vmem:[%s616_s1 + $0x70] sm:$0xff]   ;;  %v476_v16 = vld [vmem:[%s616_s1 + $0x88] sm:$0xff]  }
   0x6   :  { %445 = vmatprep.subr.bf16.mxu1 %v471_v11  ;;  %v475_v15 = vld [vmem:[%s617_s0 + $0x4] ss:$12 sps:$4 sm:$0xff]   ;;  %v477_v17 = vld [vmem:[%s617_s0 + $0x8] ss:$12 sps:$4 sm:$0xff]   ;;  %v478_v18 = vld [vmem:[%s617_s0 + $0x20] ss:$12 sps:$4 sm:$0xff]  }
   0x7   :  { %416 = vmatpush3.bf16.msra.mxu0 %v459_v4  ;;  %446 = vmatpush3.bf16.msra.mxu1 %v471_v11  ;;  %v62_v19 = vld [vmem:[%s618_s2] sm:$0xff]  ;;  %v469_v20 = vld [vmem:[%s616_s1 + $0x30] sm:$0xff]   ;;  %v470_v22 = vld [vmem:[%s616_s1 + $0x78] sm:$0xff]  }
   0x8   :  { %417 = vmatprep.subr.bf16.mxu0 %v460_v5  ;;  %263 = vmatprep.mubr.bf16.mxu0 %v475_v15  ;;  %v64_v21 = vld [vmem:[%s618_s2 + $0x10] sm:$0xff]  ;;  %v63_v23 = vld [vmem:[%s618_s2 + $0x8] sm:$0xff]  ;;  %v65_v24 = vld [vmem:[%s618_s2 + $0x18] sm:$0xff] }
   0x9   :  { %447 = vmatprep.subr.bf16.mxu1 %v476_v16  ;;  %449 = vmatprep.mubr.msk.bf16.mxu1 %vm224_vm0, %v477_v17  ;;  %v472_v25 = vld [vmem:[%s616_s1 + $0x38] sm:$0xff]   ;;  %v473_v26 = vld [vmem:[%s617_s0] ss:$12 sps:$4 sm:$0xff]  }
   0xa   :  { %68 = vperm.xlu0 %454, %v62_v19   ;;  %78 = vperm.xlu1 %455, %v64_v21   ;;  %v479_v27 = vld [vmem:[%s617_s0 + $0x1c] ss:$12 sps:$4 sm:$0xff]   ;;  %v481_v28 = vld [vmem:[%s617_s0 + $0x18] ss:$12 sps:$4 sm:$0xff]  }
   0xb   :  { %418 = vmatpush3.bf16.msra.mxu0 %v461_v6  ;;  %448 = vmatpush3.bf16.msra.mxu1 %v476_v16  ;;  %v405_v36 = vld [vmem:[%s619_s3] sm:$0xff]   ;;  %v412_v48 = vld [vmem:[%s619_s3 + $0x8] sm:$0xff]  }
   0xc   :  { %419 = vmatprep.subr.bf16.mxu0 %v462_v7  ;;  %v406_v43 = vunpack.c.l.bf16 %v405_v36  ;;  %v407_v46 = vunpack.c.h.bf16 %v405_v36  ;;  %v410_v57 = vunpack.c.l.bf16 %v412_v48  ;;  %v411_v3 = vunpack.c.h.bf16 %v412_v48 }
   0xe   :  { %450 = vmatmul.mubr.msk.bf16.vlgmr.msra.gmra.mrb[0].mxu1 %vm224_vm0, %v478_v18  ;;  %73 = vperm.xlu0 %454, %v63_v23  }
   0xf   :  { %420 = vmatpush3.bf16.msra.mxu0 %v463_v8  ;;  %83 = vperm.xlu1 %455, %v65_v24  }
  0x10   :  { %421 = vmatprep.subr.bf16.mxu0 %v464_v9 }
  0x13   :  { %422 = vmatpush3.bf16.msra.mxu0 %v465_v10 }
  0x14   :  { %423 = vmatprep.subr.bf16.mxu0 %v466_v12 }
  0x17   :  { %424 = vmatpush3.bf16.msra.mxu0 %v467_v13 }
  0x18   :  { %425 = vmatprep.subr.bf16.mxu0 %v468_v14 }
  0x1b   :  { %426 = vmatpush3.bf16.msra.mxu0 %v469_v20 }
  0x1c   :  { %427 = vmatprep.subr.bf16.mxu0 %v470_v22 }
  0x1f   :  { %428 = vmatpush3.bf16.msra.mxu0 %v472_v25 }
  0x22   :  { %264 = vmatmul.mubr.bf16.vlgmr.msra.gmra.mrb[0].mxu0 %v473_v26 }
  0x23   :  { %271 = vmatprep.mubr.bf16.mxu0 %v479_v27 }
  0x2a   :  { %272 = vmatmul.mubr.bf16.gmra.mrb[4].mxu0 %v481_v28 }
  0x89   :  { %v69_v33 = vpop.permute.xlu0 %68  ;;  %v79_v47 = vpop.permute.xlu1 %78 }
  0x8d   :  { %v74_v40 = vpop.permute.xlu0 %73 }
  0x8e   :  { %v84_v63 = vpop.permute.xlu1 %83 }
  0xe1   :  { %v451_v29 = vpop.f32.mrb[0].mxu1 }
  0xe2   :  { %v314_v30 = vpop.f32.mrb[1].mxu1 }
  0xe3   :  { %v452_v31 = vpop.f32.mrb[2].mxu1 }
  0xe4   :  { %v317_v32 = vpop.f32.mrb[3].mxu1 }
  0xf5   :  { %v429_v34 = vpop.f32.mrb[0].mxu0 }
  0xf6   :  { %v430_v35 = vpop.f32.mrb[1].mxu0 }
  0xf7   :  { %v431_v37 = vadd.f32 %v430_v35, %v429_v34  ;;  %v432_v38 = vpop.f32.mrb[2].mxu0 }
  0xf8   :  { %v433_v39 = vpop.f32.mrb[3].mxu0 }
  0xf9   :  { %v434_v41 = vadd.f32 %v433_v39, %v432_v38  ;;  %v266_v42 = vadd.f32 %v431_v37, %v69_v33 }
  0xfb   :  { %v269_v44 = vadd.f32 %v434_v41, %v74_v40  ;;  %v315_v45 = vadd.f32 %v314_v30, %v266_v42 }
  0xfd   :  { %v337_v49 = vadd.f32 %v406_v43, %v315_v45  ;;  %v318_v50 = vadd.f32 %v317_v32, %v269_v44  ;;  %v435_v51 = vpop.f32.mrb[4].mxu0 }
  0xfe   :  { %v436_v52 = vpop.f32.mrb[5].mxu0 }
  0xff   :  { %v341_v53 = vmax.f32 %v337_v49, 0.0  ;;  %v338_v54 = vadd.f32 %v407_v46, %v318_v50  ;;  %v437_v55 = vadd.f32 %v436_v52, %v435_v51  ;;  %v438_v56 = vpop.f32.mrb[6].mxu0 }
 0x100   :  { %v439_v58 = vpop.f32.mrb[7].mxu0 }
 0x101   :  { %v400_v59 = vpack.c.bf16 %v341_v53, %v341_v53  ;;  %v342_v60 = vmax.f32 %v338_v54, 0.0  ;;  %v274_v61 = vadd.f32 %v437_v55, %v79_v47  ;;  %v440_v62 = vadd.f32 %v439_v58, %v438_v56 }
 0x103   :  { %362 = vst.msk [vmem:[%s620_s4] sm:$0xf] %vm361_vm1, %v400_v59  ;;  %v401_v0 = vpack.c.bf16 %v342_v60, %v342_v60  ;;  %v323_v1 = vadd.f32 %v451_v29, %v274_v61  ;;  %v277_v2 = vadd.f32 %v440_v62, %v84_v63 }
 0x105   :  { %363 = vst.msk [vmem:[%s620_s4 + $0x4] sm:$0xf] %vm361_vm1, %v401_v0  ;;  %v339_v4 = vadd.f32 %v410_v57, %v323_v1  ;;  %v326_v5 = vadd.f32 %v452_v31, %v277_v2 }
 0x107   :  { %v343_v6 = vmax.f32 %v339_v4, 0.0  ;;  %v340_v7 = vadd.f32 %v411_v3, %v326_v5 }
 0x109   :  { %v402_v8 = vpack.c.bf16 %v343_v6, %v343_v6  ;;  %v344_v9 = vmax.f32 %v340_v7, 0.0 }
 0x10b   :  { %364 = vst.msk [vmem:[%s620_s4 + $0x8] sm:$0xf] %vm361_vm1, %v402_v8  ;;  %v403_v10 = vpack.c.bf16 %v344_v9, %v344_v9 }
 0x10d   :  { %365 = vst.msk [vmem:[%s620_s4 + $0xc] sm:$0xf] %vm361_vm1, %v403_v10 }

// kernel: _lambda_.30
= control target key start
LH: loop header
LB: loop body
LE: loop exit
PB: predicated region body
PF: predicated region fallthrough
CT: control target
= control target key end

     0   :  { %v1021_v1 = vmov 0   ;;  %vm407_vm0 = vcmask 261120   ;;  %vm755_vm1 = vcmask 60416   ;;  %s1321_s1 = inlined_call_operand.vmem [shape: bf16[288,8], index: 1, kind: input, shape index: {}]   ;;  %s1322_s0 = inlined_call_operand.vmem [shape: bf16[128,288], index: 0, kind: input, shape index: {}]   ;;  %s1323_s2 = inlined_call_operand.vmem [shape: f32[128,1], index: 2, kind: input, shape index: {}]   ;;  %s1324_s3 = inlined_call_operand.vmem [shape: bf16[128,8], index: 3, kind: output, shape index: {}]  }
   0x1   :  { %v971_v0 = vld [vmem:[%s1321_s1 + $0x40] sm:$0xff]   ;;  %970 = vset.pattern.permute.xlu1 %v1021_v1  ;;  %969 = vset.pattern.permute.xlu0 %v1021_v1  ;;  %v973_v3 = vld [vmem:[%s1321_s1 + $0x48] sm:$0xff]   ;;  %v975_v5 = vld [vmem:[%s1321_s1 + $0x50] sm:$0xff]  }
   0x2   :  { %v972_v2 = vld [vmem:[%s1321_s1] sm:$0xff]   ;;  %858 = vmatprep.subr.bf16.mxu0 %v971_v0  ;;  %952 = vmatprep.subr.bf16.mxu1 %v971_v0  ;;  %v974_v4 = vld [vmem:[%s1321_s1 + $0x8] sm:$0xff]   ;;  %v976_v6 = vld [vmem:[%s1321_s1 + $0x10] sm:$0xff]  }
   0x3   :  { %859 = vmatpush3.bf16.msra.mxu0 %v972_v2  ;;  %960 = vmatpush3.bf16.msra.mxu1 %v972_v2  ;;  %v977_v7 = vld [vmem:[%s1321_s1 + $0x58] sm:$0xff]   ;;  %v979_v9 = vld [vmem:[%s1321_s1 + $0x60] sm:$0xff]   ;;  %v981_v11 = vld [vmem:[%s1321_s1 + $0x68] sm:$0xff]  }
   0x4   :  { %860 = vmatprep.subr.bf16.mxu0 %v973_v3  ;;  %953 = vmatprep.subr.bf16.mxu1 %v973_v3  ;;  %v978_v8 = vld [vmem:[%s1321_s1 + $0x18] sm:$0xff]   ;;  %v980_v10 = vld [vmem:[%s1321_s1 + $0x20] sm:$0xff]   ;;  %v982_v14 = vld [vmem:[%s1321_s1 + $0x28] sm:$0xff]  }
   0x5   :  { %v989_v12 = vld [vmem:[%s1322_s0 + $0x4] ss:$12 sps:$4 sm:$0xff]   ;;  %v992_v13 = vld [vmem:[%s1322_s0 + $0x94] ss:$12 sps:$4 sm:$0xff]   ;;  %v985_v17 = vld [vmem:[%s1321_s1 + $0x78] sm:$0xff]  }
   0x6   :  { %v983_v15 = vld [vmem:[%s1321_s1 + $0x70] sm:$0xff]   ;;  %464 = vmatprep.mubr.bf16.mxu0 %v989_v12  ;;  %512 = vmatprep.mubr.bf16.mxu1 %v992_v13  ;;  %v986_v18 = vld [vmem:[%s1321_s1 + $0x38] sm:$0xff]   ;;  %v987_v19 = vld [vmem:[%s1322_s0] ss:$12 sps:$4 sm:$0xff]  }
   0x7   :  { %861 = vmatpush3.bf16.msra.mxu0 %v974_v4  ;;  %961 = vmatpush3.bf16.msra.mxu1 %v974_v4  ;;  %v984_v16 = vld [vmem:[%s1321_s1 + $0x30] sm:$0xff]   ;;  %v993_v20 = vld [vmem:[%s1321_s1 + $0x80] sm:$0xff]   ;;  %v994_v22 = vld [vmem:[%s1322_s0 + $0x1c] ss:$12 sps:$4 sm:$0xff]  }
   0x8   :  { %862 = vmatprep.subr.bf16.mxu0 %v975_v5  ;;  %954 = vmatprep.subr.bf16.mxu1 %v975_v5  ;;  %v990_v21 = vld [vmem:[%s1322_s0 + $0x90] ss:$12 sps:$4 sm:$0xff]   ;;  %v996_v23 = vld [vmem:[%s1322_s0 + $0xac] ss:$12 sps:$4 sm:$0xff]   ;;  %v83_v26 = vld [vmem:[%s1323_s2] sm:$0xff] }
   0x9   :  { %v1000_v24 = vld [vmem:[%s1321_s1 + $0x88] sm:$0xff]   ;;  %v85_v25 = vld [vmem:[%s1323_s2 + $0x10] sm:$0xff]  ;;  %v998_v27 = vld [vmem:[%s1322_s0 + $0x18] ss:$12 sps:$4 sm:$0xff]   ;;  %101 = vperm.xlu0 %969, %v83_v26  }
   0xa   :  { %111 = vperm.xlu1 %970, %v85_v25   ;;  %v999_v28 = vld [vmem:[%s1322_s0 + $0xa8] ss:$12 sps:$4 sm:$0xff]   ;;  %v86_v29 = vld [vmem:[%s1323_s2 + $0x18] sm:$0xff]  ;;  %v87_v34 = vld [vmem:[%s1323_s2 + $0x20] sm:$0xff] }
   0xb   :  { %863 = vmatpush3.bf16.msra.mxu0 %v976_v6  ;;  %962 = vmatpush3.bf16.msra.mxu1 %v976_v6  ;;  %v1001_v30 = vld [vmem:[%s1322_s0 + $0x34] ss:$12 sps:$4 sm:$0xff]   ;;  %v84_v32 = vld [vmem:[%s1323_s2 + $0x8] sm:$0xff]  ;;  %v1004_v35 = vld [vmem:[%s1322_s0 + $0x30] ss:$12 sps:$4 sm:$0xff]  }
   0xc   :  { %864 = vmatprep.subr.bf16.mxu0 %v977_v7  ;;  %955 = vmatprep.subr.bf16.mxu1 %v977_v7  ;;  %v1003_v31 = vld [vmem:[%s1322_s0 + $0x8] ss:$12 sps:$4 sm:$0xff]   ;;  %v1005_v36 = vld [vmem:[%s1322_s0 + $0x20] ss:$12 sps:$4 sm:$0xff]   ;;  %v90_v37 = vld [vmem:[%s1323_s2 + $0x38] sm:$0xff] }
   0xd   :  { %v88_v33 = vld [vmem:[%s1323_s2 + $0x28] sm:$0xff]  ;;  %106 = vperm.xlu0 %969, %v84_v32   ;;  %v1008_v39 = vld [vmem:[%s1322_s0 + $0x38] ss:$12 sps:$4 sm:$0xff]   ;;  %v89_v40 = vld [vmem:[%s1323_s2 + $0x30] sm:$0xff] }
   0xe   :  { %116 = vperm.xlu1 %970, %v86_v29   ;;  %v1006_v38 = vld [vmem:[%s1322_s0 + $0x4c] ss:$12 sps:$4 sm:$0xff]   ;;  %v91_v42 = vld [vmem:[%s1323_s2 + $0x40] sm:$0xff]  ;;  %v1009_v43 = vld [vmem:[%s1322_s0 + $0x48] ss:$12 sps:$4 sm:$0xff]  }
   0xf   :  { %865 = vmatpush3.bf16.msra.mxu0 %v978_v8  ;;  %963 = vmatpush3.bf16.msra.mxu1 %v978_v8  ;;  %v92_v41 = vld [vmem:[%s1323_s2 + $0x48] sm:$0xff]  ;;  %v1010_v44 = vld [vmem:[%s1322_s0 + $0x50] ss:$12 sps:$4 sm:$0xff]   ;;  %v95_v50 = vld [vmem:[%s1323_s2 + $0x60] sm:$0xff] }
  0x10   :  { %866 = vmatprep.subr.bf16.mxu0 %v979_v9  ;;  %956 = vmatprep.subr.bf16.mxu1 %v979_v9  ;;  %v94_v45 = vld [vmem:[%s1323_s2 + $0x58] sm:$0xff]  ;;  %v1011_v46 = vld [vmem:[%s1322_s0 + $0x64] ss:$12 sps:$4 sm:$0xff]   ;;  %v1013_v47 = vld [vmem:[%s1322_s0 + $0x68] ss:$12 sps:$4 sm:$0xff]  }
  0x11   :  { %121 = vperm.xlu0 %969, %v87_v34   ;;  %v93_v48 = vld [vmem:[%s1323_s2 + $0x50] sm:$0xff]  ;;  %v96_v49 = vld [vmem:[%s1323_s2 + $0x68] sm:$0xff]  ;;  %v98_v53 = vld [vmem:[%s1323_s2 + $0x78] sm:$0xff] }
  0x12   :  { %126 = vperm.xlu1 %970, %v88_v33   ;;  %v1014_v51 = vld [vmem:[%s1322_s0 + $0x60] ss:$12 sps:$4 sm:$0xff]   ;;  %v1016_v54 = vld [vmem:[%s1322_s0 + $0x7c] ss:$12 sps:$4 sm:$0xff]   ;;  %v1018_v55 = vld [vmem:[%s1322_s0 + $0x98] ss:$12 sps:$4 sm:$0xff]  }
  0x13   :  { %867 = vmatpush3.bf16.msra.mxu0 %v980_v10  ;;  %964 = vmatpush3.bf16.msra.mxu1 %v980_v10  ;;  %v1015_v52 = vld [vmem:[%s1322_s0 + $0x80] ss:$12 sps:$4 sm:$0xff]   ;;  %v97_v56 = vld [vmem:[%s1323_s2 + $0x70] sm:$0xff]  ;;  %v1019_v57 = vld [vmem:[%s1322_s0 + $0x78] ss:$12 sps:$4 sm:$0xff]  }
  0x14   :  { %868 = vmatprep.subr.bf16.mxu0 %v981_v11  ;;  %957 = vmatprep.subr.bf16.mxu1 %v981_v11  ;;  %v1020_v58 = vld [vmem:[%s1322_s0 + $0xb0] ss:$12 sps:$4 sm:$0xff]  }
  0x15   :  { %131 = vperm.xlu0 %969, %v89_v40  }
  0x16   :  { %136 = vperm.xlu1 %970, %v90_v37  }
  0x17   :  { %869 = vmatpush3.bf16.msra.mxu0 %v982_v14  ;;  %965 = vmatpush3.bf16.msra.mxu1 %v982_v14 }
  0x18   :  { %870 = vmatprep.subr.bf16.mxu0 %v983_v15  ;;  %958 = vmatprep.subr.bf16.mxu1 %v983_v15 }
  0x19   :  { %141 = vperm.xlu0 %969, %v91_v42  }
  0x1a   :  { %146 = vperm.xlu1 %970, %v92_v41  }
  0x1b   :  { %871 = vmatpush3.bf16.msra.mxu0 %v984_v16  ;;  %966 = vmatpush3.bf16.msra.mxu1 %v984_v16 }
  0x1c   :  { %872 = vmatprep.subr.bf16.mxu0 %v985_v17  ;;  %959 = vmatprep.subr.bf16.mxu1 %v985_v17 }
  0x1d   :  { %151 = vperm.xlu0 %969, %v93_v48  }
  0x1e   :  { %156 = vperm.xlu1 %970, %v94_v45  }
  0x1f   :  { %873 = vmatpush3.bf16.msra.mxu0 %v986_v18  ;;  %967 = vmatpush3.bf16.msra.mxu1 %v986_v18 }
  0x20   :  { %932 = vmatprep.subr.bf16.mxu1 %v993_v20 }
  0x21   :  { %161 = vperm.xlu0 %969, %v95_v50  }
  0x22   :  { %465 = vmatmul.mubr.bf16.vlgmr.msra.gmra.mrb[0].mxu0 %v987_v19  ;;  %513 = vmatmul.mubr.bf16.vlgmr.msra.gmra.mrb[0].mxu1 %v990_v21 }
  0x23   :  { %933 = vmatpush3.bf16.msra.mxu1 %v993_v20  ;;  %472 = vmatprep.mubr.bf16.mxu0 %v994_v22 }
  0x24   :  { %520 = vmatprep.mubr.bf16.mxu1 %v996_v23  ;;  %934 = vmatprep.subr.bf16.mxu1 %v1000_v24 }
  0x25   :  { %166 = vperm.xlu1 %970, %v96_v49   ;;  %171 = vperm.xlu0 %969, %v97_v56  }
  0x27   :  { %935 = vmatpush3.bf16.msra.mxu1 %v1000_v24 }
  0x29   :  { %176 = vperm.xlu1 %970, %v98_v53  }
  0x2a   :  { %473 = vmatmul.mubr.bf16.gmra.mrb[4].mxu0 %v998_v27  ;;  %521 = vmatmul.mubr.bf16.gmra.mrb[4].mxu1 %v999_v28 }
  0x2b   :  { %480 = vmatprep.mubr.bf16.mxu0 %v1001_v30  ;;  %936 = vmatprep.mubr.msk.bf16.mxu1 %vm407_vm0, %v1003_v31 }
  0x32   :  { %481 = vmatmul.mubr.bf16.gmra.mrb[8].mxu0 %v1004_v35  ;;  %937 = vmatmul.mubr.msk.bf16.vlgmr.msra.gmra.mrb[8].mxu1 %vm407_vm0, %v1005_v36 }
  0x33   :  { %488 = vmatprep.mubr.bf16.mxu0 %v1006_v38  ;;  %940 = vmatprep.mubr.msk.bf16.mxu1 %vm407_vm0, %v1008_v39 }
  0x3a   :  { %489 = vmatmul.mubr.bf16.gmra.mrb[12].mxu0 %v1009_v43  ;;  %941 = vmatmul.mubr.msk.bf16.gmra.mrb[12].mxu1 %vm407_vm0, %v1010_v44 }
  0x3b   :  { %496 = vmatprep.mubr.bf16.mxu0 %v1011_v46  ;;  %944 = vmatprep.mubr.msk.bf16.mxu1 %vm407_vm0, %v1013_v47 }
  0x42   :  { %497 = vmatmul.mubr.bf16.gmra.mrb[16].mxu0 %v1014_v51  ;;  %945 = vmatmul.mubr.msk.bf16.gmra.mrb[16].mxu1 %vm407_vm0, %v1015_v52 }
  0x43   :  { %504 = vmatprep.mubr.bf16.mxu0 %v1016_v54  ;;  %948 = vmatprep.mubr.msk.bf16.mxu1 %vm407_vm0, %v1018_v55 }
  0x4a   :  { %505 = vmatmul.mubr.bf16.gmra.mrb[20].mxu0 %v1019_v57  ;;  %949 = vmatmul.mubr.msk.bf16.gmra.mrb[20].mxu1 %vm407_vm0, %v1020_v58 }
  0x88   :  { %v102_v60 = vpop.permute.xlu0 %101 }
  0x89   :  { %v112_v59 = vpop.permute.xlu1 %111 }
  0x8c   :  { %v107_v62 = vpop.permute.xlu0 %106 }
  0x8d   :  { %v117_v61 = vpop.permute.xlu1 %116 }
  0x90   :  { %v1226_v0 = vpop.permute.xlu0 %121 }
  0x91   :  { %v1224_v63 = vpop.permute.xlu1 %126 }
  0x94   :  { %v132_v14 = vpop.permute.xlu0 %131 }
  0x95   :  { %v1232_v13 = vpop.permute.xlu1 %136 }
  0x98   :  { %v1240_v28 = vpop.permute.xlu0 %141 }
  0x99   :  { %v1238_v27 = vpop.permute.xlu1 %146 }
  0x9c   :  { %v1244_v54 = vpop.permute.xlu0 %151 }
  0x9d   :  { %v1242_v53 = vpop.permute.xlu1 %156 }
  0xf5   :  { %v874_v1 = vpop.f32.mrb[0].mxu0  ;;  %v910_v2 = vpop.f32.mrb[0].mxu1 }
  0xf6   :  { %v875_v3 = vpop.f32.mrb[1].mxu0  ;;  %v911_v4 = vpop.f32.mrb[1].mxu1 }
  0xf7   :  { %v876_v5 = vadd.f32 %v875_v3, %v874_v1  ;;  %v877_v6 = vpop.f32.mrb[2].mxu0  ;;  %v1228_v7 = vadd.f32 %v911_v4, %v910_v2  ;;  %v913_v8 = vpop.f32.mrb[2].mxu1 }
  0xf8   :  { %v878_v9 = vpop.f32.mrb[3].mxu0  ;;  %v914_v10 = vpop.f32.mrb[3].mxu1 }
  0xf9   :  { %v879_v11 = vadd.f32 %v878_v9, %v877_v6  ;;  %v1230_v12 = vadd.f32 %v914_v10, %v913_v8  ;;  %v467_v32 = vadd.f32 %v876_v5, %v102_v60 }
  0xfb   :  { %v470_v41 = vadd.f32 %v879_v11, %v107_v62 }
  0xfd   :  { %v880_v15 = vpop.f32.mrb[4].mxu0  ;;  %v916_v16 = vpop.f32.mrb[4].mxu1 }
  0xfe   :  { %v881_v17 = vpop.f32.mrb[5].mxu0  ;;  %v917_v18 = vpop.f32.mrb[5].mxu1 }
  0xff   :  { %v882_v19 = vadd.f32 %v881_v17, %v880_v15  ;;  %v883_v20 = vpop.f32.mrb[6].mxu0  ;;  %v1234_v21 = vadd.f32 %v917_v18, %v916_v16  ;;  %v919_v22 = vpop.f32.mrb[6].mxu1 }
 0x100   :  { %v884_v23 = vpop.f32.mrb[7].mxu0  ;;  %v920_v24 = vpop.f32.mrb[7].mxu1 }
 0x101   :  { %v885_v25 = vadd.f32 %v884_v23, %v883_v20  ;;  %v1236_v26 = vadd.f32 %v920_v24, %v919_v22  ;;  %v475_v29 = vadd.f32 %v882_v19, %v112_v59  ;;  %v167_v18 = vpop.permute.xlu1 %166  ;;  %v162_v19 = vpop.permute.xlu0 %161 }
 0x103   :  { %v478_v36 = vadd.f32 %v885_v25, %v117_v61 }
 0x105   :  { %v886_v30 = vpop.f32.mrb[8].mxu0  ;;  %v938_v31 = vpop.f32.mrb[8].mxu1 }
 0x106   :  { %v572_v33 = vadd.f32 %v938_v31, %v475_v29  ;;  %v887_v34 = vpop.f32.mrb[9].mxu0  ;;  %v563_v35 = vpop.f32.mrb[9].mxu1 }
 0x107   :  { %v888_v37 = vadd.f32 %v887_v34, %v886_v30  ;;  %v564_v38 = vadd.f32 %v563_v35, %v467_v32  ;;  %v889_v39 = vpop.f32.mrb[10].mxu0  ;;  %v939_v40 = vpop.f32.mrb[10].mxu1 }
 0x108   :  { %v661_v42 = vmax.f32 %v572_v33, 0.0  ;;  %v575_v43 = vadd.f32 %v939_v40, %v478_v36  ;;  %v890_v44 = vpop.f32.mrb[11].mxu0  ;;  %v566_v45 = vpop.f32.mrb[11].mxu1 }
 0x109   :  { %v659_v46 = vmax.f32 %v564_v38, 0.0  ;;  %v891_v47 = vadd.f32 %v890_v44, %v889_v39  ;;  %v567_v48 = vadd.f32 %v566_v45, %v470_v41  ;;  %v483_v59 = vadd.f32 %v888_v37, %v1226_v0  ;;  %v172_v35 = vpop.permute.xlu0 %171  ;;  %v177_v39 = vpop.permute.xlu1 %176 }
 0x10a   :  { %v844_v49 = vpack.c.bf16 %v661_v42, %v661_v42  ;;  %v662_v50 = vmax.f32 %v575_v43, 0.0  ;;  %v523_v42 = vadd.f32 %v1234_v21, %v172_v35  ;;  %v515_v43 = vadd.f32 %v1228_v7, %v162_v19 }
 0x10b   :  { %v842_v51 = vpack.c.bf16 %v659_v46, %v659_v46  ;;  %v660_v52 = vmax.f32 %v567_v48, 0.0  ;;  %v486_v4 = vadd.f32 %v891_v47, %v1224_v63 }
 0x10c   :  { %758 = vst.msk [vmem:[%s1324_s3 + $0x8] sm:$0xf] %vm755_vm1, %v844_v49  ;;  %v845_v55 = vpack.c.bf16 %v662_v50, %v662_v50 }
 0x10d   :  { %756 = vst.msk [vmem:[%s1324_s3] sm:$0xf] %vm755_vm1, %v842_v51  ;;  %v843_v56 = vpack.c.bf16 %v660_v52, %v660_v52  ;;  %v892_v57 = vpop.f32.mrb[12].mxu0  ;;  %v942_v58 = vpop.f32.mrb[12].mxu1  ;;  %v518_v51 = vadd.f32 %v1230_v12, %v167_v18 }
 0x10e   :  { %759 = vst.msk [vmem:[%s1324_s3 + $0xc] sm:$0xf] %vm755_vm1, %v845_v55  ;;  %v893_v60 = vpop.f32.mrb[13].mxu0  ;;  %v579_v61 = vpop.f32.mrb[13].mxu1 }
 0x10f   :  { %757 = vst.msk [vmem:[%s1324_s3 + $0x4] sm:$0xf] %vm755_vm1, %v843_v56  ;;  %v894_v62 = vadd.f32 %v893_v60, %v892_v57  ;;  %v580_v1 = vadd.f32 %v579_v61, %v483_v59  ;;  %v895_v2 = vpop.f32.mrb[14].mxu0  ;;  %v943_v3 = vpop.f32.mrb[14].mxu1 }
 0x110   :  { %v896_v5 = vpop.f32.mrb[15].mxu0  ;;  %v582_v0 = vpop.f32.mrb[15].mxu1 }
 0x111   :  { %v491_v6 = vadd.f32 %v894_v62, %v132_v14  ;;  %v663_v8 = vmax.f32 %v580_v1, 0.0  ;;  %v897_v9 = vadd.f32 %v896_v5, %v895_v2  ;;  %v583_v10 = vadd.f32 %v582_v0, %v486_v4 }
 0x113   :  { %v588_v11 = vadd.f32 %v942_v58, %v491_v6  ;;  %v846_v15 = vpack.c.bf16 %v663_v8, %v663_v8  ;;  %v494_v16 = vadd.f32 %v897_v9, %v1232_v13  ;;  %v664_v17 = vmax.f32 %v583_v10, 0.0 }
 0x115   :  { %v665_v20 = vmax.f32 %v588_v11, 0.0  ;;  %760 = vst.msk [vmem:[%s1324_s3 + $0x10] sm:$0xf] %vm755_vm1, %v846_v15  ;;  %v591_v63 = vadd.f32 %v943_v3, %v494_v16  ;;  %v847_v22 = vpack.c.bf16 %v664_v17, %v664_v17  ;;  %v898_v23 = vpop.f32.mrb[16].mxu0  ;;  %v946_v14 = vpop.f32.mrb[16].mxu1 }
 0x116   :  { %v899_v24 = vpop.f32.mrb[17].mxu0  ;;  %v595_v25 = vpop.f32.mrb[17].mxu1 }
 0x117   :  { %v848_v29 = vpack.c.bf16 %v665_v20, %v665_v20  ;;  %v666_v30 = vmax.f32 %v591_v63, 0.0  ;;  %761 = vst.msk [vmem:[%s1324_s3 + $0x14] sm:$0xf] %vm755_vm1, %v847_v22  ;;  %v900_v13 = vadd.f32 %v899_v24, %v898_v23  ;;  %v901_v31 = vpop.f32.mrb[18].mxu0  ;;  %v947_v32 = vpop.f32.mrb[18].mxu1 }
 0x118   :  { %v902_v33 = vpop.f32.mrb[19].mxu0  ;;  %v598_v34 = vpop.f32.mrb[19].mxu1 }
 0x119   :  { %762 = vst.msk [vmem:[%s1324_s3 + $0x18] sm:$0xf] %vm755_vm1, %v848_v29  ;;  %v849_v36 = vpack.c.bf16 %v666_v30, %v666_v30  ;;  %v499_v37 = vadd.f32 %v900_v13, %v1240_v28  ;;  %v903_v38 = vadd.f32 %v902_v33, %v901_v31  ;;  %v526_v28 = vadd.f32 %v1236_v26, %v177_v39 }
 0x11b   :  { %763 = vst.msk [vmem:[%s1324_s3 + $0x1c] sm:$0xf] %vm755_vm1, %v849_v36  ;;  %v596_v40 = vadd.f32 %v595_v25, %v499_v37  ;;  %v502_v41 = vadd.f32 %v903_v38, %v1238_v27 }
 0x11d   :  { %v850_v44 = vpack.c.bf16 %v596_v40, %v596_v40  ;;  %v599_v45 = vadd.f32 %v598_v34, %v502_v41  ;;  %v904_v46 = vpop.f32.mrb[20].mxu0  ;;  %v950_v47 = vpop.f32.mrb[20].mxu1 }
 0x11e   :  { %v620_v48 = vadd.f32 %v950_v47, %v523_v42  ;;  %v905_v49 = vpop.f32.mrb[21].mxu0  ;;  %v611_v50 = vpop.f32.mrb[21].mxu1 }
 0x11f   :  { %764 = vst.msk [vmem:[%s1324_s3 + $0x20] sm:$0xf] %vm755_vm1, %v850_v44  ;;  %v851_v27 = vpack.c.bf16 %v599_v45, %v599_v45  ;;  %v906_v21 = vadd.f32 %v905_v49, %v904_v46  ;;  %v612_v52 = vadd.f32 %v611_v50, %v515_v43  ;;  %v907_v7 = vpop.f32.mrb[22].mxu0  ;;  %v951_v55 = vpop.f32.mrb[22].mxu1 }
 0x120   :  { %v856_v56 = vpack.c.bf16 %v620_v48, %v620_v48  ;;  %v623_v57 = vadd.f32 %v951_v55, %v526_v28  ;;  %v908_v58 = vpop.f32.mrb[23].mxu0  ;;  %v614_v59 = vpop.f32.mrb[23].mxu1 }
 0x121   :  { %765 = vst.msk [vmem:[%s1324_s3 + $0x24] sm:$0xf] %vm755_vm1, %v851_v27  ;;  %v507_v12 = vadd.f32 %v906_v21, %v1244_v54  ;;  %v854_v26 = vpack.c.bf16 %v612_v52, %v612_v52  ;;  %v909_v60 = vadd.f32 %v908_v58, %v907_v7  ;;  %v615_v61 = vadd.f32 %v614_v59, %v518_v51 }
 0x122   :  { %770 = vst.msk [vmem:[%s1324_s3 + $0x38] sm:$0xf] %vm755_vm1, %v856_v56  ;;  %v857_v62 = vpack.c.bf16 %v623_v57, %v623_v57 }
 0x123   :  { %v604_v1 = vadd.f32 %v946_v14, %v507_v12  ;;  %768 = vst.msk [vmem:[%s1324_s3 + $0x30] sm:$0xf] %vm755_vm1, %v854_v26  ;;  %v510_v2 = vadd.f32 %v909_v60, %v1242_v53  ;;  %v855_v3 = vpack.c.bf16 %v615_v61, %v615_v61 }
 0x124   :  { %771 = vst.msk [vmem:[%s1324_s3 + $0x3c] sm:$0xf] %vm755_vm1, %v857_v62 }
 0x125   :  { %v852_v54 = vpack.c.bf16 %v604_v1, %v604_v1  ;;  %v607_v4 = vadd.f32 %v947_v32, %v510_v2  ;;  %769 = vst.msk [vmem:[%s1324_s3 + $0x34] sm:$0xf] %vm755_vm1, %v855_v3 }
 0x127   :  { %766 = vst.msk [vmem:[%s1324_s3 + $0x28] sm:$0xf] %vm755_vm1, %v852_v54  ;;  %v853_v5 = vpack.c.bf16 %v607_v4, %v607_v4 }
 0x129   :  { %767 = vst.msk [vmem:[%s1324_s3 + $0x2c] sm:$0xf] %vm755_vm1, %v853_v5 }

// kernel: _lambda_.32
= control target key start
LH: loop header
LB: loop body
LE: loop exit
PB: predicated region body
PF: predicated region fallthrough
CT: control target
= control target key end

     0   :  { %v991_v1 = vmov 0   ;;  %vm475_vm0 = vcmask 523264   ;;  %vm723_vm1 = vcmask 60416   ;;  %s1243_s1 = inlined_call_operand.vmem [shape: bf16[576,8], index: 1, kind: input, shape index: {}]   ;;  %s1244_s0 = inlined_call_operand.vmem [shape: bf16[64,576], index: 0, kind: input, shape index: {}]   ;;  %s1245_s2 = inlined_call_operand.vmem [shape: f32[64,1], index: 2, kind: input, shape index: {}]   ;;  %s1246_s3 = inlined_call_operand.vmem [shape: bf16[64,8], index: 3, kind: output, shape index: {}]  }
   0x1   :  { %v927_v0 = vld [vmem:[%s1243_s1 + $0x40] sm:$0xff]   ;;  %925 = vset.pattern.permute.xlu0 %v991_v1  ;;  %926 = vset.pattern.permute.xlu1 %v991_v1  ;;  %v931_v5 = vld [vmem:[%s1243_s1 + $0x48] sm:$0xff]   ;;  %v935_v9 = vld [vmem:[%s1243_s1 + $0x50] sm:$0xff]  }
   0x2   :  { %v928_v2 = vld [vmem:[%s1243_s1 + $0xc0] sm:$0xff]   ;;  %812 = vmatprep.subr.bf16.mxu0 %v927_v0  ;;  %v932_v6 = vld [vmem:[%s1243_s1 + $0xc8] sm:$0xff]   ;;  %v936_v10 = vld [vmem:[%s1243_s1 + $0xd0] sm:$0xff]  }
   0x3   :  { %v929_v3 = vld [vmem:[%s1243_s1] sm:$0xff]   ;;  %852 = vmatprep.subr.bf16.mxu1 %v928_v2  ;;  %v933_v7 = vld [vmem:[%s1243_s1 + $0x8] sm:$0xff]   ;;  %v937_v11 = vld [vmem:[%s1243_s1 + $0x10] sm:$0xff]  }
   0x4   :  { %v930_v4 = vld [vmem:[%s1243_s1 + $0x80] sm:$0xff]   ;;  %813 = vmatpush3.bf16.msra.mxu0 %v929_v3  ;;  %v934_v8 = vld [vmem:[%s1243_s1 + $0x88] sm:$0xff]   ;;  %v938_v12 = vld [vmem:[%s1243_s1 + $0x90] sm:$0xff]  }
   0x5   :  { %853 = vmatpush3.bf16.msra.mxu1 %v930_v4  ;;  %814 = vmatprep.subr.bf16.mxu0 %v931_v5  ;;  %v939_v13 = vld [vmem:[%s1243_s1 + $0x58] sm:$0xff]   ;;  %v943_v17 = vld [vmem:[%s1243_s1 + $0x60] sm:$0xff]   ;;  %v947_v21 = vld [vmem:[%s1243_s1 + $0x68] sm:$0xff]  }
   0x6   :  { %854 = vmatprep.subr.bf16.mxu1 %v932_v6  ;;  %v940_v14 = vld [vmem:[%s1243_s1 + $0xd8] sm:$0xff]   ;;  %v944_v18 = vld [vmem:[%s1243_s1 + $0xe0] sm:$0xff]   ;;  %v948_v22 = vld [vmem:[%s1243_s1 + $0xe8] sm:$0xff]  }
   0x7   :  { %v941_v15 = vld [vmem:[%s1243_s1 + $0x18] sm:$0xff]   ;;  %v945_v19 = vld [vmem:[%s1243_s1 + $0x20] sm:$0xff]   ;;  %v949_v23 = vld [vmem:[%s1243_s1 + $0x28] sm:$0xff]  }
   0x8   :  { %815 = vmatpush3.bf16.msra.mxu0 %v933_v7  ;;  %v942_v16 = vld [vmem:[%s1243_s1 + $0x98] sm:$0xff]   ;;  %v946_v20 = vld [vmem:[%s1243_s1 + $0xa0] sm:$0xff]   ;;  %v950_v24 = vld [vmem:[%s1243_s1 + $0xa8] sm:$0xff]  }
   0x9   :  { %855 = vmatpush3.bf16.msra.mxu1 %v934_v8  ;;  %816 = vmatprep.subr.bf16.mxu0 %v935_v9  ;;  %v951_v25 = vld [vmem:[%s1243_s1 + $0x70] sm:$0xff]   ;;  %v955_v29 = vld [vmem:[%s1243_s1 + $0x78] sm:$0xff]   ;;  %v964_v36 = vld [vmem:[%s1244_s0 + $0xc] ss:$20 sps:$4 sm:$0xff]  }
   0xa   :  { %856 = vmatprep.subr.bf16.mxu1 %v936_v10  ;;  %v952_v26 = vld [vmem:[%s1243_s1 + $0xf0] sm:$0xff]   ;;  %v956_v30 = vld [vmem:[%s1243_s1 + $0xf8] sm:$0xff]   ;;  %v965_v37 = vld [vmem:[%s1243_s1 + $0x100] sm:$0xff]   ;;  %585 = vmatprep.mubr.bf16.mxu1 %v964_v36 }
   0xb   :  { %v953_v27 = vld [vmem:[%s1243_s1 + $0x30] sm:$0xff]   ;;  %v957_v31 = vld [vmem:[%s1243_s1 + $0x38] sm:$0xff]   ;;  %v966_v38 = vld [vmem:[%s1244_s0 + $0x2c] ss:$20 sps:$4 sm:$0xff]  }
   0xc   :  { %817 = vmatpush3.bf16.msra.mxu0 %v937_v11  ;;  %v954_v28 = vld [vmem:[%s1243_s1 + $0xb0] sm:$0xff]   ;;  %v958_v32 = vld [vmem:[%s1243_s1 + $0xb8] sm:$0xff]   ;;  %v972_v40 = vld [vmem:[%s1243_s1 + $0x108] sm:$0xff]  }
   0xd   :  { %857 = vmatpush3.bf16.msra.mxu1 %v938_v12  ;;  %818 = vmatprep.subr.bf16.mxu0 %v939_v13  ;;  %v959_v33 = vld [vmem:[%s1244_s0] ss:$20 sps:$4 sm:$0xff]   ;;  %v961_v34 = vld [vmem:[%s1244_s0 + $0x4] ss:$20 sps:$4 sm:$0xff]   ;;  %v962_v35 = vld [vmem:[%s1244_s0 + $0x8] ss:$20 sps:$4 sm:$0xff]  }
   0xe   :  { %858 = vmatprep.subr.bf16.mxu1 %v940_v14  ;;  %520 = vmatprep.mubr.bf16.mxu0 %v961_v34  ;;  %v968_v39 = vld [vmem:[%s1244_s0 + $0x34] ss:$20 sps:$4 sm:$0xff]   ;;  %v971_v42 = vld [vmem:[%s1244_s0 + $0x30] ss:$20 sps:$4 sm:$0xff]   ;;  %v986_v46 = vld [vmem:[%s1243_s1 + $0x118] sm:$0xff]  }
   0xf   :  { %v970_v41 = vld [vmem:[%s1244_s0 + $0x28] ss:$20 sps:$4 sm:$0xff]   ;;  %v979_v45 = vld [vmem:[%s1243_s1 + $0x110] sm:$0xff]   ;;  %v978_v48 = vld [vmem:[%s1244_s0 + $0x58] ss:$20 sps:$4 sm:$0xff]  }
  0x10   :  { %819 = vmatpush3.bf16.msra.mxu0 %v941_v15  ;;  %v973_v43 = vld [vmem:[%s1244_s0 + $0x54] ss:$20 sps:$4 sm:$0xff]   ;;  %v975_v44 = vld [vmem:[%s1244_s0 + $0x5c] ss:$20 sps:$4 sm:$0xff]   ;;  %v982_v50 = vld [vmem:[%s1244_s0 + $0x84] ss:$20 sps:$4 sm:$0xff]  }
  0x11   :  { %859 = vmatpush3.bf16.msra.mxu1 %v942_v16  ;;  %820 = vmatprep.subr.bf16.mxu0 %v943_v17  ;;  %v977_v47 = vld [vmem:[%s1244_s0 + $0x50] ss:$20 sps:$4 sm:$0xff]   ;;  %v112_v53 = vld [vmem:[%s1245_s2 + $0x8] sm:$0xff]  ;;  %v114_v54 = vld [vmem:[%s1245_s2 + $0x18] sm:$0xff] }
  0x12   :  { %860 = vmatprep.subr.bf16.mxu1 %v944_v18  ;;  %v980_v49 = vld [vmem:[%s1244_s0 + $0x7c] ss:$20 sps:$4 sm:$0xff]   ;;  %v111_v51 = vld [vmem:[%s1245_s2] sm:$0xff]  ;;  %v984_v55 = vld [vmem:[%s1244_s0 + $0x78] ss:$20 sps:$4 sm:$0xff]  }
  0x13   :  { %v113_v52 = vld [vmem:[%s1245_s2 + $0x10] sm:$0xff]  ;;  %121 = vperm.xlu0 %925, %v111_v51   ;;  %v115_v58 = vld [vmem:[%s1245_s2 + $0x20] sm:$0xff]  ;;  %v116_v60 = vld [vmem:[%s1245_s2 + $0x28] sm:$0xff] }
  0x14   :  { %821 = vmatpush3.bf16.msra.mxu0 %v945_v19  ;;  %131 = vperm.xlu1 %926, %v113_v52   ;;  %v985_v56 = vld [vmem:[%s1244_s0 + $0x80] ss:$20 sps:$4 sm:$0xff]   ;;  %v987_v57 = vld [vmem:[%s1244_s0 + $0x10] ss:$20 sps:$4 sm:$0xff]   ;;  %v118_v62 = vld [vmem:[%s1245_s2 + $0x38] sm:$0xff] }
  0x15   :  { %861 = vmatpush3.bf16.msra.mxu1 %v946_v20  ;;  %822 = vmatprep.subr.bf16.mxu0 %v947_v21  ;;  %v988_v59 = vld [vmem:[%s1244_s0 + $0x60] ss:$20 sps:$4 sm:$0xff]   ;;  %v989_v63 = vld [vmem:[%s1244_s0 + $0x38] ss:$20 sps:$4 sm:$0xff]   ;;  %v990_v0 = vld [vmem:[%s1244_s0 + $0x88] ss:$20 sps:$4 sm:$0xff]  }
  0x16   :  { %862 = vmatprep.subr.bf16.mxu1 %v948_v22  ;;  %v117_v61 = vld [vmem:[%s1245_s2 + $0x30] sm:$0xff] }
  0x17   :  { %126 = vperm.xlu0 %925, %v112_v53  }
  0x18   :  { %823 = vmatpush3.bf16.msra.mxu0 %v949_v23  ;;  %136 = vperm.xlu1 %926, %v114_v54  }
  0x19   :  { %863 = vmatpush3.bf16.msra.mxu1 %v950_v24  ;;  %824 = vmatprep.subr.bf16.mxu0 %v951_v25 }
  0x1a   :  { %864 = vmatprep.subr.bf16.mxu1 %v952_v26 }
  0x1b   :  { %141 = vperm.xlu0 %925, %v115_v58  }
  0x1c   :  { %825 = vmatpush3.bf16.msra.mxu0 %v953_v27  ;;  %146 = vperm.xlu1 %926, %v116_v60  }
  0x1d   :  { %865 = vmatpush3.bf16.msra.mxu1 %v954_v28  ;;  %826 = vmatprep.subr.bf16.mxu0 %v955_v29 }
  0x1e   :  { %866 = vmatprep.subr.bf16.mxu1 %v956_v30 }
  0x1f   :  { %151 = vperm.xlu0 %925, %v117_v61  }
  0x20   :  { %827 = vmatpush3.bf16.msra.mxu0 %v957_v31  ;;  %156 = vperm.xlu1 %926, %v118_v62  }
  0x21   :  { %867 = vmatpush3.bf16.msra.mxu1 %v958_v32  ;;  %900 = vmatprep.subr.bf16.mxu0 %v965_v37 }
  0x22   :  { %916 = vmatprep.subr.bf16.mxu1 %v965_v37 }
  0x23   :  { %521 = vmatmul.mubr.bf16.vlgmr.msra.gmra.mrb[0].mxu0 %v959_v33 }
  0x24   :  { %586 = vmatmul.mubr.bf16.vlgmr.msra.gmra.mrb[0].mxu1 %v962_v35  ;;  %901 = vmatpush3.bf16.msra.mxu0 %v965_v37 }
  0x25   :  { %920 = vmatpush3.bf16.msra.mxu1 %v965_v37  ;;  %528 = vmatprep.mubr.bf16.mxu0 %v966_v38 }
  0x26   :  { %593 = vmatprep.mubr.bf16.mxu1 %v968_v39  ;;  %902 = vmatprep.subr.bf16.mxu0 %v972_v40 }
  0x27   :  { %917 = vmatprep.subr.bf16.mxu1 %v972_v40 }
  0x28   :  { %903 = vmatpush3.bf16.msra.mxu0 %v972_v40 }
  0x29   :  { %921 = vmatpush3.bf16.msra.mxu1 %v972_v40  ;;  %904 = vmatprep.subr.bf16.mxu0 %v979_v45 }
  0x2a   :  { %918 = vmatprep.subr.bf16.mxu1 %v979_v45 }
  0x2b   :  { %529 = vmatmul.mubr.bf16.gmra.mrb[4].mxu0 %v970_v41 }
  0x2c   :  { %594 = vmatmul.mubr.bf16.gmra.mrb[4].mxu1 %v971_v42  ;;  %536 = vmatprep.mubr.bf16.mxu0 %v973_v43 }
  0x2d   :  { %601 = vmatprep.mubr.bf16.mxu1 %v975_v44  ;;  %905 = vmatpush3.bf16.msra.mxu0 %v979_v45 }
  0x2e   :  { %922 = vmatpush3.bf16.msra.mxu1 %v979_v45  ;;  %906 = vmatprep.subr.bf16.mxu0 %v986_v46 }
  0x2f   :  { %919 = vmatprep.subr.bf16.mxu1 %v986_v46 }
  0x31   :  { %907 = vmatpush3.bf16.msra.mxu0 %v986_v46 }
  0x32   :  { %923 = vmatpush3.bf16.msra.mxu1 %v986_v46 }
  0x33   :  { %537 = vmatmul.mubr.bf16.gmra.mrb[8].mxu0 %v977_v47 }
  0x34   :  { %602 = vmatmul.mubr.bf16.gmra.mrb[8].mxu1 %v978_v48  ;;  %544 = vmatprep.mubr.bf16.mxu0 %v980_v49 }
  0x35   :  { %609 = vmatprep.mubr.bf16.mxu1 %v982_v50 }
  0x3b   :  { %545 = vmatmul.mubr.bf16.gmra.mrb[12].mxu0 %v984_v55 }
  0x3c   :  { %610 = vmatmul.mubr.bf16.gmra.mrb[12].mxu1 %v985_v56  ;;  %908 = vmatprep.mubr.msk.bf16.mxu0 %vm475_vm0, %v987_v57 }
  0x3d   :  { %912 = vmatprep.mubr.msk.bf16.mxu1 %vm475_vm0, %v988_v59 }
  0x43   :  { %909 = vmatmul.mubr.msk.bf16.vlgmr.msra.gmra.mrb[16].mxu0 %vm475_vm0, %v989_v63 }
  0x44   :  { %913 = vmatmul.mubr.msk.bf16.vlgmr.msra.gmra.mrb[16].mxu1 %vm475_vm0, %v990_v0 }
  0x92   :  { %v122_v1 = vpop.permute.xlu0 %121 }
  0x93   :  { %v132_v18 = vpop.permute.xlu1 %131 }
  0x96   :  { %v127_v3 = vpop.permute.xlu0 %126 }
  0x97   :  { %v137_v33 = vpop.permute.xlu1 %136 }
  0x9a   :  { %v142_v36 = vpop.permute.xlu0 %141 }
  0x9b   :  { %v147_v50 = vpop.permute.xlu1 %146 }
  0x9e   :  { %v152_v54 = vpop.permute.xlu0 %151 }
  0xf6   :  { %v828_v2 = vpop.f32.mrb[0].mxu0 }
  0xf7   :  { %v868_v4 = vpop.f32.mrb[0].mxu1  ;;  %v829_v5 = vpop.f32.mrb[1].mxu0 }
  0xf8   :  { %v830_v6 = vadd.f32 %v829_v5, %v828_v2  ;;  %v869_v7 = vpop.f32.mrb[1].mxu1  ;;  %v831_v8 = vpop.f32.mrb[2].mxu0 }
  0xf9   :  { %v870_v9 = vadd.f32 %v869_v7, %v868_v4  ;;  %v871_v10 = vpop.f32.mrb[2].mxu1  ;;  %v832_v11 = vpop.f32.mrb[3].mxu0 }
  0xfa   :  { %v523_v12 = vadd.f32 %v830_v6, %v122_v1  ;;  %v833_v13 = vadd.f32 %v832_v11, %v831_v8  ;;  %v872_v14 = vpop.f32.mrb[3].mxu1  ;;  %v157_v4 = vpop.permute.xlu1 %156 }
  0xfb   :  { %v873_v15 = vadd.f32 %v872_v14, %v871_v10 }
  0xfc   :  { %v526_v16 = vadd.f32 %v833_v13, %v127_v3  ;;  %v588_v17 = vadd.f32 %v870_v9, %v523_v12 }
  0xfe   :  { %v834_v19 = vpop.f32.mrb[4].mxu0  ;;  %v1208_v20 = vadd.f32 %v873_v15, %v526_v16 }
  0xff   :  { %v874_v21 = vpop.f32.mrb[4].mxu1  ;;  %v835_v22 = vpop.f32.mrb[5].mxu0 }
 0x100   :  { %v836_v23 = vadd.f32 %v835_v22, %v834_v19  ;;  %v875_v24 = vpop.f32.mrb[5].mxu1  ;;  %v837_v25 = vpop.f32.mrb[6].mxu0 }
 0x101   :  { %v876_v26 = vadd.f32 %v875_v24, %v874_v21  ;;  %v877_v27 = vpop.f32.mrb[6].mxu1  ;;  %v838_v28 = vpop.f32.mrb[7].mxu0 }
 0x102   :  { %v531_v29 = vadd.f32 %v836_v23, %v132_v18  ;;  %v839_v30 = vadd.f32 %v838_v28, %v837_v25  ;;  %v878_v31 = vpop.f32.mrb[7].mxu1 }
 0x103   :  { %v879_v32 = vadd.f32 %v878_v31, %v877_v27 }
 0x104   :  { %v534_v34 = vadd.f32 %v839_v30, %v137_v33  ;;  %v596_v35 = vadd.f32 %v876_v26, %v531_v29 }
 0x106   :  { %v840_v37 = vpop.f32.mrb[8].mxu0  ;;  %v599_v38 = vadd.f32 %v879_v32, %v534_v34 }
 0x107   :  { %v880_v39 = vpop.f32.mrb[8].mxu1  ;;  %v841_v40 = vpop.f32.mrb[9].mxu0 }
 0x108   :  { %v842_v41 = vadd.f32 %v841_v40, %v840_v37  ;;  %v881_v42 = vpop.f32.mrb[9].mxu1  ;;  %v843_v43 = vpop.f32.mrb[10].mxu0 }
 0x109   :  { %v882_v44 = vadd.f32 %v881_v42, %v880_v39  ;;  %v883_v45 = vpop.f32.mrb[10].mxu1  ;;  %v844_v46 = vpop.f32.mrb[11].mxu0 }
 0x10a   :  { %v539_v47 = vadd.f32 %v842_v41, %v142_v36  ;;  %v845_v48 = vadd.f32 %v844_v46, %v843_v43  ;;  %v884_v49 = vpop.f32.mrb[11].mxu1 }
 0x10b   :  { %v885_v51 = vadd.f32 %v884_v49, %v883_v45 }
 0x10c   :  { %v542_v52 = vadd.f32 %v845_v48, %v147_v50  ;;  %v604_v53 = vadd.f32 %v882_v44, %v539_v47 }
 0x10e   :  { %v846_v55 = vpop.f32.mrb[12].mxu0  ;;  %v607_v56 = vadd.f32 %v885_v51, %v542_v52 }
 0x10f   :  { %v886_v57 = vpop.f32.mrb[12].mxu1  ;;  %v847_v58 = vpop.f32.mrb[13].mxu0 }
 0x110   :  { %v848_v59 = vadd.f32 %v847_v58, %v846_v55  ;;  %v887_v60 = vpop.f32.mrb[13].mxu1  ;;  %v849_v61 = vpop.f32.mrb[14].mxu0 }
 0x111   :  { %v888_v62 = vadd.f32 %v887_v60, %v886_v57  ;;  %v889_v63 = vpop.f32.mrb[14].mxu1  ;;  %v850_v0 = vpop.f32.mrb[15].mxu0 }
 0x112   :  { %v547_v1 = vadd.f32 %v848_v59, %v152_v54  ;;  %v851_v2 = vadd.f32 %v850_v0, %v849_v61  ;;  %v890_v3 = vpop.f32.mrb[15].mxu1 }
 0x113   :  { %v891_v5 = vadd.f32 %v890_v3, %v889_v63 }
 0x114   :  { %v550_v6 = vadd.f32 %v851_v2, %v157_v4  ;;  %v612_v7 = vadd.f32 %v888_v62, %v547_v1 }
 0x116   :  { %v910_v8 = vpop.f32.mrb[16].mxu0  ;;  %v615_v9 = vadd.f32 %v891_v5, %v550_v6 }
 0x117   :  { %v661_v10 = vadd.f32 %v910_v8, %v596_v35  ;;  %v914_v11 = vpop.f32.mrb[16].mxu1  ;;  %v652_v12 = vpop.f32.mrb[17].mxu0 }
 0x118   :  { %v677_v13 = vadd.f32 %v914_v11, %v612_v7  ;;  %v653_v14 = vadd.f32 %v652_v12, %v588_v17  ;;  %v668_v15 = vpop.f32.mrb[17].mxu1  ;;  %v911_v16 = vpop.f32.mrb[18].mxu0 }
 0x119   :  { %v685_v18 = vmax.f32 %v661_v10, 0.0  ;;  %v669_v19 = vadd.f32 %v668_v15, %v604_v53  ;;  %v664_v21 = vadd.f32 %v911_v16, %v599_v38  ;;  %v915_v22 = vpop.f32.mrb[18].mxu1  ;;  %v655_v23 = vpop.f32.mrb[19].mxu0 }
 0x11a   :  { %v689_v24 = vmax.f32 %v677_v13, 0.0  ;;  %v683_v25 = vmax.f32 %v653_v14, 0.0  ;;  %v680_v26 = vadd.f32 %v915_v22, %v615_v9  ;;  %v656_v27 = vadd.f32 %v655_v23, %v1208_v20  ;;  %v671_v28 = vpop.f32.mrb[19].mxu1 }
 0x11b   :  { %v806_v29 = vpack.c.bf16 %v685_v18, %v685_v18  ;;  %v687_v30 = vmax.f32 %v669_v19, 0.0  ;;  %v686_v31 = vmax.f32 %v664_v21, 0.0  ;;  %v672_v32 = vadd.f32 %v671_v28, %v607_v56 }
 0x11c   :  { %v810_v33 = vpack.c.bf16 %v689_v24, %v689_v24  ;;  %v804_v17 = vpack.c.bf16 %v683_v25, %v683_v25  ;;  %v690_v34 = vmax.f32 %v680_v26, 0.0  ;;  %v684_v35 = vmax.f32 %v656_v27, 0.0 }
 0x11d   :  { %726 = vst.msk [vmem:[%s1246_s3 + $0x8] sm:$0xf] %vm723_vm1, %v806_v29  ;;  %v808_v36 = vpack.c.bf16 %v687_v30, %v687_v30  ;;  %v807_v37 = vpack.c.bf16 %v686_v31, %v686_v31  ;;  %v688_v38 = vmax.f32 %v672_v32, 0.0 }
 0x11e   :  { %730 = vst.msk [vmem:[%s1246_s3 + $0x18] sm:$0xf] %vm723_vm1, %v810_v33  ;;  %724 = vst.msk [vmem:[%s1246_s3] sm:$0xf] %vm723_vm1, %v804_v17  ;;  %v811_v20 = vpack.c.bf16 %v690_v34, %v690_v34  ;;  %v805_v39 = vpack.c.bf16 %v684_v35, %v684_v35 }
 0x11f   :  { %728 = vst.msk [vmem:[%s1246_s3 + $0x10] sm:$0xf] %vm723_vm1, %v808_v36  ;;  %727 = vst.msk [vmem:[%s1246_s3 + $0xc] sm:$0xf] %vm723_vm1, %v807_v37  ;;  %v809_v40 = vpack.c.bf16 %v688_v38, %v688_v38 }
 0x120   :  { %731 = vst.msk [vmem:[%s1246_s3 + $0x1c] sm:$0xf] %vm723_vm1, %v811_v20  ;;  %725 = vst.msk [vmem:[%s1246_s3 + $0x4] sm:$0xf] %vm723_vm1, %v805_v39 }
 0x121   :  { %729 = vst.msk [vmem:[%s1246_s3 + $0x14] sm:$0xf] %vm723_vm1, %v809_v40 }

// kernel: _lambda_.31
= control target key start
LH: loop header
LB: loop body
LE: loop exit
PB: predicated region body
PF: predicated region fallthrough
CT: control target
= control target key end

     0   :  { %v1037_v1 = vmov 0   ;;  %vm478_vm0 = vcmask 523264   ;;  %vm750_vm1 = vcmask 60416   ;;  %s1309_s1 = inlined_call_operand.vmem [shape: bf16[576,8], index: 1, kind: input, shape index: {}]   ;;  %s1310_s0 = inlined_call_operand.vmem [shape: bf16[64,576], index: 0, kind: input, shape index: {}]   ;;  %s1311_s2 = inlined_call_operand.vmem [shape: f32[64,1], index: 2, kind: input, shape index: {}]   ;;  %s1312_s3 = inlined_call_operand.vmem [shape: bf16[64,8], index: 3, kind: input, shape index: {}]   ;;  %s1313_s4 = inlined_call_operand.vmem [shape: bf16[64,8], index: 4, kind: output, shape index: {}]  }
   0x1   :  { %v973_v0 = vld [vmem:[%s1309_s1 + $0x40] sm:$0xff]   ;;  %971 = vset.pattern.permute.xlu0 %v1037_v1  ;;  %972 = vset.pattern.permute.xlu1 %v1037_v1  ;;  %v977_v5 = vld [vmem:[%s1309_s1 + $0x48] sm:$0xff]   ;;  %v981_v9 = vld [vmem:[%s1309_s1 + $0x50] sm:$0xff]  }
   0x2   :  { %v974_v2 = vld [vmem:[%s1309_s1 + $0xc0] sm:$0xff]   ;;  %858 = vmatprep.subr.bf16.mxu0 %v973_v0  ;;  %v978_v6 = vld [vmem:[%s1309_s1 + $0xc8] sm:$0xff]   ;;  %v982_v10 = vld [vmem:[%s1309_s1 + $0xd0] sm:$0xff]  }
   0x3   :  { %v975_v3 = vld [vmem:[%s1309_s1] sm:$0xff]   ;;  %898 = vmatprep.subr.bf16.mxu1 %v974_v2  ;;  %v979_v7 = vld [vmem:[%s1309_s1 + $0x8] sm:$0xff]   ;;  %v983_v11 = vld [vmem:[%s1309_s1 + $0x10] sm:$0xff]  }
   0x4   :  { %v976_v4 = vld [vmem:[%s1309_s1 + $0x80] sm:$0xff]   ;;  %859 = vmatpush3.bf16.msra.mxu0 %v975_v3  ;;  %v980_v8 = vld [vmem:[%s1309_s1 + $0x88] sm:$0xff]   ;;  %v984_v12 = vld [vmem:[%s1309_s1 + $0x90] sm:$0xff]  }
   0x5   :  { %899 = vmatpush3.bf16.msra.mxu1 %v976_v4  ;;  %860 = vmatprep.subr.bf16.mxu0 %v977_v5  ;;  %v985_v13 = vld [vmem:[%s1309_s1 + $0x58] sm:$0xff]   ;;  %v989_v17 = vld [vmem:[%s1309_s1 + $0x60] sm:$0xff]   ;;  %v993_v21 = vld [vmem:[%s1309_s1 + $0x68] sm:$0xff]  }
   0x6   :  { %900 = vmatprep.subr.bf16.mxu1 %v978_v6  ;;  %v986_v14 = vld [vmem:[%s1309_s1 + $0xd8] sm:$0xff]   ;;  %v990_v18 = vld [vmem:[%s1309_s1 + $0xe0] sm:$0xff]   ;;  %v994_v22 = vld [vmem:[%s1309_s1 + $0xe8] sm:$0xff]  }
   0x7   :  { %v987_v15 = vld [vmem:[%s1309_s1 + $0x18] sm:$0xff]   ;;  %v991_v19 = vld [vmem:[%s1309_s1 + $0x20] sm:$0xff]   ;;  %v995_v23 = vld [vmem:[%s1309_s1 + $0x28] sm:$0xff]  }
   0x8   :  { %861 = vmatpush3.bf16.msra.mxu0 %v979_v7  ;;  %v988_v16 = vld [vmem:[%s1309_s1 + $0x98] sm:$0xff]   ;;  %v992_v20 = vld [vmem:[%s1309_s1 + $0xa0] sm:$0xff]   ;;  %v996_v24 = vld [vmem:[%s1309_s1 + $0xa8] sm:$0xff]  }
   0x9   :  { %901 = vmatpush3.bf16.msra.mxu1 %v980_v8  ;;  %862 = vmatprep.subr.bf16.mxu0 %v981_v9  ;;  %v997_v25 = vld [vmem:[%s1309_s1 + $0x70] sm:$0xff]   ;;  %v1001_v29 = vld [vmem:[%s1309_s1 + $0x78] sm:$0xff]   ;;  %v1010_v36 = vld [vmem:[%s1310_s0 + $0xc] ss:$20 sps:$4 sm:$0xff]  }
   0xa   :  { %902 = vmatprep.subr.bf16.mxu1 %v982_v10  ;;  %v998_v26 = vld [vmem:[%s1309_s1 + $0xf0] sm:$0xff]   ;;  %v1002_v30 = vld [vmem:[%s1309_s1 + $0xf8] sm:$0xff]   ;;  %v1011_v37 = vld [vmem:[%s1309_s1 + $0x100] sm:$0xff]   ;;  %588 = vmatprep.mubr.bf16.mxu1 %v1010_v36 }
   0xb   :  { %v999_v27 = vld [vmem:[%s1309_s1 + $0x30] sm:$0xff]   ;;  %v1003_v31 = vld [vmem:[%s1309_s1 + $0x38] sm:$0xff]   ;;  %v1012_v38 = vld [vmem:[%s1310_s0 + $0x2c] ss:$20 sps:$4 sm:$0xff]  }
   0xc   :  { %863 = vmatpush3.bf16.msra.mxu0 %v983_v11  ;;  %v1000_v28 = vld [vmem:[%s1309_s1 + $0xb0] sm:$0xff]   ;;  %v1004_v32 = vld [vmem:[%s1309_s1 + $0xb8] sm:$0xff]   ;;  %v1018_v40 = vld [vmem:[%s1309_s1 + $0x108] sm:$0xff]  }
   0xd   :  { %903 = vmatpush3.bf16.msra.mxu1 %v984_v12  ;;  %864 = vmatprep.subr.bf16.mxu0 %v985_v13  ;;  %v1005_v33 = vld [vmem:[%s1310_s0] ss:$20 sps:$4 sm:$0xff]   ;;  %v1007_v34 = vld [vmem:[%s1310_s0 + $0x4] ss:$20 sps:$4 sm:$0xff]   ;;  %v1008_v35 = vld [vmem:[%s1310_s0 + $0x8] ss:$20 sps:$4 sm:$0xff]  }
   0xe   :  { %904 = vmatprep.subr.bf16.mxu1 %v986_v14  ;;  %523 = vmatprep.mubr.bf16.mxu0 %v1007_v34  ;;  %v1014_v39 = vld [vmem:[%s1310_s0 + $0x34] ss:$20 sps:$4 sm:$0xff]   ;;  %v1017_v42 = vld [vmem:[%s1310_s0 + $0x30] ss:$20 sps:$4 sm:$0xff]   ;;  %v1032_v46 = vld [vmem:[%s1309_s1 + $0x118] sm:$0xff]  }
   0xf   :  { %v1016_v41 = vld [vmem:[%s1310_s0 + $0x28] ss:$20 sps:$4 sm:$0xff]   ;;  %v1025_v45 = vld [vmem:[%s1309_s1 + $0x110] sm:$0xff]   ;;  %v1024_v48 = vld [vmem:[%s1310_s0 + $0x58] ss:$20 sps:$4 sm:$0xff]  }
  0x10   :  { %865 = vmatpush3.bf16.msra.mxu0 %v987_v15  ;;  %v1019_v43 = vld [vmem:[%s1310_s0 + $0x54] ss:$20 sps:$4 sm:$0xff]   ;;  %v1021_v44 = vld [vmem:[%s1310_s0 + $0x5c] ss:$20 sps:$4 sm:$0xff]   ;;  %v1028_v50 = vld [vmem:[%s1310_s0 + $0x84] ss:$20 sps:$4 sm:$0xff]  }
  0x11   :  { %905 = vmatpush3.bf16.msra.mxu1 %v988_v16  ;;  %866 = vmatprep.subr.bf16.mxu0 %v989_v17  ;;  %v1023_v47 = vld [vmem:[%s1310_s0 + $0x50] ss:$20 sps:$4 sm:$0xff]   ;;  %v115_v53 = vld [vmem:[%s1311_s2 + $0x8] sm:$0xff]  ;;  %v117_v54 = vld [vmem:[%s1311_s2 + $0x18] sm:$0xff] }
  0x12   :  { %906 = vmatprep.subr.bf16.mxu1 %v990_v18  ;;  %v1026_v49 = vld [vmem:[%s1310_s0 + $0x7c] ss:$20 sps:$4 sm:$0xff]   ;;  %v114_v51 = vld [vmem:[%s1311_s2] sm:$0xff]  ;;  %v1030_v55 = vld [vmem:[%s1310_s0 + $0x78] ss:$20 sps:$4 sm:$0xff]  }
  0x13   :  { %v116_v52 = vld [vmem:[%s1311_s2 + $0x10] sm:$0xff]  ;;  %124 = vperm.xlu0 %971, %v114_v51   ;;  %v118_v58 = vld [vmem:[%s1311_s2 + $0x20] sm:$0xff]  ;;  %v119_v60 = vld [vmem:[%s1311_s2 + $0x28] sm:$0xff] }
  0x14   :  { %867 = vmatpush3.bf16.msra.mxu0 %v991_v19  ;;  %134 = vperm.xlu1 %972, %v116_v52   ;;  %v1031_v56 = vld [vmem:[%s1310_s0 + $0x80] ss:$20 sps:$4 sm:$0xff]   ;;  %v1033_v57 = vld [vmem:[%s1310_s0 + $0x10] ss:$20 sps:$4 sm:$0xff]   ;;  %v121_v62 = vld [vmem:[%s1311_s2 + $0x38] sm:$0xff] }
  0x15   :  { %907 = vmatpush3.bf16.msra.mxu1 %v992_v20  ;;  %868 = vmatprep.subr.bf16.mxu0 %v993_v21  ;;  %v1034_v59 = vld [vmem:[%s1310_s0 + $0x60] ss:$20 sps:$4 sm:$0xff]   ;;  %v1035_v63 = vld [vmem:[%s1310_s0 + $0x38] ss:$20 sps:$4 sm:$0xff]   ;;  %v1036_v0 = vld [vmem:[%s1310_s0 + $0x88] ss:$20 sps:$4 sm:$0xff]  }
  0x16   :  { %908 = vmatprep.subr.bf16.mxu1 %v994_v22  ;;  %v120_v61 = vld [vmem:[%s1311_s2 + $0x30] sm:$0xff] }
  0x17   :  { %129 = vperm.xlu0 %971, %v115_v53  }
  0x18   :  { %869 = vmatpush3.bf16.msra.mxu0 %v995_v23  ;;  %139 = vperm.xlu1 %972, %v117_v54  }
  0x19   :  { %909 = vmatpush3.bf16.msra.mxu1 %v996_v24  ;;  %870 = vmatprep.subr.bf16.mxu0 %v997_v25 }
  0x1a   :  { %910 = vmatprep.subr.bf16.mxu1 %v998_v26 }
  0x1b   :  { %144 = vperm.xlu0 %971, %v118_v58  }
  0x1c   :  { %871 = vmatpush3.bf16.msra.mxu0 %v999_v27  ;;  %149 = vperm.xlu1 %972, %v119_v60  }
  0x1d   :  { %911 = vmatpush3.bf16.msra.mxu1 %v1000_v28  ;;  %872 = vmatprep.subr.bf16.mxu0 %v1001_v29 }
  0x1e   :  { %912 = vmatprep.subr.bf16.mxu1 %v1002_v30 }
  0x1f   :  { %154 = vperm.xlu0 %971, %v120_v61  }
  0x20   :  { %873 = vmatpush3.bf16.msra.mxu0 %v1003_v31  ;;  %159 = vperm.xlu1 %972, %v121_v62  }
  0x21   :  { %913 = vmatpush3.bf16.msra.mxu1 %v1004_v32  ;;  %946 = vmatprep.subr.bf16.mxu0 %v1011_v37 }
  0x22   :  { %962 = vmatprep.subr.bf16.mxu1 %v1011_v37 }
  0x23   :  { %524 = vmatmul.mubr.bf16.vlgmr.msra.gmra.mrb[0].mxu0 %v1005_v33 }
  0x24   :  { %589 = vmatmul.mubr.bf16.vlgmr.msra.gmra.mrb[0].mxu1 %v1008_v35  ;;  %947 = vmatpush3.bf16.msra.mxu0 %v1011_v37 }
  0x25   :  { %966 = vmatpush3.bf16.msra.mxu1 %v1011_v37  ;;  %531 = vmatprep.mubr.bf16.mxu0 %v1012_v38 }
  0x26   :  { %596 = vmatprep.mubr.bf16.mxu1 %v1014_v39  ;;  %948 = vmatprep.subr.bf16.mxu0 %v1018_v40 }
  0x27   :  { %963 = vmatprep.subr.bf16.mxu1 %v1018_v40 }
  0x28   :  { %949 = vmatpush3.bf16.msra.mxu0 %v1018_v40 }
  0x29   :  { %967 = vmatpush3.bf16.msra.mxu1 %v1018_v40  ;;  %950 = vmatprep.subr.bf16.mxu0 %v1025_v45 }
  0x2a   :  { %964 = vmatprep.subr.bf16.mxu1 %v1025_v45 }
  0x2b   :  { %532 = vmatmul.mubr.bf16.gmra.mrb[4].mxu0 %v1016_v41 }
  0x2c   :  { %597 = vmatmul.mubr.bf16.gmra.mrb[4].mxu1 %v1017_v42  ;;  %539 = vmatprep.mubr.bf16.mxu0 %v1019_v43 }
  0x2d   :  { %604 = vmatprep.mubr.bf16.mxu1 %v1021_v44  ;;  %951 = vmatpush3.bf16.msra.mxu0 %v1025_v45 }
  0x2e   :  { %968 = vmatpush3.bf16.msra.mxu1 %v1025_v45  ;;  %952 = vmatprep.subr.bf16.mxu0 %v1032_v46 }
  0x2f   :  { %965 = vmatprep.subr.bf16.mxu1 %v1032_v46 }
  0x31   :  { %953 = vmatpush3.bf16.msra.mxu0 %v1032_v46 }
  0x32   :  { %969 = vmatpush3.bf16.msra.mxu1 %v1032_v46 }
  0x33   :  { %540 = vmatmul.mubr.bf16.gmra.mrb[8].mxu0 %v1023_v47 }
  0x34   :  { %605 = vmatmul.mubr.bf16.gmra.mrb[8].mxu1 %v1024_v48  ;;  %547 = vmatprep.mubr.bf16.mxu0 %v1026_v49 }
  0x35   :  { %612 = vmatprep.mubr.bf16.mxu1 %v1028_v50 }
  0x3b   :  { %548 = vmatmul.mubr.bf16.gmra.mrb[12].mxu0 %v1030_v55 }
  0x3c   :  { %613 = vmatmul.mubr.bf16.gmra.mrb[12].mxu1 %v1031_v56  ;;  %954 = vmatprep.mubr.msk.bf16.mxu0 %vm478_vm0, %v1033_v57 }
  0x3d   :  { %958 = vmatprep.mubr.msk.bf16.mxu1 %vm478_vm0, %v1034_v59 }
  0x43   :  { %955 = vmatmul.mubr.msk.bf16.vlgmr.msra.gmra.mrb[16].mxu0 %vm478_vm0, %v1035_v63 }
  0x44   :  { %959 = vmatmul.mubr.msk.bf16.vlgmr.msra.gmra.mrb[16].mxu1 %vm478_vm0, %v1036_v0 }
  0x92   :  { %v125_v1 = vpop.permute.xlu0 %124 }
  0x93   :  { %v135_v18 = vpop.permute.xlu1 %134 }
  0x96   :  { %v130_v3 = vpop.permute.xlu0 %129 }
  0x97   :  { %v140_v33 = vpop.permute.xlu1 %139 }
  0x9a   :  { %v145_v36 = vpop.permute.xlu0 %144 }
  0x9b   :  { %v150_v50 = vpop.permute.xlu1 %149 }
  0x9e   :  { %v155_v54 = vpop.permute.xlu0 %154 }
  0xf6   :  { %v874_v2 = vpop.f32.mrb[0].mxu0 }
  0xf7   :  { %v914_v4 = vpop.f32.mrb[0].mxu1  ;;  %v875_v5 = vpop.f32.mrb[1].mxu0 }
  0xf8   :  { %v876_v6 = vadd.f32 %v875_v5, %v874_v2  ;;  %v915_v7 = vpop.f32.mrb[1].mxu1  ;;  %v877_v8 = vpop.f32.mrb[2].mxu0 }
  0xf9   :  { %v916_v9 = vadd.f32 %v915_v7, %v914_v4  ;;  %v917_v10 = vpop.f32.mrb[2].mxu1  ;;  %v878_v11 = vpop.f32.mrb[3].mxu0  ;;  %v855_v4 = vld [vmem:[%s1312_s3 + $0x8] sm:$0xff]   ;;  %v857_v7 = vld [vmem:[%s1312_s3 + $0x18] sm:$0xff]  }
  0xfa   :  { %v526_v12 = vadd.f32 %v876_v6, %v125_v1  ;;  %v879_v13 = vadd.f32 %v878_v11, %v877_v8  ;;  %v918_v14 = vpop.f32.mrb[3].mxu1  ;;  %v160_v5 = vpop.permute.xlu1 %159  ;;  %v840_v8 = vld [vmem:[%s1312_s3] sm:$0xff]   ;;  %v856_v11 = vld [vmem:[%s1312_s3 + $0x10] sm:$0xff]  }
  0xfb   :  { %v919_v15 = vadd.f32 %v918_v14, %v917_v10  ;;  %v853_v14 = vunpack.c.l.bf16 %v857_v7 }
  0xfc   :  { %v529_v16 = vadd.f32 %v879_v13, %v130_v3  ;;  %v1259_v17 = vadd.f32 %v916_v9, %v526_v12  ;;  %v845_v12 = vunpack.c.l.bf16 %v855_v4 }
  0xfe   :  { %v880_v19 = vpop.f32.mrb[4].mxu0  ;;  %v1261_v20 = vadd.f32 %v919_v15, %v529_v16  ;;  %v841_v15 = vunpack.c.l.bf16 %v840_v8 }
  0xff   :  { %v920_v21 = vpop.f32.mrb[4].mxu1  ;;  %v881_v22 = vpop.f32.mrb[5].mxu0 }
 0x100   :  { %v882_v23 = vadd.f32 %v881_v22, %v880_v19  ;;  %v921_v24 = vpop.f32.mrb[5].mxu1  ;;  %v883_v25 = vpop.f32.mrb[6].mxu0  ;;  %v849_v22 = vunpack.c.l.bf16 %v856_v11 }
 0x101   :  { %v922_v26 = vadd.f32 %v921_v24, %v920_v21  ;;  %v923_v27 = vpop.f32.mrb[6].mxu1  ;;  %v884_v28 = vpop.f32.mrb[7].mxu0  ;;  %v854_v24 = vunpack.c.h.bf16 %v857_v7 }
 0x102   :  { %v534_v29 = vadd.f32 %v882_v23, %v135_v18  ;;  %v885_v30 = vadd.f32 %v884_v28, %v883_v25  ;;  %v924_v31 = vpop.f32.mrb[7].mxu1  ;;  %v846_v23 = vunpack.c.h.bf16 %v855_v4 }
 0x103   :  { %v925_v32 = vadd.f32 %v924_v31, %v923_v27 }
 0x104   :  { %v537_v34 = vadd.f32 %v885_v30, %v140_v33  ;;  %v599_v35 = vadd.f32 %v922_v26, %v534_v29  ;;  %v842_v29 = vunpack.c.h.bf16 %v840_v8  ;;  %v850_v30 = vunpack.c.h.bf16 %v856_v11 }
 0x106   :  { %v886_v37 = vpop.f32.mrb[8].mxu0  ;;  %v602_v38 = vadd.f32 %v925_v32, %v537_v34 }
 0x107   :  { %v926_v39 = vpop.f32.mrb[8].mxu1  ;;  %v887_v40 = vpop.f32.mrb[9].mxu0 }
 0x108   :  { %v888_v41 = vadd.f32 %v887_v40, %v886_v37  ;;  %v927_v42 = vpop.f32.mrb[9].mxu1  ;;  %v889_v43 = vpop.f32.mrb[10].mxu0 }
 0x109   :  { %v928_v44 = vadd.f32 %v927_v42, %v926_v39  ;;  %v929_v45 = vpop.f32.mrb[10].mxu1  ;;  %v890_v46 = vpop.f32.mrb[11].mxu0 }
 0x10a   :  { %v542_v47 = vadd.f32 %v888_v41, %v145_v36  ;;  %v891_v48 = vadd.f32 %v890_v46, %v889_v43  ;;  %v930_v49 = vpop.f32.mrb[11].mxu1 }
 0x10b   :  { %v931_v51 = vadd.f32 %v930_v49, %v929_v45 }
 0x10c   :  { %v545_v52 = vadd.f32 %v891_v48, %v150_v50  ;;  %v607_v53 = vadd.f32 %v928_v44, %v542_v47 }
 0x10e   :  { %v892_v55 = vpop.f32.mrb[12].mxu0  ;;  %v610_v56 = vadd.f32 %v931_v51, %v545_v52 }
 0x10f   :  { %v932_v57 = vpop.f32.mrb[12].mxu1  ;;  %v893_v58 = vpop.f32.mrb[13].mxu0 }
 0x110   :  { %v894_v59 = vadd.f32 %v893_v58, %v892_v55  ;;  %v933_v60 = vpop.f32.mrb[13].mxu1  ;;  %v895_v61 = vpop.f32.mrb[14].mxu0 }
 0x111   :  { %v934_v62 = vadd.f32 %v933_v60, %v932_v57  ;;  %v935_v63 = vpop.f32.mrb[14].mxu1  ;;  %v896_v0 = vpop.f32.mrb[15].mxu0 }
 0x112   :  { %v550_v1 = vadd.f32 %v894_v59, %v155_v54  ;;  %v897_v2 = vadd.f32 %v896_v0, %v895_v61  ;;  %v936_v3 = vpop.f32.mrb[15].mxu1 }
 0x113   :  { %v937_v6 = vadd.f32 %v936_v3, %v935_v63 }
 0x114   :  { %v553_v9 = vadd.f32 %v897_v2, %v160_v5  ;;  %v615_v10 = vadd.f32 %v934_v62, %v550_v1 }
 0x116   :  { %v956_v13 = vpop.f32.mrb[16].mxu0  ;;  %v618_v16 = vadd.f32 %v937_v6, %v553_v9 }
 0x117   :  { %v664_v18 = vadd.f32 %v956_v13, %v599_v35  ;;  %v960_v19 = vpop.f32.mrb[16].mxu1  ;;  %v655_v21 = vpop.f32.mrb[17].mxu0 }
 0x118   :  { %v680_v25 = vadd.f32 %v960_v19, %v615_v10  ;;  %v656_v26 = vadd.f32 %v655_v21, %v1259_v17  ;;  %v671_v27 = vpop.f32.mrb[17].mxu1  ;;  %v957_v28 = vpop.f32.mrb[18].mxu0 }
 0x119   :  { %v704_v31 = vadd.f32 %v845_v12, %v664_v18  ;;  %v672_v32 = vadd.f32 %v671_v27, %v607_v53  ;;  %v667_v33 = vadd.f32 %v957_v28, %v602_v38  ;;  %v961_v34 = vpop.f32.mrb[18].mxu1  ;;  %v658_v36 = vpop.f32.mrb[19].mxu0 }
 0x11a   :  { %v708_v37 = vadd.f32 %v853_v14, %v680_v25  ;;  %v702_v35 = vadd.f32 %v841_v15, %v656_v26  ;;  %v683_v39 = vadd.f32 %v961_v34, %v618_v16  ;;  %v659_v40 = vadd.f32 %v658_v36, %v1261_v20  ;;  %v674_v41 = vpop.f32.mrb[19].mxu1 }
 0x11b   :  { %v712_v42 = vmax.f32 %v704_v31, 0.0  ;;  %v706_v43 = vadd.f32 %v849_v22, %v672_v32  ;;  %v705_v44 = vadd.f32 %v846_v23, %v667_v33  ;;  %v675_v17 = vadd.f32 %v674_v41, %v610_v56 }
 0x11c   :  { %v716_v45 = vmax.f32 %v708_v37, 0.0  ;;  %v710_v46 = vmax.f32 %v702_v35, 0.0  ;;  %v709_v47 = vadd.f32 %v854_v24, %v683_v39  ;;  %v703_v48 = vadd.f32 %v842_v29, %v659_v40 }
 0x11d   :  { %v833_v49 = vpack.c.bf16 %v712_v42, %v712_v42  ;;  %v714_v50 = vmax.f32 %v706_v43, 0.0  ;;  %v713_v51 = vmax.f32 %v705_v44, 0.0  ;;  %v707_v38 = vadd.f32 %v850_v30, %v675_v17 }
 0x11e   :  { %v837_v52 = vpack.c.bf16 %v716_v45, %v716_v45  ;;  %v831_v53 = vpack.c.bf16 %v710_v46, %v710_v46  ;;  %v717_v54 = vmax.f32 %v709_v47, 0.0  ;;  %v711_v55 = vmax.f32 %v703_v48, 0.0 }
 0x11f   :  { %753 = vst.msk [vmem:[%s1313_s4 + $0x8] sm:$0xf] %vm750_vm1, %v833_v49  ;;  %v835_v20 = vpack.c.bf16 %v714_v50, %v714_v50  ;;  %v834_v57 = vpack.c.bf16 %v713_v51, %v713_v51  ;;  %v715_v56 = vmax.f32 %v707_v38, 0.0 }
 0x120   :  { %757 = vst.msk [vmem:[%s1313_s4 + $0x18] sm:$0xf] %vm750_vm1, %v837_v52  ;;  %751 = vst.msk [vmem:[%s1313_s4] sm:$0xf] %vm750_vm1, %v831_v53  ;;  %v838_v58 = vpack.c.bf16 %v717_v54, %v717_v54  ;;  %v832_v59 = vpack.c.bf16 %v711_v55, %v711_v55 }
 0x121   :  { %755 = vst.msk [vmem:[%s1313_s4 + $0x10] sm:$0xf] %vm750_vm1, %v835_v20  ;;  %754 = vst.msk [vmem:[%s1313_s4 + $0xc] sm:$0xf] %vm750_vm1, %v834_v57  ;;  %v836_v60 = vpack.c.bf16 %v715_v56, %v715_v56 }
 0x122   :  { %758 = vst.msk [vmem:[%s1313_s4 + $0x1c] sm:$0xf] %vm750_vm1, %v838_v58  ;;  %752 = vst.msk [vmem:[%s1313_s4 + $0x4] sm:$0xf] %vm750_vm1, %v832_v59 }
 0x123   :  { %756 = vst.msk [vmem:[%s1313_s4 + $0x14] sm:$0xf] %vm750_vm1, %v836_v60 }

</bundles_post_ra>
